<compile_context>
chip_gen: v7x
topology: tpu7x:2x2x1
jax: 0.10.0
libtpu: 0.0.40
codegen_flags: <defaults>
</compile_context>

<pallas_src>
import functools

import jax
import jax.numpy as jnp
from jax.experimental import pallas as pl
from jax.experimental.pallas import tpu as pltpu

LN_EPS = 1e-5
# MXU operand dtype (inputs rounded to bf16, accumulation in f32).
MXU_DTYPE = jnp.bfloat16


# --------------------------------------------------------------------------
# In-kernel helpers
# --------------------------------------------------------------------------
def _layernorm(x32, g, b):
    mean = jnp.mean(x32, axis=-1, keepdims=True)
    var = jnp.mean(jnp.square(x32 - mean), axis=-1, keepdims=True)
    return (x32 - mean) * jax.lax.rsqrt(var + LN_EPS) * g + b


def _mm(a, b):
    """bf16 x bf16 -> f32 MXU matmul."""
    return jnp.dot(a.astype(MXU_DTYPE), b.astype(MXU_DTYPE),
                   preferred_element_type=jnp.float32)


def _mha(q, k, v, mask, bias, wo_ref, num_heads):
    """All-head attention fused with a single (T,D)@(D,D) output projection.

    q:(T,D) f32, k/v:(S,D) bf16, mask:(T,S) f32, bias:(H,T,S) (any dtype) or None,
    wo_ref:(D,D) Ref (c_attn folded into its rows; scaling folded into the q proj).
    Heads are processed with one batched MXU op per stage instead of per-head loops.
    """
    T, D = q.shape
    hd = D // num_heads
    qb = q.astype(MXU_DTYPE)
    # head-major (H, T, hd) / (H, S, hd) operands -> leading-batch dot_general
    qh = jnp.stack([qb[:, h * hd:(h + 1) * hd] for h in range(num_heads)], axis=0)
    kh = jnp.stack([k[:, h * hd:(h + 1) * hd] for h in range(num_heads)], axis=0)
    vh = jnp.stack([v[:, h * hd:(h + 1) * hd] for h in range(num_heads)], axis=0)

    s = jnp.einsum('htd,hsd->hts', qh, kh,
                   preferred_element_type=jnp.float32)            # (H, T, S)
    s = s + mask[None, :, :]
    if bias is not None:
        s = s + bias.astype(jnp.float32)
    s = s - jnp.max(s, axis=-1, keepdims=True)
    p = jnp.exp(s)
    p = p * pl.reciprocal(jnp.sum(p, axis=-1, keepdims=True), approx=True)

    o = jnp.einsum('hts,hsd->htd', p.astype(MXU_DTYPE), vh,
                   preferred_element_type=jnp.float32)            # (H, T, hd)
    o2 = jnp.concatenate([o[h] for h in range(num_heads)], axis=-1)  # (T, D) lane-dense
    return _mm(o2, wo_ref[...])                                   # single K=D out-proj


# --------------------------------------------------------------------------
# Fused kernels
# --------------------------------------------------------------------------
def self_attn_block_kernel(x_ref, lng_ref, lnb_ref, wq_ref, bq_ref, wkv_ref, bkv_ref,
                           wo_ref, bo_ref, midg_ref, midb_ref, mask_ref, *rest,
                           num_heads, has_bias):
    if has_bias:
        bias_ref, o_ref, kv_ref = rest
    else:
        bias_ref = None
        o_ref, kv_ref = rest

    qi = pl.program_id(1)
    T, D = x_ref.shape
    tq = o_ref.shape[0]

    # K/V projection of the whole LayerNorm'd sequence: once per batch element,
    # kept resident in the VMEM scratch across query tiles (q axis is "arbitrary").
    @pl.when(qi == 0)
    def _():
        xn_full = _layernorm(x_ref[...].astype(jnp.float32), lng_ref[...], lnb_ref[...])
        kv_ref[...] = (_mm(xn_full, wkv_ref[...]) + bkv_ref[...]).astype(kv_ref.dtype)

    row0 = pl.multiple_of(qi * tq, tq)
    x_q = x_ref[pl.ds(row0, tq), :].astype(jnp.float32)           # residual rows
    xn_q = _layernorm(x_q, lng_ref[...], lnb_ref[...])
    q = _mm(xn_q, wq_ref[...]) + bq_ref[...]                      # scaling pre-folded

    kv = kv_ref[...]
    k, v = kv[:, :D], kv[:, D:]
    mask = mask_ref[...].astype(jnp.float32)
    bias = bias_ref[...] if has_bias else None

    attn = _mha(q, k, v, mask, bias, wo_ref, num_heads) + bo_ref[...]
    y = _layernorm(attn, midg_ref[...], midb_ref[...])
    o_ref[...] = (x_q + y).astype(o_ref.dtype)


def cross_attn_block_kernel(x_ref, enc_ref, lng_ref, lnb_ref, wq_ref, bq_ref,
                            wkv_ref, bkv_ref, wo_ref, bo_ref, midg_ref, midb_ref,
                            mask_ref, *rest, num_heads, has_bias):
    if has_bias:
        bias_ref, o_ref, kv_ref = rest
    else:
        bias_ref = None
        o_ref, kv_ref = rest

    qi = pl.program_id(1)
    D = x_ref.shape[-1]

    # K/V projection of the encoder states (no LayerNorm on them, per the module):
    # computed once per batch element, reused for every query tile.
    @pl.when(qi == 0)
    def _():
        kv_ref[...] = (_mm(enc_ref[...], wkv_ref[...]) + bkv_ref[...]).astype(kv_ref.dtype)

    x = x_ref[...].astype(jnp.float32)                            # residual rows
    xn = _layernorm(x, lng_ref[...], lnb_ref[...])
    q = _mm(xn, wq_ref[...]) + bq_ref[...]

    kv = kv_ref[...]
    k, v = kv[:, :D], kv[:, D:]
    mask = mask_ref[...].astype(jnp.float32)
    bias = bias_ref[...] if has_bias else None

    attn = _mha(q, k, v, mask, bias, wo_ref, num_heads) + bo_ref[...]
    y = _layernorm(attn, midg_ref[...], midb_ref[...])
    o_ref[...] = (x + y).astype(o_ref.dtype)


def ffn_block_kernel(x_ref, fg_ref, fb_ref, w1_ref, b1_ref, lg_ref, g2_ref, b2_ref,
                     w2_ref, o_ref, acc_ref, s1_ref, s2_ref, *, ffn_dim):
    f = pl.program_id(1)
    nf = pl.num_programs(1)

    @pl.when(f == 0)
    def _():
        acc_ref[...] = jnp.zeros_like(acc_ref)
        s1_ref[...] = jnp.zeros_like(s1_ref)
        s2_ref[...] = jnp.zeros_like(s2_ref)

    x = x_ref[...].astype(jnp.float32)                            # residual rows
    xn = _layernorm(x, fg_ref[...], fb_ref[...])                  # final_layer_norm
    # TODO(synk): ACT2FN['gelu'] is the exact erf GELU; tanh approx used for robust lowering.
    h = jax.nn.gelu(_mm(xn, w1_ref[...]) + b1_ref[...], approximate=True)   # (tm, tf)

    # ffn_layer_norm + fc2 streamed over F tiles:
    #   LN(h) @ w2 = inv*[(h*g) @ w2] - mean*inv*(g @ w2) + (b @ w2)
    # (g @ w2) and (b @ w2 + fc2_bias) are precomputed in the wrapper (g2 / b2).
    acc_ref[...] += _mm(h * lg_ref[...], w2_ref[...])
    s1_ref[...] += jnp.sum(h, axis=-1, keepdims=True)
    s2_ref[...] += jnp.sum(h * h, axis=-1, keepdims=True)

    @pl.when(f == nf - 1)
    def _():
        mean = s1_ref[...] * (1.0 / ffn_dim)
        var = s2_ref[...] * (1.0 / ffn_dim) - mean * mean
        inv = jax.lax.rsqrt(var + LN_EPS)
        y = acc_ref[...] * inv - (mean * inv) * g2_ref[...] + b2_ref[...]
        o_ref[...] = (x + y).astype(o_ref.dtype)


# --------------------------------------------------------------------------
# pallas_call wrappers
# --------------------------------------------------------------------------
def _full_spec(arr):
    """Whole-array block (weights / LN params), constant across the grid."""
    # TODO(synk): add pipeline_mode=pl.Buffered(1) here on v7x to avoid double-buffering
    # grid-constant weights once single-buffering is validated on the target jax version.
    nd = arr.ndim

    def idx(*_):
        return (0,) * nd

    return pl.BlockSpec(arr.shape, idx)


@functools.lru_cache(maxsize=None)
def _vmem_limit_bytes():
    try:
        cap = int(pltpu.get_tpu_info().vmem_capacity_bytes)
    except Exception:
        cap = 128 * 1024 * 1024
    # leave headroom for Mosaic-internal scratch; cap for v5e/v6e, auto-shrinks on v7x
    return int(max(min(cap - 16 * 1024 * 1024, 100 * 1024 * 1024), 32 * 1024 * 1024))


def _compiler_params(dims):
    return pltpu.CompilerParams(dimension_semantics=dims,
                                vmem_limit_bytes=_vmem_limit_bytes())


def _nbytes(*arrays):
    return sum(int(a.size) * a.dtype.itemsize for a in arrays if a is not None)


def _pick_q_tile(seq_len, q_tile):
    tq = min(q_tile, seq_len)
    if tq != seq_len and (seq_len % tq != 0 or tq % 8 != 0):
        tq = seq_len   # TODO(synk): ragged query tiles
    return tq


def fused_self_attention(x, mask, bias, ln_g, ln_b, wq, bq, wkv, bkv, wo, bo,
                         mid_g, mid_b, *, num_heads, q_tile):
    B, T, D = x.shape
    H = num_heads
    tq = _pick_q_tile(T, q_tile)
    nq = T // tq
    has_bias = bias is not None

    in_specs = [pl.BlockSpec((None, T, D), lambda b, qi: (b, 0, 0))]   # full seq / batch
    args = [x]
    for p in (ln_g, ln_b, wq, bq, wkv, bkv, wo, bo, mid_g, mid_b):
        in_specs.append(_full_spec(p))
        args.append(p)
    in_specs.append(pl.BlockSpec((None, None, tq, T), lambda b, qi: (b, 0, qi, 0)))
    args.append(mask)
    if has_bias:
        in_specs.append(pl.BlockSpec((None, H, tq, T), lambda b, qi: (b, 0, qi, 0)))
        args.append(bias)

    flops = 2 * B * (3 * T * D * D + 2 * T * T * D + T * D * D)
    cost = pl.CostEstimate(flops=int(flops), transcendentals=int(B * H * T * T),
                           bytes_accessed=int(_nbytes(*args) + _nbytes(x)))

    return pl.pallas_call(
        functools.partial(self_attn_block_kernel, num_heads=H, has_bias=has_bias),
        out_shape=jax.ShapeDtypeStruct((B, T, D), x.dtype),
        grid=(B, nq),
        in_specs=in_specs,
        out_specs=pl.BlockSpec((None, tq, D), lambda b, qi: (b, qi, 0)),
        scratch_shapes=[pltpu.VMEM((T, 2 * D), MXU_DTYPE)],       # K|V, carried over qi
        compiler_params=_compiler_params(("parallel", "arbitrary")),
        cost_estimate=cost,
    )(*args)


def fused_cross_attention(x, enc, mask, bias, ln_g, ln_b, wq, bq, wkv, bkv, wo, bo,
                          mid_g, mid_b, *, num_heads, q_tile):
    B, T, D = x.shape
    S = enc.shape[1]
    H = num_heads
    tq = _pick_q_tile(T, q_tile)
    nq = T // tq
    has_bias = bias is not None

    in_specs = [pl.BlockSpec((None, tq, D), lambda b, qi: (b, qi, 0)),
                pl.BlockSpec((None, S, D), lambda b, qi: (b, 0, 0))]
    args = [x, enc]
    for p in (ln_g, ln_b, wq, bq, wkv, bkv, wo, bo, mid_g, mid_b):
        in_specs.append(_full_spec(p))
        args.append(p)
    in_specs.append(pl.BlockSpec((None, None, tq, S), lambda b, qi: (b, 0, qi, 0)))
    args.append(mask)
    if has_bias:
        in_specs.append(pl.BlockSpec((None, H, tq, S), lambda b, qi: (b, 0, qi, 0)))
        args.append(bias)

    flops = 2 * B * (T * D * D + 2 * S * D * D + 2 * T * S * D + T * D * D)
    cost = pl.CostEstimate(flops=int(flops), transcendentals=int(B * H * T * S),
                           bytes_accessed=int(_nbytes(*args) + _nbytes(x)))

    return pl.pallas_call(
        functools.partial(cross_attn_block_kernel, num_heads=H, has_bias=has_bias),
        out_shape=jax.ShapeDtypeStruct((B, T, D), x.dtype),
        grid=(B, nq),
        in_specs=in_specs,
        out_specs=pl.BlockSpec((None, tq, D), lambda b, qi: (b, qi, 0)),
        scratch_shapes=[pltpu.VMEM((S, 2 * D), MXU_DTYPE)],       # K|V, carried over qi
        compiler_params=_compiler_params(("parallel", "arbitrary")),
        cost_estimate=cost,
    )(*args)


def fused_ffn(x2d, fin_g, fin_b, w1, b1, ffn_g, g2, b2_eff, w2, *, row_tile, col_tile):
    M, D = x2d.shape
    F = w1.shape[1]
    tm = M if M <= row_tile else row_tile                         # row_tile multiple of 8
    tf = min(col_tile, F)
    if tf != F and (F % tf != 0 or tf % 128 != 0):
        tf = F   # TODO(synk): ragged F tiles would corrupt the streamed LN moments
    nf = F // tf
    nrows = pl.cdiv(M, tm)

    in_specs = [pl.BlockSpec((tm, D), lambda i, f: (i, 0)),
                _full_spec(fin_g), _full_spec(fin_b),
                pl.BlockSpec((D, tf), lambda i, f: (0, f)),
                pl.BlockSpec((1, tf), lambda i, f: (0, f)),
                pl.BlockSpec((1, tf), lambda i, f: (0, f)),
                _full_spec(g2), _full_spec(b2_eff),
                pl.BlockSpec((tf, D), lambda i, f: (f, 0))]

    cost = pl.CostEstimate(flops=int(4 * M * D * F), transcendentals=int(M * F),
                           bytes_accessed=int(_nbytes(x2d, w1, b1, w2, g2, b2_eff)
                                              + _nbytes(x2d)))

    return pl.pallas_call(
        functools.partial(ffn_block_kernel, ffn_dim=F),
        out_shape=jax.ShapeDtypeStruct((M, D), x2d.dtype),
        grid=(nrows, nf),
        in_specs=in_specs,
        out_specs=pl.BlockSpec((tm, D), lambda i, f: (i, 0)),
        scratch_shapes=[pltpu.VMEM((tm, D), jnp.float32),         # fc2 accumulator
                        pltpu.VMEM((tm, 1), jnp.float32),         # sum(h)
                        pltpu.VMEM((tm, 1), jnp.float32)],        # sum(h*h)
        compiler_params=_compiler_params(("parallel", "arbitrary")),
        cost_estimate=cost,
    )(x2d, fin_g, fin_b, w1, b1, ffn_g, g2, b2_eff, w2)


# --------------------------------------------------------------------------
# OFADecoderLayer forward (parameter folding at trace time, math in 3 Pallas kernels)
# --------------------------------------------------------------------------
def ofa_decoder_layer(params, hidden_states, attention_mask, encoder_hidden_states,
                      encoder_attention_mask, self_attn_bias, cross_attn_bias,
                      *, num_heads, q_tile=256, ffn_row_tile=512, ffn_col_tile=512):
    B, T, D = hidden_states.shape
    S = encoder_hidden_states.shape[1]
    H = num_heads
    hd = D // H
    scaling = float(hd * 2) ** (-0.5)            # OFAAttention: (head_dim * 2) ** -0.5
    wdt = MXU_DTYPE

    # ---- parameter folding (free at trace time): scaling -> wq/bq, c_attn -> wo rows,
    #      K/V fused into one (D,2D) matmul, all matmul weights stored bf16 in HBM.
    sp = params['self_attn']
    wq_s = (sp['wq'] * scaling).astype(wdt)
    bq_s = sp['bq'] * scaling
    wkv_s = jnp.concatenate([sp['wk'], sp['wv']], axis=1).astype(wdt)
    bkv_s = jnp.concatenate([sp['bk'], sp['bv']], axis=1)
    wo_s = (sp['wo'] * jnp.repeat(sp['c_attn'], hd)[:, None]).astype(wdt)

    cp = params['cross_attn']
    wq_c = (cp['wq'] * scaling).astype(wdt)
    bq_c = cp['bq'] * scaling
    wkv_c = jnp.concatenate([cp['wk'], cp['wv']], axis=1).astype(wdt)
    bkv_c = jnp.concatenate([cp['bk'], cp['bv']], axis=1)
    wo_c = (cp['wo'] * jnp.repeat(cp['c_attn'], hd)[:, None]).astype(wdt)

    # positional biases stay in HBM in bf16 (upcast in-kernel where they are added)
    bias_s = (None if self_attn_bias is None
              else self_attn_bias.reshape(B, H, T, T).astype(wdt))
    bias_c = (None if cross_attn_bias is None
              else cross_attn_bias.reshape(B, H, T, S).astype(wdt))

    # ---------------- self attention (fused kernel 1) ----------------
    h = fused_self_attention(
        hidden_states, attention_mask, bias_s,
        params['sa_ln_g'], params['sa_ln_b'],
        wq_s, bq_s, wkv_s, bkv_s, wo_s, sp['bo'],
        params['sa_mid_ln_g'], params['sa_mid_ln_b'],
        num_heads=H, q_tile=q_tile)

    # ---------------- cross attention (fused kernel 2) ----------------
    h = fused_cross_attention(
        h, encoder_hidden_states, encoder_attention_mask, bias_c,
        params['ca_ln_g'], params['ca_ln_b'],
        wq_c, bq_c, wkv_c, bkv_c, wo_c, cp['bo'],
        params['ca_mid_ln_g'], params['ca_mid_ln_b'],
        num_heads=H, q_tile=q_tile)

    # ---------------- feed-forward (fused kernel 3) ----------------
    # Precompute the F-streamed ffn-LN constants in f32 (exact):
    #   g2 = ffn_ln_g @ w2, b2_eff = ffn_ln_b @ w2 + fc2_bias
    g2 = jnp.dot(params['ffn_ln_g'], params['w2'])
    b2_eff = jnp.dot(params['ffn_ln_b'], params['w2']) + params['b2']
    h2d = fused_ffn(h.reshape(B * T, D),
                    params['final_ln_g'], params['final_ln_b'],
                    params['w1'].astype(wdt), params['b1'],
                    params['ffn_ln_g'], g2, b2_eff,
                    params['w2'].astype(wdt),
                    row_tile=ffn_row_tile, col_tile=ffn_col_tile)
    return h2d.reshape(B, T, D)


# --------------------------------------------------------------------------
# Pure-JAX reference (module math; matmul operands rounded to bf16 like the kernels)
# --------------------------------------------------------------------------
def reference_decoder_layer(params, hidden_states, attention_mask, encoder_hidden_states,
                            encoder_attention_mask, self_attn_bias, cross_attn_bias,
                            num_heads, matmul_dtype=MXU_DTYPE):
    B, T, D = hidden_states.shape
    S = encoder_hidden_states.shape[1]
    H = num_heads
    hd = D // H
    scaling = float(hd * 2) ** (-0.5)

    def mm(a, b):
        return jnp.dot(a.astype(matmul_dtype), b.astype(matmul_dtype),
                       preferred_element_type=jnp.float32)

    def ln(x, g, b):
        mean = jnp.mean(x, -1, keepdims=True)
        var = jnp.mean(jnp.square(x - mean), -1, keepdims=True)
        return (x - mean) * jax.lax.rsqrt(var + LN_EPS) * g.reshape(-1) + b.reshape(-1)

    def attention(xq, xkv, p, mask, bias):
        L = xkv.shape[1]
        q = (mm(xq, p['wq']) + p['bq'].reshape(-1)) * scaling
        k = mm(xkv, p['wk']) + p['bk'].reshape(-1)
        v = mm(xkv, p['wv']) + p['bv'].reshape(-1)
        q = q.reshape(B, T, H, hd).transpose(0, 2, 1, 3)
        k = k.reshape(B, L, H, hd).transpose(0, 2, 1, 3)
        v = v.reshape(B, L, H, hd).transpose(0, 2, 1, 3)
        w = jnp.einsum('bhtd,bhsd->bhts', q.astype(matmul_dtype), k.astype(matmul_dtype),
                       preferred_element_type=jnp.float32)
        if bias is not None:
            w = w + bias
        w = w + mask
        pw = jax.nn.softmax(w, axis=-1)
        o = jnp.einsum('bhts,bhsd->bhtd', pw.astype(matmul_dtype), v.astype(matmul_dtype),
                       preferred_element_type=jnp.float32)
        o = o * p['c_attn'][None, :, None, None]
        o = o.transpose(0, 2, 1, 3).reshape(B, T, D)
        return mm(o, p['wo']) + p['bo'].reshape(-1)

    # mirror the bf16 HBM copy of the positional bias used by the kernel
    def round_bias(b):
        return None if b is None else b.astype(matmul_dtype).astype(jnp.float32)

    h = hidden_states.astype(jnp.float32)
    resid = h
    x = ln(h, params['sa_ln_g'], params['sa_ln_b'])
    bias_s = round_bias(None if self_attn_bias is None
                        else self_attn_bias.reshape(B, H, T, T))
    a = attention(x, x, params['self_attn'], attention_mask, bias_s)
    h = resid + ln(a, params['sa_mid_ln_g'], params['sa_mid_ln_b'])

    resid = h
    x = ln(h, params['ca_ln_g'], params['ca_ln_b'])
    bias_c = round_bias(None if cross_attn_bias is None
                        else cross_attn_bias.reshape(B, H, T, S))
    a = attention(x, encoder_hidden_states.astype(jnp.float32), params['cross_attn'],
                  encoder_attention_mask, bias_c)
    h = resid + ln(a, params['ca_mid_ln_g'], params['ca_mid_ln_b'])

    resid = h
    x = ln(h, params['final_ln_g'], params['final_ln_b'])
    y = jax.nn.gelu(mm(x, params['w1']) + params['b1'].reshape(-1), approximate=True)
    y = ln(y, params['ffn_ln_g'], params['ffn_ln_b'])
    y = mm(y, params['w2']) + params['b2'].reshape(-1)
    return resid + y


# --------------------------------------------------------------------------
# Parameter init (deterministic, synthetic)
# --------------------------------------------------------------------------
def init_params(key, d_model, ffn_dim, num_heads):
    keys = iter(jax.random.split(key, 32))

    def dense(k, fan_in, fan_out):
        kw, kb = jax.random.split(k)
        w = 0.02 * jax.random.normal(kw, (fan_in, fan_out), jnp.float32)
        b = 0.02 * jax.random.normal(kb, (1, fan_out), jnp.float32)
        return w, b

    def attn_params():
        wq, bq = dense(next(keys), d_model, d_model)
        wk, bk = dense(next(keys), d_model, d_model)
        wv, bv = dense(next(keys), d_model, d_model)
        wo, bo = dense(next(keys), d_model, d_model)
        c_attn = 1.0 + 0.1 * jax.random.normal(next(keys), (num_heads,), jnp.float32)
        return dict(wq=wq, bq=bq, wk=wk, bk=bk, wv=wv, bv=bv, wo=wo, bo=bo, c_attn=c_attn)

    def ln_params(dim):
        return jnp.ones((1, dim), jnp.float32), jnp.zeros((1, dim), jnp.float32)

    p = dict(self_attn=attn_params(), cross_attn=attn_params())
    p['sa_ln_g'], p['sa_ln_b'] = ln_params(d_model)
    p['sa_mid_ln_g'], p['sa_mid_ln_b'] = ln_params(d_model)
    p['ca_ln_g'], p['ca_ln_b'] = ln_params(d_model)
    p['ca_mid_ln_g'], p['ca_mid_ln_b'] = ln_params(d_model)
    p['final_ln_g'], p['final_ln_b'] = ln_params(d_model)
    p['ffn_ln_g'], p['ffn_ln_b'] = ln_params(ffn_dim)
    p['w1'], p['b1'] = dense(next(keys), d_model, ffn_dim)
    p['w2'], p['b2'] = dense(next(keys), ffn_dim, d_model)
    return p


# --------------------------------------------------------------------------
if __name__ == "__main__":
    B, T, S = 2, 16, 24          # batch, decoder seq, encoder seq
    D, H, F = 128, 4, 512        # d_model, decoder_attention_heads, decoder_ffn_dim

    root = jax.random.PRNGKey(0)
    k_h, k_e, k_b, k_p = jax.random.split(root, 4)

    hidden_states = jax.random.normal(k_h, (B, T, D), jnp.float32)
    encoder_hidden_states = jax.random.normal(k_e, (B, S, D), jnp.float32)

    # causal self-attention mask (B, 1, T, T) with large negative for masked
    causal = jnp.where(jnp.tril(jnp.ones((T, T), bool)), 0.0, -1e4).astype(jnp.float32)
    attention_mask = jnp.broadcast_to(causal, (B, 1, T, T))

    # encoder padding mask (B, 1, T, S): last 5 encoder positions of sample 1 masked
    enc_pad = jnp.zeros((B, S), jnp.float32).at[1, S - 5:].set(-1e4)
    encoder_attention_mask = jnp.broadcast_to(enc_pad[:, None, None, :], (B, 1, T, S))

    # positional self-attention bias (bsz*num_heads, T, T); no cross-attn bias
    self_attn_bias = 0.1 * jax.random.normal(k_b, (B * H, T, T), jnp.float32)
    cross_attn_bias = None

    params = init_params(k_p, D, F, H)

    # q_tile=8 -> 2 query tiles per batch, ffn_col_tile=256 -> 2 F tiles: exercises the
    # scratch-carried K/V and the streamed ffn-LN accumulation at these small shapes.
    fwd = jax.jit(functools.partial(ofa_decoder_layer, num_heads=H, q_tile=8,
                                    ffn_row_tile=512, ffn_col_tile=256))
    out = fwd(params, hidden_states, attention_mask, encoder_hidden_states,
              encoder_attention_mask, self_attn_bias, cross_attn_bias)
    out = jax.block_until_ready(out)

    ref = reference_decoder_layer(params, hidden_states, attention_mask,
                                  encoder_hidden_states, encoder_attention_mask,
                                  self_attn_bias, cross_attn_bias, H)
    ref = jax.block_until_ready(ref)

    assert out.shape == (B, T, D), out.shape
    assert jnp.allclose(out, ref, atol=4e-2, rtol=4e-2), \
        f"max abs err = {jnp.max(jnp.abs(out - ref))}"
    print("KERNEL_OK")
</pallas_src>

<mosaic_0001>
module attributes {stable_mosaic.version = 11 : i64} {
  func.func @self_attn_block_kernel(%arg0: i32, %arg1: i32, %arg2: memref<1x16x128xf32, #tpu.memory_space<vmem>>, %arg3: memref<1x128xf32, #tpu.memory_space<vmem>>, %arg4: memref<1x128xf32, #tpu.memory_space<vmem>>, %arg5: memref<128x128xbf16, #tpu.memory_space<vmem>>, %arg6: memref<1x128xf32, #tpu.memory_space<vmem>>, %arg7: memref<128x256xbf16, #tpu.memory_space<vmem>>, %arg8: memref<1x256xf32, #tpu.memory_space<vmem>>, %arg9: memref<128x128xbf16, #tpu.memory_space<vmem>>, %arg10: memref<1x128xf32, #tpu.memory_space<vmem>>, %arg11: memref<1x128xf32, #tpu.memory_space<vmem>>, %arg12: memref<1x128xf32, #tpu.memory_space<vmem>>, %arg13: memref<1x1x8x16xf32, #tpu.memory_space<vmem>>, %arg14: memref<1x4x8x16xbf16, #tpu.memory_space<vmem>>, %arg15: memref<1x8x128xf32, #tpu.memory_space<vmem>>, %arg16: memref<16x256xbf16, #tpu.memory_space<vmem>>) attributes {dimension_semantics = [#tpu.dimension_semantics<parallel>, #tpu.dimension_semantics<arbitrary>], iteration_bounds = array<i64: 2, 2>, scalar_prefetch = 0 : i64, scratch_operands = 1 : i64, tpu.core_type = #tpu.core_type<tc>, window_params = [{transform_indices = @transform_0, window_bounds = array<i64: 1, 16, 128>}, {pipeline_mode = #tpu.pipeline_mode<synchronous>, transform_indices = @transform_1, window_bounds = array<i64: 1, 128>}, {pipeline_mode = #tpu.pipeline_mode<synchronous>, transform_indices = @transform_2, window_bounds = array<i64: 1, 128>}, {pipeline_mode = #tpu.pipeline_mode<synchronous>, transform_indices = @transform_3, window_bounds = array<i64: 128, 128>}, {pipeline_mode = #tpu.pipeline_mode<synchronous>, transform_indices = @transform_4, window_bounds = array<i64: 1, 128>}, {pipeline_mode = #tpu.pipeline_mode<synchronous>, transform_indices = @transform_5, window_bounds = array<i64: 128, 256>}, {pipeline_mode = #tpu.pipeline_mode<synchronous>, transform_indices = @transform_6, window_bounds = array<i64: 1, 256>}, {pipeline_mode = #tpu.pipeline_mode<synchronous>, transform_indices = @transform_7, window_bounds = array<i64: 128, 128>}, {pipeline_mode = #tpu.pipeline_mode<synchronous>, transform_indices = @transform_8, window_bounds = array<i64: 1, 128>}, {pipeline_mode = #tpu.pipeline_mode<synchronous>, transform_indices = @transform_9, window_bounds = array<i64: 1, 128>}, {pipeline_mode = #tpu.pipeline_mode<synchronous>, transform_indices = @transform_10, window_bounds = array<i64: 1, 128>}, {transform_indices = @transform_11, window_bounds = array<i64: 1, 1, 8, 16>}, {transform_indices = @transform_12, window_bounds = array<i64: 1, 4, 8, 16>}, {transform_indices = @transform_13, window_bounds = array<i64: 1, 8, 128>}]} {
    %c0_i32 = arith.constant 0 : i32
    %0 = arith.cmpi eq, %arg1, %c0_i32 : i32
    %1 = arith.extui %0 : i1 to i32
    %c0_i32_0 = arith.constant 0 : i32
    %2 = arith.cmpi ne, %1, %c0_i32_0 : i32
    scf.if %2 {
      %c0_46 = arith.constant 0 : index
      %c0_47 = arith.constant 0 : index
      %c0_48 = arith.constant 0 : index
      %134 = vector.load %arg2[%c0_46, %c0_47, %c0_48] : memref<1x16x128xf32, #tpu.memory_space<vmem>>, vector<1x16x128xf32>
      %135 = vector.shape_cast %134 : vector<1x16x128xf32> to vector<16x128xf32>
      %c0_49 = arith.constant 0 : index
      %c0_50 = arith.constant 0 : index
      %136 = vector.load %arg3[%c0_49, %c0_50] : memref<1x128xf32, #tpu.memory_space<vmem>>, vector<1x128xf32>
      %c0_51 = arith.constant 0 : index
      %c0_52 = arith.constant 0 : index
      %137 = vector.load %arg4[%c0_51, %c0_52] : memref<1x128xf32, #tpu.memory_space<vmem>>, vector<1x128xf32>
      %cst_53 = arith.constant dense<0.000000e+00> : vector<16xf32>
      %138 = vector.multi_reduction <add>, %135, %cst_53 [1] : vector<16x128xf32> to vector<16xf32>
      %139 = vector.shape_cast %138 : vector<16xf32> to vector<16x1xf32>
      %cst_54 = arith.constant 1.280000e+02 : f32
      %140 = vector.broadcast %cst_54 : f32 to vector<16x1xf32>
      %141 = arith.divf %139, %140 : vector<16x1xf32>
      %142 = vector.broadcast %141 : vector<16x1xf32> to vector<16x128xf32>
      %143 = arith.subf %135, %142 : vector<16x128xf32>
      %144 = arith.mulf %143, %143 : vector<16x128xf32>
      %cst_55 = arith.constant dense<0.000000e+00> : vector<16xf32>
      %145 = vector.multi_reduction <add>, %144, %cst_55 [1] : vector<16x128xf32> to vector<16xf32>
      %146 = vector.shape_cast %145 : vector<16xf32> to vector<16x1xf32>
      %cst_56 = arith.constant 1.280000e+02 : f32
      %147 = vector.broadcast %cst_56 : f32 to vector<16x1xf32>
      %148 = arith.divf %146, %147 : vector<16x1xf32>
      %149 = vector.broadcast %141 : vector<16x1xf32> to vector<16x128xf32>
      %150 = arith.subf %135, %149 : vector<16x128xf32>
      %cst_57 = arith.constant 9.99999974E-6 : f32
      %151 = vector.broadcast %cst_57 : f32 to vector<16x1xf32>
      %152 = arith.addf %148, %151 : vector<16x1xf32>
      %153 = math.rsqrt %152 : vector<16x1xf32>
      %154 = vector.broadcast %153 : vector<16x1xf32> to vector<16x128xf32>
      %155 = arith.mulf %150, %154 : vector<16x128xf32>
      %156 = vector.broadcast %136 : vector<1x128xf32> to vector<16x128xf32>
      %157 = arith.mulf %155, %156 : vector<16x128xf32>
      %158 = vector.broadcast %137 : vector<1x128xf32> to vector<16x128xf32>
      %159 = arith.addf %157, %158 : vector<16x128xf32>
      %c0_58 = arith.constant 0 : index
      %c0_59 = arith.constant 0 : index
      %160 = vector.load %arg7[%c0_58, %c0_59] : memref<128x256xbf16, #tpu.memory_space<vmem>>, vector<128x256xbf16>
      %161 = arith.truncf %159 : vector<16x128xf32> to vector<16x128xbf16>
      %cst_60 = arith.constant dense<0.000000e+00> : vector<16x256xf32>
      %162 = tpu.matmul %161, %160, %cst_60 {dimension_numbers = #tpu.dot_dimension_numbers<[1], [0], [0], [1], [0, 0, 1, 1], [], []>} : vector<16x128xbf16>, vector<128x256xbf16>, vector<16x256xf32> -> vector<16x256xf32>
      %c0_61 = arith.constant 0 : index
      %c0_62 = arith.constant 0 : index
      %163 = vector.load %arg8[%c0_61, %c0_62] : memref<1x256xf32, #tpu.memory_space<vmem>>, vector<1x256xf32>
      %164 = vector.broadcast %163 : vector<1x256xf32> to vector<16x256xf32>
      %165 = arith.addf %162, %164 : vector<16x256xf32>
      %166 = arith.truncf %165 : vector<16x256xf32> to vector<16x256xbf16>
      %c0_63 = arith.constant 0 : index
      %c0_64 = arith.constant 0 : index
      %167 = vector.load %arg16[%c0_63, %c0_64] : memref<16x256xbf16, #tpu.memory_space<vmem>>, vector<16x256xbf16>
      tpu.vector_store %arg16[%c0_63, %c0_64], %166 {strides = array<i32>} : memref<16x256xbf16, #tpu.memory_space<vmem>>, vector<16x256xbf16>,
    } else {
    }
    %c8_i32 = arith.constant 8 : i32
    %3 = arith.muli %arg1, %c8_i32 : i32
    %4 = tpu.assume_multiple %3, 8 : i32
    %c0 = arith.constant 0 : index
    %5 = arith.index_cast %4 : i32 to index
    %c0_1 = arith.constant 0 : index
    %6 = vector.load %arg2[%c0, %5, %c0_1] : memref<1x16x128xf32, #tpu.memory_space<vmem>>, vector<1x8x128xf32>
    %7 = vector.shape_cast %6 : vector<1x8x128xf32> to vector<8x128xf32>
    %c0_2 = arith.constant 0 : index
    %c0_3 = arith.constant 0 : index
    %8 = vector.load %arg3[%c0_2, %c0_3] : memref<1x128xf32, #tpu.memory_space<vmem>>, vector<1x128xf32>
    %c0_4 = arith.constant 0 : index
    %c0_5 = arith.constant 0 : index
    %9 = vector.load %arg4[%c0_4, %c0_5] : memref<1x128xf32, #tpu.memory_space<vmem>>, vector<1x128xf32>
    %cst = arith.constant dense<0.000000e+00> : vector<8xf32>
    %10 = vector.multi_reduction <add>, %7, %cst [1] : vector<8x128xf32> to vector<8xf32>
    %11 = vector.shape_cast %10 : vector<8xf32> to vector<8x1xf32>
    %cst_6 = arith.constant 1.280000e+02 : f32
    %12 = vector.broadcast %cst_6 : f32 to vector<8x1xf32>
    %13 = arith.divf %11, %12 : vector<8x1xf32>
    %14 = vector.broadcast %13 : vector<8x1xf32> to vector<8x128xf32>
    %15 = arith.subf %7, %14 : vector<8x128xf32>
    %16 = arith.mulf %15, %15 : vector<8x128xf32>
    %cst_7 = arith.constant dense<0.000000e+00> : vector<8xf32>
    %17 = vector.multi_reduction <add>, %16, %cst_7 [1] : vector<8x128xf32> to vector<8xf32>
    %18 = vector.shape_cast %17 : vector<8xf32> to vector<8x1xf32>
    %cst_8 = arith.constant 1.280000e+02 : f32
    %19 = vector.broadcast %cst_8 : f32 to vector<8x1xf32>
    %20 = arith.divf %18, %19 : vector<8x1xf32>
    %21 = vector.broadcast %13 : vector<8x1xf32> to vector<8x128xf32>
    %22 = arith.subf %7, %21 : vector<8x128xf32>
    %cst_9 = arith.constant 9.99999974E-6 : f32
    %23 = vector.broadcast %cst_9 : f32 to vector<8x1xf32>
    %24 = arith.addf %20, %23 : vector<8x1xf32>
    %25 = math.rsqrt %24 : vector<8x1xf32>
    %26 = vector.broadcast %25 : vector<8x1xf32> to vector<8x128xf32>
    %27 = arith.mulf %22, %26 : vector<8x128xf32>
    %28 = vector.broadcast %8 : vector<1x128xf32> to vector<8x128xf32>
    %29 = arith.mulf %27, %28 : vector<8x128xf32>
    %30 = vector.broadcast %9 : vector<1x128xf32> to vector<8x128xf32>
    %31 = arith.addf %29, %30 : vector<8x128xf32>
    %c0_10 = arith.constant 0 : index
    %c0_11 = arith.constant 0 : index
    %32 = vector.load %arg5[%c0_10, %c0_11] : memref<128x128xbf16, #tpu.memory_space<vmem>>, vector<128x128xbf16>
    %33 = arith.truncf %31 : vector<8x128xf32> to vector<8x128xbf16>
    %cst_12 = arith.constant dense<0.000000e+00> : vector<8x128xf32>
    %34 = tpu.matmul %33, %32, %cst_12 {dimension_numbers = #tpu.dot_dimension_numbers<[1], [0], [0], [1], [0, 0, 1, 1], [], []>} : vector<8x128xbf16>, vector<128x128xbf16>, vector<8x128xf32> -> vector<8x128xf32>
    %c0_13 = arith.constant 0 : index
    %c0_14 = arith.constant 0 : index
    %35 = vector.load %arg6[%c0_13, %c0_14] : memref<1x128xf32, #tpu.memory_space<vmem>>, vector<1x128xf32>
    %36 = vector.broadcast %35 : vector<1x128xf32> to vector<8x128xf32>
    %37 = arith.addf %34, %36 : vector<8x128xf32>
    %c0_15 = arith.constant 0 : index
    %c0_16 = arith.constant 0 : index
    %38 = vector.load %arg16[%c0_15, %c0_16] : memref<16x256xbf16, #tpu.memory_space<vmem>>, vector<16x256xbf16>
    %39 = vector.extract_strided_slice %38 {offsets = [0, 0], sizes = [16, 128], strides = [1, 1]} : vector<16x256xbf16> to vector<16x128xbf16>
    %40 = vector.extract_strided_slice %38 {offsets = [0, 128], sizes = [16, 128], strides = [1, 1]} : vector<16x256xbf16> to vector<16x128xbf16>
    %c0_17 = arith.constant 0 : index
    %c0_18 = arith.constant 0 : index
    %c0_19 = arith.constant 0 : index
    %c0_20 = arith.constant 0 : index
    %41 = vector.load %arg13[%c0_17, %c0_18, %c0_19, %c0_20] : memref<1x1x8x16xf32, #tpu.memory_space<vmem>>, vector<1x1x8x16xf32>
    %42 = vector.shape_cast %41 : vector<1x1x8x16xf32> to vector<8x16xf32>
    %c0_21 = arith.constant 0 : index
    %c0_22 = arith.constant 0 : index
    %c0_23 = arith.constant 0 : index
    %c0_24 = arith.constant 0 : index
    %43 = vector.load %arg14[%c0_21, %c0_22, %c0_23, %c0_24] : memref<1x4x8x16xbf16, #tpu.memory_space<vmem>>, vector<1x4x8x16xbf16>
    %44 = vector.shape_cast %43 : vector<1x4x8x16xbf16> to vector<4x8x16xbf16>
    %45 = arith.truncf %37 : vector<8x128xf32> to vector<8x128xbf16>
    %46 = vector.extract_strided_slice %45 {offsets = [0, 0], sizes = [8, 32], strides = [1, 1]} : vector<8x128xbf16> to vector<8x32xbf16>
    %47 = vector.extract_strided_slice %45 {offsets = [0, 32], sizes = [8, 32], strides = [1, 1]} : vector<8x128xbf16> to vector<8x32xbf16>
    %48 = vector.extract_strided_slice %45 {offsets = [0, 64], sizes = [8, 32], strides = [1, 1]} : vector<8x128xbf16> to vector<8x32xbf16>
    %49 = vector.extract_strided_slice %45 {offsets = [0, 96], sizes = [8, 32], strides = [1, 1]} : vector<8x128xbf16> to vector<8x32xbf16>
    %50 = vector.shape_cast %46 : vector<8x32xbf16> to vector<1x8x32xbf16>
    %51 = vector.shape_cast %47 : vector<8x32xbf16> to vector<1x8x32xbf16>
    %52 = vector.shape_cast %48 : vector<8x32xbf16> to vector<1x8x32xbf16>
    %53 = vector.shape_cast %49 : vector<8x32xbf16> to vector<1x8x32xbf16>
    %54 = tpu.concatenate %50, %51, %52, %53 in 0 : vector<1x8x32xbf16>, vector<1x8x32xbf16>, vector<1x8x32xbf16>, vector<1x8x32xbf16> -> vector<4x8x32xbf16>
    %55 = vector.extract_strided_slice %39 {offsets = [0, 0], sizes = [16, 32], strides = [1, 1]} : vector<16x128xbf16> to vector<16x32xbf16>
    %56 = vector.extract_strided_slice %39 {offsets = [0, 32], sizes = [16, 32], strides = [1, 1]} : vector<16x128xbf16> to vector<16x32xbf16>
    %57 = vector.extract_strided_slice %39 {offsets = [0, 64], sizes = [16, 32], strides = [1, 1]} : vector<16x128xbf16> to vector<16x32xbf16>
    %58 = vector.extract_strided_slice %39 {offsets = [0, 96], sizes = [16, 32], strides = [1, 1]} : vector<16x128xbf16> to vector<16x32xbf16>
    %59 = vector.shape_cast %55 : vector<16x32xbf16> to vector<1x16x32xbf16>
    %60 = vector.shape_cast %56 : vector<16x32xbf16> to vector<1x16x32xbf16>
    %61 = vector.shape_cast %57 : vector<16x32xbf16> to vector<1x16x32xbf16>
    %62 = vector.shape_cast %58 : vector<16x32xbf16> to vector<1x16x32xbf16>
    %63 = tpu.concatenate %59, %60, %61, %62 in 0 : vector<1x16x32xbf16>, vector<1x16x32xbf16>, vector<1x16x32xbf16>, vector<1x16x32xbf16> -> vector<4x16x32xbf16>
    %64 = vector.extract_strided_slice %40 {offsets = [0, 0], sizes = [16, 32], strides = [1, 1]} : vector<16x128xbf16> to vector<16x32xbf16>
    %65 = vector.extract_strided_slice %40 {offsets = [0, 32], sizes = [16, 32], strides = [1, 1]} : vector<16x128xbf16> to vector<16x32xbf16>
    %66 = vector.extract_strided_slice %40 {offsets = [0, 64], sizes = [16, 32], strides = [1, 1]} : vector<16x128xbf16> to vector<16x32xbf16>
    %67 = vector.extract_strided_slice %40 {offsets = [0, 96], sizes = [16, 32], strides = [1, 1]} : vector<16x128xbf16> to vector<16x32xbf16>
    %68 = vector.shape_cast %64 : vector<16x32xbf16> to vector<1x16x32xbf16>
    %69 = vector.shape_cast %65 : vector<16x32xbf16> to vector<1x16x32xbf16>
    %70 = vector.shape_cast %66 : vector<16x32xbf16> to vector<1x16x32xbf16>
    %71 = vector.shape_cast %67 : vector<16x32xbf16> to vector<1x16x32xbf16>
    %72 = tpu.concatenate %68, %69, %70, %71 in 0 : vector<1x16x32xbf16>, vector<1x16x32xbf16>, vector<1x16x32xbf16>, vector<1x16x32xbf16> -> vector<4x16x32xbf16>
    "tpu.trace_start"() <{level = 10 : i32, message = "htd,hsd->hts"}> : () -> ()
    %cst_25 = arith.constant dense<0.000000e+00> : vector<4x8x16xf32>
    %73 = tpu.matmul %54, %63, %cst_25 {dimension_numbers = #tpu.dot_dimension_numbers<[2], [2], [1], [1], [0, 0, 0, 1, 1, 1], [0], [0]>} : vector<4x8x32xbf16>, vector<4x16x32xbf16>, vector<4x8x16xf32> -> vector<4x8x16xf32>
    "tpu.trace_stop"() : () -> ()
    %74 = vector.shape_cast %42 : vector<8x16xf32> to vector<1x8x16xf32>
    %75 = vector.broadcast %74 : vector<1x8x16xf32> to vector<4x8x16xf32>
    %76 = arith.addf %73, %75 : vector<4x8x16xf32>
    %77 = arith.extf %44 : vector<4x8x16xbf16> to vector<4x8x16xf32>
    %78 = arith.addf %76, %77 : vector<4x8x16xf32>
    %cst_26 = arith.constant dense<0xFF800000> : vector<4x8xf32>
    %79 = vector.multi_reduction <maximumf>, %78, %cst_26 [2] : vector<4x8x16xf32> to vector<4x8xf32>
    %80 = vector.shape_cast %79 : vector<4x8xf32> to vector<4x8x1xf32>
    %81 = vector.broadcast %80 : vector<4x8x1xf32> to vector<4x8x16xf32>
    %82 = arith.subf %78, %81 : vector<4x8x16xf32>
    %83 = math.exp %82 : vector<4x8x16xf32>
    %cst_27 = arith.constant dense<0.000000e+00> : vector<4x8xf32>
    %84 = vector.multi_reduction <add>, %83, %cst_27 [2] : vector<4x8x16xf32> to vector<4x8xf32>
    %85 = vector.shape_cast %84 : vector<4x8xf32> to vector<4x8x1xf32>
    %86 = tpu.reciprocal %85 {approx = true} : vector<4x8x1xf32> -> vector<4x8x1xf32>
    %87 = vector.broadcast %86 : vector<4x8x1xf32> to vector<4x8x16xf32>
    %88 = arith.mulf %83, %87 : vector<4x8x16xf32>
    %89 = arith.truncf %88 : vector<4x8x16xf32> to vector<4x8x16xbf16>
    "tpu.trace_start"() <{level = 10 : i32, message = "hts,hsd->htd"}> : () -> ()
    %cst_28 = arith.constant dense<0.000000e+00> : vector<4x8x32xf32>
    %90 = tpu.matmul %89, %72, %cst_28 {dimension_numbers = #tpu.dot_dimension_numbers<[2], [1], [1], [2], [0, 0, 0, 1, 1, 2], [0], [0]>} : vector<4x8x16xbf16>, vector<4x16x32xbf16>, vector<4x8x32xf32> -> vector<4x8x32xf32>
    "tpu.trace_stop"() : () -> ()
    %91 = vector.extract_strided_slice %90 {offsets = [0, 0, 0], sizes = [1, 8, 32], strides = [1, 1, 1]} : vector<4x8x32xf32> to vector<1x8x32xf32>
    %92 = vector.shape_cast %91 : vector<1x8x32xf32> to vector<8x32xf32>
    %93 = vector.extract_strided_slice %90 {offsets = [1, 0, 0], sizes = [1, 8, 32], strides = [1, 1, 1]} : vector<4x8x32xf32> to vector<1x8x32xf32>
    %94 = vector.shape_cast %93 : vector<1x8x32xf32> to vector<8x32xf32>
    %95 = vector.extract_strided_slice %90 {offsets = [2, 0, 0], sizes = [1, 8, 32], strides = [1, 1, 1]} : vector<4x8x32xf32> to vector<1x8x32xf32>
    %96 = vector.shape_cast %95 : vector<1x8x32xf32> to vector<8x32xf32>
    %97 = vector.extract_strided_slice %90 {offsets = [3, 0, 0], sizes = [1, 8, 32], strides = [1, 1, 1]} : vector<4x8x32xf32> to vector<1x8x32xf32>
    %98 = vector.shape_cast %97 : vector<1x8x32xf32> to vector<8x32xf32>
    %99 = tpu.concatenate %92, %94, %96, %98 in 1 : vector<8x32xf32>, vector<8x32xf32>, vector<8x32xf32>, vector<8x32xf32> -> vector<8x128xf32>
    %c0_29 = arith.constant 0 : index
    %c0_30 = arith.constant 0 : index
    %100 = vector.load %arg9[%c0_29, %c0_30] : memref<128x128xbf16, #tpu.memory_space<vmem>>, vector<128x128xbf16>
    %101 = arith.truncf %99 : vector<8x128xf32> to vector<8x128xbf16>
    %cst_31 = arith.constant dense<0.000000e+00> : vector<8x128xf32>
    %102 = tpu.matmul %101, %100, %cst_31 {dimension_numbers = #tpu.dot_dimension_numbers<[1], [0], [0], [1], [0, 0, 1, 1], [], []>} : vector<8x128xbf16>, vector<128x128xbf16>, vector<8x128xf32> -> vector<8x128xf32>
    %c0_32 = arith.constant 0 : index
    %c0_33 = arith.constant 0 : index
    %103 = vector.load %arg10[%c0_32, %c0_33] : memref<1x128xf32, #tpu.memory_space<vmem>>, vector<1x128xf32>
    %104 = vector.broadcast %103 : vector<1x128xf32> to vector<8x128xf32>
    %105 = arith.addf %102, %104 : vector<8x128xf32>
    %c0_34 = arith.constant 0 : index
    %c0_35 = arith.constant 0 : index
    %106 = vector.load %arg11[%c0_34, %c0_35] : memref<1x128xf32, #tpu.memory_space<vmem>>, vector<1x128xf32>
    %c0_36 = arith.constant 0 : index
    %c0_37 = arith.constant 0 : index
    %107 = vector.load %arg12[%c0_36, %c0_37] : memref<1x128xf32, #tpu.memory_space<vmem>>, vector<1x128xf32>
    %cst_38 = arith.constant dense<0.000000e+00> : vector<8xf32>
    %108 = vector.multi_reduction <add>, %105, %cst_38 [1] : vector<8x128xf32> to vector<8xf32>
    %109 = vector.shape_cast %108 : vector<8xf32> to vector<8x1xf32>
    %cst_39 = arith.constant 1.280000e+02 : f32
    %110 = vector.broadcast %cst_39 : f32 to vector<8x1xf32>
    %111 = arith.divf %109, %110 : vector<8x1xf32>
    %112 = vector.broadcast %111 : vector<8x1xf32> to vector<8x128xf32>
    %113 = arith.subf %105, %112 : vector<8x128xf32>
    %114 = arith.mulf %113, %113 : vector<8x128xf32>
    %cst_40 = arith.constant dense<0.000000e+00> : vector<8xf32>
    %115 = vector.multi_reduction <add>, %114, %cst_40 [1] : vector<8x128xf32> to vector<8xf32>
    %116 = vector.shape_cast %115 : vector<8xf32> to vector<8x1xf32>
    %cst_41 = arith.constant 1.280000e+02 : f32
    %117 = vector.broadcast %cst_41 : f32 to vector<8x1xf32>
    %118 = arith.divf %116, %117 : vector<8x1xf32>
    %119 = vector.broadcast %111 : vector<8x1xf32> to vector<8x128xf32>
    %120 = arith.subf %105, %119 : vector<8x128xf32>
    %cst_42 = arith.constant 9.99999974E-6 : f32
    %121 = vector.broadcast %cst_42 : f32 to vector<8x1xf32>
    %122 = arith.addf %118, %121 : vector<8x1xf32>
    %123 = math.rsqrt %122 : vector<8x1xf32>
    %124 = vector.broadcast %123 : vector<8x1xf32> to vector<8x128xf32>
    %125 = arith.mulf %120, %124 : vector<8x128xf32>
    %126 = vector.broadcast %106 : vector<1x128xf32> to vector<8x128xf32>
    %127 = arith.mulf %125, %126 : vector<8x128xf32>
    %128 = vector.broadcast %107 : vector<1x128xf32> to vector<8x128xf32>
    %129 = arith.addf %127, %128 : vector<8x128xf32>
    %130 = arith.addf %7, %129 : vector<8x128xf32>
    %c0_43 = arith.constant 0 : index
    %c0_44 = arith.constant 0 : index
    %c0_45 = arith.constant 0 : index
    %131 = vector.load %arg15[%c0_43, %c0_44, %c0_45] : memref<1x8x128xf32, #tpu.memory_space<vmem>>, vector<1x8x128xf32>
    %132 = vector.shape_cast %131 : vector<1x8x128xf32> to vector<8x128xf32>
    %133 = vector.shape_cast %130 : vector<8x128xf32> to vector<1x8x128xf32>
    tpu.vector_store %arg15[%c0_43, %c0_44, %c0_45], %133 {strides = array<i32>} : memref<1x8x128xf32, #tpu.memory_space<vmem>>, vector<1x8x128xf32>,
    return
  }
  func.func @transform_0(%arg0: i32, %arg1: i32) -> (i32, i32, i32) {
    %c0_i32 = arith.constant 0 : i32
    %c0_i32_0 = arith.constant 0 : i32
    %c0_i32_1 = arith.constant 0 : i32
    return %arg0, %c0_i32, %c0_i32_0 : i32, i32, i32
  }
  func.func @transform_1(%arg0: i32, %arg1: i32) -> (i32, i32) {
    %c0_i32 = arith.constant 0 : i32
    %c0_i32_0 = arith.constant 0 : i32
    %c0_i32_1 = arith.constant 0 : i32
    return %c0_i32, %c0_i32_0 : i32, i32
  }
  func.func @transform_2(%arg0: i32, %arg1: i32) -> (i32, i32) {
    %c0_i32 = arith.constant 0 : i32
    %c0_i32_0 = arith.constant 0 : i32
    %c0_i32_1 = arith.constant 0 : i32
    return %c0_i32, %c0_i32_0 : i32, i32
  }
  func.func @transform_3(%arg0: i32, %arg1: i32) -> (i32, i32) {
    %c0_i32 = arith.constant 0 : i32
    %c0_i32_0 = arith.constant 0 : i32
    %c0_i32_1 = arith.constant 0 : i32
    return %c0_i32, %c0_i32_0 : i32, i32
  }
  func.func @transform_4(%arg0: i32, %arg1: i32) -> (i32, i32) {
    %c0_i32 = arith.constant 0 : i32
    %c0_i32_0 = arith.constant 0 : i32
    %c0_i32_1 = arith.constant 0 : i32
    return %c0_i32, %c0_i32_0 : i32, i32
  }
  func.func @transform_5(%arg0: i32, %arg1: i32) -> (i32, i32) {
    %c0_i32 = arith.constant 0 : i32
    %c0_i32_0 = arith.constant 0 : i32
    %c0_i32_1 = arith.constant 0 : i32
    return %c0_i32, %c0_i32_0 : i32, i32
  }
  func.func @transform_6(%arg0: i32, %arg1: i32) -> (i32, i32) {
    %c0_i32 = arith.constant 0 : i32
    %c0_i32_0 = arith.constant 0 : i32
    %c0_i32_1 = arith.constant 0 : i32
    return %c0_i32, %c0_i32_0 : i32, i32
  }
  func.func @transform_7(%arg0: i32, %arg1: i32) -> (i32, i32) {
    %c0_i32 = arith.constant 0 : i32
    %c0_i32_0 = arith.constant 0 : i32
    %c0_i32_1 = arith.constant 0 : i32
    return %c0_i32, %c0_i32_0 : i32, i32
  }
  func.func @transform_8(%arg0: i32, %arg1: i32) -> (i32, i32) {
    %c0_i32 = arith.constant 0 : i32
    %c0_i32_0 = arith.constant 0 : i32
    %c0_i32_1 = arith.constant 0 : i32
    return %c0_i32, %c0_i32_0 : i32, i32
  }
  func.func @transform_9(%arg0: i32, %arg1: i32) -> (i32, i32) {
    %c0_i32 = arith.constant 0 : i32
    %c0_i32_0 = arith.constant 0 : i32
    %c0_i32_1 = arith.constant 0 : i32
    return %c0_i32, %c0_i32_0 : i32, i32
  }
  func.func @transform_10(%arg0: i32, %arg1: i32) -> (i32, i32) {
    %c0_i32 = arith.constant 0 : i32
    %c0_i32_0 = arith.constant 0 : i32
    %c0_i32_1 = arith.constant 0 : i32
    return %c0_i32, %c0_i32_0 : i32, i32
  }
  func.func @transform_11(%arg0: i32, %arg1: i32) -> (i32, i32, i32, i32) {
    %c0_i32 = arith.constant 0 : i32
    %c0_i32_0 = arith.constant 0 : i32
    %c0_i32_1 = arith.constant 0 : i32
    return %arg0, %c0_i32, %arg1, %c0_i32_0 : i32, i32, i32, i32
  }
  func.func @transform_12(%arg0: i32, %arg1: i32) -> (i32, i32, i32, i32) {
    %c0_i32 = arith.constant 0 : i32
    %c0_i32_0 = arith.constant 0 : i32
    %c0_i32_1 = arith.constant 0 : i32
    return %arg0, %c0_i32, %arg1, %c0_i32_0 : i32, i32, i32, i32
  }
  func.func @transform_13(%arg0: i32, %arg1: i32) -> (i32, i32, i32) {
    %c0_i32 = arith.constant 0 : i32
    %c0_i32_0 = arith.constant 0 : i32
    return %arg0, %arg1, %c0_i32 : i32, i32, i32
  }
}

module attributes {stable_mosaic.version = 11 : i64} {
  func.func @cross_attn_block_kernel(%arg0: i32, %arg1: i32, %arg2: memref<1x8x128xf32, #tpu.memory_space<vmem>>, %arg3: memref<1x24x128xf32, #tpu.memory_space<vmem>>, %arg4: memref<1x128xf32, #tpu.memory_space<vmem>>, %arg5: memref<1x128xf32, #tpu.memory_space<vmem>>, %arg6: memref<128x128xbf16, #tpu.memory_space<vmem>>, %arg7: memref<1x128xf32, #tpu.memory_space<vmem>>, %arg8: memref<128x256xbf16, #tpu.memory_space<vmem>>, %arg9: memref<1x256xf32, #tpu.memory_space<vmem>>, %arg10: memref<128x128xbf16, #tpu.memory_space<vmem>>, %arg11: memref<1x128xf32, #tpu.memory_space<vmem>>, %arg12: memref<1x128xf32, #tpu.memory_space<vmem>>, %arg13: memref<1x128xf32, #tpu.memory_space<vmem>>, %arg14: memref<1x1x8x24xf32, #tpu.memory_space<vmem>>, %arg15: memref<1x8x128xf32, #tpu.memory_space<vmem>>, %arg16: memref<24x256xbf16, #tpu.memory_space<vmem>>) attributes {dimension_semantics = [#tpu.dimension_semantics<parallel>, #tpu.dimension_semantics<arbitrary>], iteration_bounds = array<i64: 2, 2>, scalar_prefetch = 0 : i64, scratch_operands = 1 : i64, tpu.core_type = #tpu.core_type<tc>, window_params = [{transform_indices = @transform_0, window_bounds = array<i64: 1, 8, 128>}, {transform_indices = @transform_1, window_bounds = array<i64: 1, 24, 128>}, {pipeline_mode = #tpu.pipeline_mode<synchronous>, transform_indices = @transform_2, window_bounds = array<i64: 1, 128>}, {pipeline_mode = #tpu.pipeline_mode<synchronous>, transform_indices = @transform_3, window_bounds = array<i64: 1, 128>}, {pipeline_mode = #tpu.pipeline_mode<synchronous>, transform_indices = @transform_4, window_bounds = array<i64: 128, 128>}, {pipeline_mode = #tpu.pipeline_mode<synchronous>, transform_indices = @transform_5, window_bounds = array<i64: 1, 128>}, {pipeline_mode = #tpu.pipeline_mode<synchronous>, transform_indices = @transform_6, window_bounds = array<i64: 128, 256>}, {pipeline_mode = #tpu.pipeline_mode<synchronous>, transform_indices = @transform_7, window_bounds = array<i64: 1, 256>}, {pipeline_mode = #tpu.pipeline_mode<synchronous>, transform_indices = @transform_8, window_bounds = array<i64: 128, 128>}, {pipeline_mode = #tpu.pipeline_mode<synchronous>, transform_indices = @transform_9, window_bounds = array<i64: 1, 128>}, {pipeline_mode = #tpu.pipeline_mode<synchronous>, transform_indices = @transform_10, window_bounds = array<i64: 1, 128>}, {pipeline_mode = #tpu.pipeline_mode<synchronous>, transform_indices = @transform_11, window_bounds = array<i64: 1, 128>}, {transform_indices = @transform_12, window_bounds = array<i64: 1, 1, 8, 24>}, {transform_indices = @transform_13, window_bounds = array<i64: 1, 8, 128>}]} {
    %c0_i32 = arith.constant 0 : i32
    %0 = arith.cmpi eq, %arg1, %c0_i32 : i32
    %1 = arith.extui %0 : i1 to i32
    %c0_i32_0 = arith.constant 0 : i32
    %2 = arith.cmpi ne, %1, %c0_i32_0 : i32
    scf.if %2 {
      %c0_43 = arith.constant 0 : index
      %c0_44 = arith.constant 0 : index
      %c0_45 = arith.constant 0 : index
      %127 = vector.load %arg3[%c0_43, %c0_44, %c0_45] : memref<1x24x128xf32, #tpu.memory_space<vmem>>, vector<1x24x128xf32>
      %128 = vector.shape_cast %127 : vector<1x24x128xf32> to vector<24x128xf32>
      %c0_46 = arith.constant 0 : index
      %c0_47 = arith.constant 0 : index
      %129 = vector.load %arg8[%c0_46, %c0_47] : memref<128x256xbf16, #tpu.memory_space<vmem>>, vector<128x256xbf16>
      %130 = arith.truncf %128 : vector<24x128xf32> to vector<24x128xbf16>
      %cst_48 = arith.constant dense<0.000000e+00> : vector<24x256xf32>
      %131 = tpu.matmul %130, %129, %cst_48 {dimension_numbers = #tpu.dot_dimension_numbers<[1], [0], [0], [1], [0, 0, 1, 1], [], []>} : vector<24x128xbf16>, vector<128x256xbf16>, vector<24x256xf32> -> vector<24x256xf32>
      %c0_49 = arith.constant 0 : index
      %c0_50 = arith.constant 0 : index
      %132 = vector.load %arg9[%c0_49, %c0_50] : memref<1x256xf32, #tpu.memory_space<vmem>>, vector<1x256xf32>
      %133 = vector.broadcast %132 : vector<1x256xf32> to vector<24x256xf32>
      %134 = arith.addf %131, %133 : vector<24x256xf32>
      %135 = arith.truncf %134 : vector<24x256xf32> to vector<24x256xbf16>
      %c0_51 = arith.constant 0 : index
      %c0_52 = arith.constant 0 : index
      %136 = vector.load %arg16[%c0_51, %c0_52] : memref<24x256xbf16, #tpu.memory_space<vmem>>, vector<24x256xbf16>
      tpu.vector_store %arg16[%c0_51, %c0_52], %135 {strides = array<i32>} : memref<24x256xbf16, #tpu.memory_space<vmem>>, vector<24x256xbf16>,
    } else {
    }
    %c0 = arith.constant 0 : index
    %c0_1 = arith.constant 0 : index
    %c0_2 = arith.constant 0 : index
    %3 = vector.load %arg2[%c0, %c0_1, %c0_2] : memref<1x8x128xf32, #tpu.memory_space<vmem>>, vector<1x8x128xf32>
    %4 = vector.shape_cast %3 : vector<1x8x128xf32> to vector<8x128xf32>
    %c0_3 = arith.constant 0 : index
    %c0_4 = arith.constant 0 : index
    %5 = vector.load %arg4[%c0_3, %c0_4] : memref<1x128xf32, #tpu.memory_space<vmem>>, vector<1x128xf32>
    %c0_5 = arith.constant 0 : index
    %c0_6 = arith.constant 0 : index
    %6 = vector.load %arg5[%c0_5, %c0_6] : memref<1x128xf32, #tpu.memory_space<vmem>>, vector<1x128xf32>
    %cst = arith.constant dense<0.000000e+00> : vector<8xf32>
    %7 = vector.multi_reduction <add>, %4, %cst [1] : vector<8x128xf32> to vector<8xf32>
    %8 = vector.shape_cast %7 : vector<8xf32> to vector<8x1xf32>
    %cst_7 = arith.constant 1.280000e+02 : f32
    %9 = vector.broadcast %cst_7 : f32 to vector<8x1xf32>
    %10 = arith.divf %8, %9 : vector<8x1xf32>
    %11 = vector.broadcast %10 : vector<8x1xf32> to vector<8x128xf32>
    %12 = arith.subf %4, %11 : vector<8x128xf32>
    %13 = arith.mulf %12, %12 : vector<8x128xf32>
    %cst_8 = arith.constant dense<0.000000e+00> : vector<8xf32>
    %14 = vector.multi_reduction <add>, %13, %cst_8 [1] : vector<8x128xf32> to vector<8xf32>
    %15 = vector.shape_cast %14 : vector<8xf32> to vector<8x1xf32>
    %cst_9 = arith.constant 1.280000e+02 : f32
    %16 = vector.broadcast %cst_9 : f32 to vector<8x1xf32>
    %17 = arith.divf %15, %16 : vector<8x1xf32>
    %18 = vector.broadcast %10 : vector<8x1xf32> to vector<8x128xf32>
    %19 = arith.subf %4, %18 : vector<8x128xf32>
    %cst_10 = arith.constant 9.99999974E-6 : f32
    %20 = vector.broadcast %cst_10 : f32 to vector<8x1xf32>
    %21 = arith.addf %17, %20 : vector<8x1xf32>
    %22 = math.rsqrt %21 : vector<8x1xf32>
    %23 = vector.broadcast %22 : vector<8x1xf32> to vector<8x128xf32>
    %24 = arith.mulf %19, %23 : vector<8x128xf32>
    %25 = vector.broadcast %5 : vector<1x128xf32> to vector<8x128xf32>
    %26 = arith.mulf %24, %25 : vector<8x128xf32>
    %27 = vector.broadcast %6 : vector<1x128xf32> to vector<8x128xf32>
    %28 = arith.addf %26, %27 : vector<8x128xf32>
    %c0_11 = arith.constant 0 : index
    %c0_12 = arith.constant 0 : index
    %29 = vector.load %arg6[%c0_11, %c0_12] : memref<128x128xbf16, #tpu.memory_space<vmem>>, vector<128x128xbf16>
    %30 = arith.truncf %28 : vector<8x128xf32> to vector<8x128xbf16>
    %cst_13 = arith.constant dense<0.000000e+00> : vector<8x128xf32>
    %31 = tpu.matmul %30, %29, %cst_13 {dimension_numbers = #tpu.dot_dimension_numbers<[1], [0], [0], [1], [0, 0, 1, 1], [], []>} : vector<8x128xbf16>, vector<128x128xbf16>, vector<8x128xf32> -> vector<8x128xf32>
    %c0_14 = arith.constant 0 : index
    %c0_15 = arith.constant 0 : index
    %32 = vector.load %arg7[%c0_14, %c0_15] : memref<1x128xf32, #tpu.memory_space<vmem>>, vector<1x128xf32>
    %33 = vector.broadcast %32 : vector<1x128xf32> to vector<8x128xf32>
    %34 = arith.addf %31, %33 : vector<8x128xf32>
    %c0_16 = arith.constant 0 : index
    %c0_17 = arith.constant 0 : index
    %35 = vector.load %arg16[%c0_16, %c0_17] : memref<24x256xbf16, #tpu.memory_space<vmem>>, vector<24x256xbf16>
    %36 = vector.extract_strided_slice %35 {offsets = [0, 0], sizes = [24, 128], strides = [1, 1]} : vector<24x256xbf16> to vector<24x128xbf16>
    %37 = vector.extract_strided_slice %35 {offsets = [0, 128], sizes = [24, 128], strides = [1, 1]} : vector<24x256xbf16> to vector<24x128xbf16>
    %c0_18 = arith.constant 0 : index
    %c0_19 = arith.constant 0 : index
    %c0_20 = arith.constant 0 : index
    %c0_21 = arith.constant 0 : index
    %38 = vector.load %arg14[%c0_18, %c0_19, %c0_20, %c0_21] : memref<1x1x8x24xf32, #tpu.memory_space<vmem>>, vector<1x1x8x24xf32>
    %39 = vector.shape_cast %38 : vector<1x1x8x24xf32> to vector<8x24xf32>
    %40 = arith.truncf %34 : vector<8x128xf32> to vector<8x128xbf16>
    %41 = vector.extract_strided_slice %40 {offsets = [0, 0], sizes = [8, 32], strides = [1, 1]} : vector<8x128xbf16> to vector<8x32xbf16>
    %42 = vector.extract_strided_slice %40 {offsets = [0, 32], sizes = [8, 32], strides = [1, 1]} : vector<8x128xbf16> to vector<8x32xbf16>
    %43 = vector.extract_strided_slice %40 {offsets = [0, 64], sizes = [8, 32], strides = [1, 1]} : vector<8x128xbf16> to vector<8x32xbf16>
    %44 = vector.extract_strided_slice %40 {offsets = [0, 96], sizes = [8, 32], strides = [1, 1]} : vector<8x128xbf16> to vector<8x32xbf16>
    %45 = vector.shape_cast %41 : vector<8x32xbf16> to vector<1x8x32xbf16>
    %46 = vector.shape_cast %42 : vector<8x32xbf16> to vector<1x8x32xbf16>
    %47 = vector.shape_cast %43 : vector<8x32xbf16> to vector<1x8x32xbf16>
    %48 = vector.shape_cast %44 : vector<8x32xbf16> to vector<1x8x32xbf16>
    %49 = tpu.concatenate %45, %46, %47, %48 in 0 : vector<1x8x32xbf16>, vector<1x8x32xbf16>, vector<1x8x32xbf16>, vector<1x8x32xbf16> -> vector<4x8x32xbf16>
    %50 = vector.extract_strided_slice %36 {offsets = [0, 0], sizes = [24, 32], strides = [1, 1]} : vector<24x128xbf16> to vector<24x32xbf16>
    %51 = vector.extract_strided_slice %36 {offsets = [0, 32], sizes = [24, 32], strides = [1, 1]} : vector<24x128xbf16> to vector<24x32xbf16>
    %52 = vector.extract_strided_slice %36 {offsets = [0, 64], sizes = [24, 32], strides = [1, 1]} : vector<24x128xbf16> to vector<24x32xbf16>
    %53 = vector.extract_strided_slice %36 {offsets = [0, 96], sizes = [24, 32], strides = [1, 1]} : vector<24x128xbf16> to vector<24x32xbf16>
    %54 = vector.shape_cast %50 : vector<24x32xbf16> to vector<1x24x32xbf16>
    %55 = vector.shape_cast %51 : vector<24x32xbf16> to vector<1x24x32xbf16>
    %56 = vector.shape_cast %52 : vector<24x32xbf16> to vector<1x24x32xbf16>
    %57 = vector.shape_cast %53 : vector<24x32xbf16> to vector<1x24x32xbf16>
    %58 = tpu.concatenate %54, %55, %56, %57 in 0 : vector<1x24x32xbf16>, vector<1x24x32xbf16>, vector<1x24x32xbf16>, vector<1x24x32xbf16> -> vector<4x24x32xbf16>
    %59 = vector.extract_strided_slice %37 {offsets = [0, 0], sizes = [24, 32], strides = [1, 1]} : vector<24x128xbf16> to vector<24x32xbf16>
    %60 = vector.extract_strided_slice %37 {offsets = [0, 32], sizes = [24, 32], strides = [1, 1]} : vector<24x128xbf16> to vector<24x32xbf16>
    %61 = vector.extract_strided_slice %37 {offsets = [0, 64], sizes = [24, 32], strides = [1, 1]} : vector<24x128xbf16> to vector<24x32xbf16>
    %62 = vector.extract_strided_slice %37 {offsets = [0, 96], sizes = [24, 32], strides = [1, 1]} : vector<24x128xbf16> to vector<24x32xbf16>
    %63 = vector.shape_cast %59 : vector<24x32xbf16> to vector<1x24x32xbf16>
    %64 = vector.shape_cast %60 : vector<24x32xbf16> to vector<1x24x32xbf16>
    %65 = vector.shape_cast %61 : vector<24x32xbf16> to vector<1x24x32xbf16>
    %66 = vector.shape_cast %62 : vector<24x32xbf16> to vector<1x24x32xbf16>
    %67 = tpu.concatenate %63, %64, %65, %66 in 0 : vector<1x24x32xbf16>, vector<1x24x32xbf16>, vector<1x24x32xbf16>, vector<1x24x32xbf16> -> vector<4x24x32xbf16>
    "tpu.trace_start"() <{level = 10 : i32, message = "htd,hsd->hts"}> : () -> ()
    %cst_22 = arith.constant dense<0.000000e+00> : vector<4x8x24xf32>
    %68 = tpu.matmul %49, %58, %cst_22 {dimension_numbers = #tpu.dot_dimension_numbers<[2], [2], [1], [1], [0, 0, 0, 1, 1, 1], [0], [0]>} : vector<4x8x32xbf16>, vector<4x24x32xbf16>, vector<4x8x24xf32> -> vector<4x8x24xf32>
    "tpu.trace_stop"() : () -> ()
    %69 = vector.shape_cast %39 : vector<8x24xf32> to vector<1x8x24xf32>
    %70 = vector.broadcast %69 : vector<1x8x24xf32> to vector<4x8x24xf32>
    %71 = arith.addf %68, %70 : vector<4x8x24xf32>
    %cst_23 = arith.constant dense<0xFF800000> : vector<4x8xf32>
    %72 = vector.multi_reduction <maximumf>, %71, %cst_23 [2] : vector<4x8x24xf32> to vector<4x8xf32>
    %73 = vector.shape_cast %72 : vector<4x8xf32> to vector<4x8x1xf32>
    %74 = vector.broadcast %73 : vector<4x8x1xf32> to vector<4x8x24xf32>
    %75 = arith.subf %71, %74 : vector<4x8x24xf32>
    %76 = math.exp %75 : vector<4x8x24xf32>
    %cst_24 = arith.constant dense<0.000000e+00> : vector<4x8xf32>
    %77 = vector.multi_reduction <add>, %76, %cst_24 [2] : vector<4x8x24xf32> to vector<4x8xf32>
    %78 = vector.shape_cast %77 : vector<4x8xf32> to vector<4x8x1xf32>
    %79 = tpu.reciprocal %78 {approx = true} : vector<4x8x1xf32> -> vector<4x8x1xf32>
    %80 = vector.broadcast %79 : vector<4x8x1xf32> to vector<4x8x24xf32>
    %81 = arith.mulf %76, %80 : vector<4x8x24xf32>
    %82 = arith.truncf %81 : vector<4x8x24xf32> to vector<4x8x24xbf16>
    "tpu.trace_start"() <{level = 10 : i32, message = "hts,hsd->htd"}> : () -> ()
    %cst_25 = arith.constant dense<0.000000e+00> : vector<4x8x32xf32>
    %83 = tpu.matmul %82, %67, %cst_25 {dimension_numbers = #tpu.dot_dimension_numbers<[2], [1], [1], [2], [0, 0, 0, 1, 1, 2], [0], [0]>} : vector<4x8x24xbf16>, vector<4x24x32xbf16>, vector<4x8x32xf32> -> vector<4x8x32xf32>
    "tpu.trace_stop"() : () -> ()
    %84 = vector.extract_strided_slice %83 {offsets = [0, 0, 0], sizes = [1, 8, 32], strides = [1, 1, 1]} : vector<4x8x32xf32> to vector<1x8x32xf32>
    %85 = vector.shape_cast %84 : vector<1x8x32xf32> to vector<8x32xf32>
    %86 = vector.extract_strided_slice %83 {offsets = [1, 0, 0], sizes = [1, 8, 32], strides = [1, 1, 1]} : vector<4x8x32xf32> to vector<1x8x32xf32>
    %87 = vector.shape_cast %86 : vector<1x8x32xf32> to vector<8x32xf32>
    %88 = vector.extract_strided_slice %83 {offsets = [2, 0, 0], sizes = [1, 8, 32], strides = [1, 1, 1]} : vector<4x8x32xf32> to vector<1x8x32xf32>
    %89 = vector.shape_cast %88 : vector<1x8x32xf32> to vector<8x32xf32>
    %90 = vector.extract_strided_slice %83 {offsets = [3, 0, 0], sizes = [1, 8, 32], strides = [1, 1, 1]} : vector<4x8x32xf32> to vector<1x8x32xf32>
    %91 = vector.shape_cast %90 : vector<1x8x32xf32> to vector<8x32xf32>
    %92 = tpu.concatenate %85, %87, %89, %91 in 1 : vector<8x32xf32>, vector<8x32xf32>, vector<8x32xf32>, vector<8x32xf32> -> vector<8x128xf32>
    %c0_26 = arith.constant 0 : index
    %c0_27 = arith.constant 0 : index
    %93 = vector.load %arg10[%c0_26, %c0_27] : memref<128x128xbf16, #tpu.memory_space<vmem>>, vector<128x128xbf16>
    %94 = arith.truncf %92 : vector<8x128xf32> to vector<8x128xbf16>
    %cst_28 = arith.constant dense<0.000000e+00> : vector<8x128xf32>
    %95 = tpu.matmul %94, %93, %cst_28 {dimension_numbers = #tpu.dot_dimension_numbers<[1], [0], [0], [1], [0, 0, 1, 1], [], []>} : vector<8x128xbf16>, vector<128x128xbf16>, vector<8x128xf32> -> vector<8x128xf32>
    %c0_29 = arith.constant 0 : index
    %c0_30 = arith.constant 0 : index
    %96 = vector.load %arg11[%c0_29, %c0_30] : memref<1x128xf32, #tpu.memory_space<vmem>>, vector<1x128xf32>
    %97 = vector.broadcast %96 : vector<1x128xf32> to vector<8x128xf32>
    %98 = arith.addf %95, %97 : vector<8x128xf32>
    %c0_31 = arith.constant 0 : index
    %c0_32 = arith.constant 0 : index
    %99 = vector.load %arg12[%c0_31, %c0_32] : memref<1x128xf32, #tpu.memory_space<vmem>>, vector<1x128xf32>
    %c0_33 = arith.constant 0 : index
    %c0_34 = arith.constant 0 : index
    %100 = vector.load %arg13[%c0_33, %c0_34] : memref<1x128xf32, #tpu.memory_space<vmem>>, vector<1x128xf32>
    %cst_35 = arith.constant dense<0.000000e+00> : vector<8xf32>
    %101 = vector.multi_reduction <add>, %98, %cst_35 [1] : vector<8x128xf32> to vector<8xf32>
    %102 = vector.shape_cast %101 : vector<8xf32> to vector<8x1xf32>
    %cst_36 = arith.constant 1.280000e+02 : f32
    %103 = vector.broadcast %cst_36 : f32 to vector<8x1xf32>
    %104 = arith.divf %102, %103 : vector<8x1xf32>
    %105 = vector.broadcast %104 : vector<8x1xf32> to vector<8x128xf32>
    %106 = arith.subf %98, %105 : vector<8x128xf32>
    %107 = arith.mulf %106, %106 : vector<8x128xf32>
    %cst_37 = arith.constant dense<0.000000e+00> : vector<8xf32>
    %108 = vector.multi_reduction <add>, %107, %cst_37 [1] : vector<8x128xf32> to vector<8xf32>
    %109 = vector.shape_cast %108 : vector<8xf32> to vector<8x1xf32>
    %cst_38 = arith.constant 1.280000e+02 : f32
    %110 = vector.broadcast %cst_38 : f32 to vector<8x1xf32>
    %111 = arith.divf %109, %110 : vector<8x1xf32>
    %112 = vector.broadcast %104 : vector<8x1xf32> to vector<8x128xf32>
    %113 = arith.subf %98, %112 : vector<8x128xf32>
    %cst_39 = arith.constant 9.99999974E-6 : f32
    %114 = vector.broadcast %cst_39 : f32 to vector<8x1xf32>
    %115 = arith.addf %111, %114 : vector<8x1xf32>
    %116 = math.rsqrt %115 : vector<8x1xf32>
    %117 = vector.broadcast %116 : vector<8x1xf32> to vector<8x128xf32>
    %118 = arith.mulf %113, %117 : vector<8x128xf32>
    %119 = vector.broadcast %99 : vector<1x128xf32> to vector<8x128xf32>
    %120 = arith.mulf %118, %119 : vector<8x128xf32>
    %121 = vector.broadcast %100 : vector<1x128xf32> to vector<8x128xf32>
    %122 = arith.addf %120, %121 : vector<8x128xf32>
    %123 = arith.addf %4, %122 : vector<8x128xf32>
    %c0_40 = arith.constant 0 : index
    %c0_41 = arith.constant 0 : index
    %c0_42 = arith.constant 0 : index
    %124 = vector.load %arg15[%c0_40, %c0_41, %c0_42] : memref<1x8x128xf32, #tpu.memory_space<vmem>>, vector<1x8x128xf32>
    %125 = vector.shape_cast %124 : vector<1x8x128xf32> to vector<8x128xf32>
    %126 = vector.shape_cast %123 : vector<8x128xf32> to vector<1x8x128xf32>
    tpu.vector_store %arg15[%c0_40, %c0_41, %c0_42], %126 {strides = array<i32>} : memref<1x8x128xf32, #tpu.memory_space<vmem>>, vector<1x8x128xf32>,
    return
  }
  func.func @transform_0(%arg0: i32, %arg1: i32) -> (i32, i32, i32) {
    %c0_i32 = arith.constant 0 : i32
    %c0_i32_0 = arith.constant 0 : i32
    return %arg0, %arg1, %c0_i32 : i32, i32, i32
  }
  func.func @transform_1(%arg0: i32, %arg1: i32) -> (i32, i32, i32) {
    %c0_i32 = arith.constant 0 : i32
    %c0_i32_0 = arith.constant 0 : i32
    %c0_i32_1 = arith.constant 0 : i32
    return %arg0, %c0_i32, %c0_i32_0 : i32, i32, i32
  }
  func.func @transform_2(%arg0: i32, %arg1: i32) -> (i32, i32) {
    %c0_i32 = arith.constant 0 : i32
    %c0_i32_0 = arith.constant 0 : i32
    %c0_i32_1 = arith.constant 0 : i32
    return %c0_i32, %c0_i32_0 : i32, i32
  }
  func.func @transform_3(%arg0: i32, %arg1: i32) -> (i32, i32) {
    %c0_i32 = arith.constant 0 : i32
    %c0_i32_0 = arith.constant 0 : i32
    %c0_i32_1 = arith.constant 0 : i32
    return %c0_i32, %c0_i32_0 : i32, i32
  }
  func.func @transform_4(%arg0: i32, %arg1: i32) -> (i32, i32) {
    %c0_i32 = arith.constant 0 : i32
    %c0_i32_0 = arith.constant 0 : i32
    %c0_i32_1 = arith.constant 0 : i32
    return %c0_i32, %c0_i32_0 : i32, i32
  }
  func.func @transform_5(%arg0: i32, %arg1: i32) -> (i32, i32) {
    %c0_i32 = arith.constant 0 : i32
    %c0_i32_0 = arith.constant 0 : i32
    %c0_i32_1 = arith.constant 0 : i32
    return %c0_i32, %c0_i32_0 : i32, i32
  }
  func.func @transform_6(%arg0: i32, %arg1: i32) -> (i32, i32) {
    %c0_i32 = arith.constant 0 : i32
    %c0_i32_0 = arith.constant 0 : i32
    %c0_i32_1 = arith.constant 0 : i32
    return %c0_i32, %c0_i32_0 : i32, i32
  }
  func.func @transform_7(%arg0: i32, %arg1: i32) -> (i32, i32) {
    %c0_i32 = arith.constant 0 : i32
    %c0_i32_0 = arith.constant 0 : i32
    %c0_i32_1 = arith.constant 0 : i32
    return %c0_i32, %c0_i32_0 : i32, i32
  }
  func.func @transform_8(%arg0: i32, %arg1: i32) -> (i32, i32) {
    %c0_i32 = arith.constant 0 : i32
    %c0_i32_0 = arith.constant 0 : i32
    %c0_i32_1 = arith.constant 0 : i32
    return %c0_i32, %c0_i32_0 : i32, i32
  }
  func.func @transform_9(%arg0: i32, %arg1: i32) -> (i32, i32) {
    %c0_i32 = arith.constant 0 : i32
    %c0_i32_0 = arith.constant 0 : i32
    %c0_i32_1 = arith.constant 0 : i32
    return %c0_i32, %c0_i32_0 : i32, i32
  }
  func.func @transform_10(%arg0: i32, %arg1: i32) -> (i32, i32) {
    %c0_i32 = arith.constant 0 : i32
    %c0_i32_0 = arith.constant 0 : i32
    %c0_i32_1 = arith.constant 0 : i32
    return %c0_i32, %c0_i32_0 : i32, i32
  }
  func.func @transform_11(%arg0: i32, %arg1: i32) -> (i32, i32) {
    %c0_i32 = arith.constant 0 : i32
    %c0_i32_0 = arith.constant 0 : i32
    %c0_i32_1 = arith.constant 0 : i32
    return %c0_i32, %c0_i32_0 : i32, i32
  }
  func.func @transform_12(%arg0: i32, %arg1: i32) -> (i32, i32, i32, i32) {
    %c0_i32 = arith.constant 0 : i32
    %c0_i32_0 = arith.constant 0 : i32
    %c0_i32_1 = arith.constant 0 : i32
    return %arg0, %c0_i32, %arg1, %c0_i32_0 : i32, i32, i32, i32
  }
  func.func @transform_13(%arg0: i32, %arg1: i32) -> (i32, i32, i32) {
    %c0_i32 = arith.constant 0 : i32
    %c0_i32_0 = arith.constant 0 : i32
    return %arg0, %arg1, %c0_i32 : i32, i32, i32
  }
}

module attributes {stable_mosaic.version = 11 : i64} {
  func.func @ffn_block_kernel(%arg0: i32, %arg1: i32, %arg2: memref<32x128xf32, #tpu.memory_space<vmem>>, %arg3: memref<1x128xf32, #tpu.memory_space<vmem>>, %arg4: memref<1x128xf32, #tpu.memory_space<vmem>>, %arg5: memref<128x256xbf16, #tpu.memory_space<vmem>>, %arg6: memref<1x256xf32, #tpu.memory_space<vmem>>, %arg7: memref<1x256xf32, #tpu.memory_space<vmem>>, %arg8: memref<1x128xf32, #tpu.memory_space<vmem>>, %arg9: memref<1x128xf32, #tpu.memory_space<vmem>>, %arg10: memref<256x128xbf16, #tpu.memory_space<vmem>>, %arg11: memref<32x128xf32, #tpu.memory_space<vmem>>, %arg12: memref<32x128xf32, #tpu.memory_space<vmem>>, %arg13: memref<32x1xf32, #tpu.memory_space<vmem>>, %arg14: memref<32x1xf32, #tpu.memory_space<vmem>>) attributes {dimension_semantics = [#tpu.dimension_semantics<parallel>, #tpu.dimension_semantics<arbitrary>], iteration_bounds = array<i64: 1, 2>, scalar_prefetch = 0 : i64, scratch_operands = 3 : i64, tpu.core_type = #tpu.core_type<tc>, window_params = [{transform_indices = @transform_0, window_bounds = array<i64: 32, 128>}, {pipeline_mode = #tpu.pipeline_mode<synchronous>, transform_indices = @transform_1, window_bounds = array<i64: 1, 128>}, {pipeline_mode = #tpu.pipeline_mode<synchronous>, transform_indices = @transform_2, window_bounds = array<i64: 1, 128>}, {transform_indices = @transform_3, window_bounds = array<i64: 128, 256>}, {transform_indices = @transform_4, window_bounds = array<i64: 1, 256>}, {transform_indices = @transform_5, window_bounds = array<i64: 1, 256>}, {pipeline_mode = #tpu.pipeline_mode<synchronous>, transform_indices = @transform_6, window_bounds = array<i64: 1, 128>}, {pipeline_mode = #tpu.pipeline_mode<synchronous>, transform_indices = @transform_7, window_bounds = array<i64: 1, 128>}, {transform_indices = @transform_8, window_bounds = array<i64: 256, 128>}, {transform_indices = @transform_9, window_bounds = array<i64: 32, 128>}]} {
    %c0_i32 = arith.constant 0 : i32
    %0 = arith.cmpi eq, %arg1, %c0_i32 : i32
    %1 = arith.extui %0 : i1 to i32
    %c0_i32_0 = arith.constant 0 : i32
    %2 = arith.cmpi ne, %1, %c0_i32_0 : i32
    scf.if %2 {
      %cst_39 = arith.constant 0.000000e+00 : f32
      %70 = vector.broadcast %cst_39 : f32 to vector<32x128xf32>
      %c0_40 = arith.constant 0 : index
      %c0_41 = arith.constant 0 : index
      %71 = vector.load %arg12[%c0_40, %c0_41] : memref<32x128xf32, #tpu.memory_space<vmem>>, vector<32x128xf32>
      tpu.vector_store %arg12[%c0_40, %c0_41], %70 {strides = array<i32>} : memref<32x128xf32, #tpu.memory_space<vmem>>, vector<32x128xf32>,
      %cst_42 = arith.constant 0.000000e+00 : f32
      %72 = vector.broadcast %cst_42 : f32 to vector<32x1xf32>
      %c0_43 = arith.constant 0 : index
      %c0_44 = arith.constant 0 : index
      %73 = vector.load %arg13[%c0_43, %c0_44] : memref<32x1xf32, #tpu.memory_space<vmem>>, vector<32x1xf32>
      tpu.vector_store %arg13[%c0_43, %c0_44], %72 {strides = array<i32>} : memref<32x1xf32, #tpu.memory_space<vmem>>, vector<32x1xf32>,
      %cst_45 = arith.constant 0.000000e+00 : f32
      %74 = vector.broadcast %cst_45 : f32 to vector<32x1xf32>
      %c0_46 = arith.constant 0 : index
      %c0_47 = arith.constant 0 : index
      %75 = vector.load %arg14[%c0_46, %c0_47] : memref<32x1xf32, #tpu.memory_space<vmem>>, vector<32x1xf32>
      tpu.vector_store %arg14[%c0_46, %c0_47], %74 {strides = array<i32>} : memref<32x1xf32, #tpu.memory_space<vmem>>, vector<32x1xf32>,
    } else {
    }
    %c0 = arith.constant 0 : index
    %c0_1 = arith.constant 0 : index
    %3 = vector.load %arg2[%c0, %c0_1] : memref<32x128xf32, #tpu.memory_space<vmem>>, vector<32x128xf32>
    %c0_2 = arith.constant 0 : index
    %c0_3 = arith.constant 0 : index
    %4 = vector.load %arg3[%c0_2, %c0_3] : memref<1x128xf32, #tpu.memory_space<vmem>>, vector<1x128xf32>
    %c0_4 = arith.constant 0 : index
    %c0_5 = arith.constant 0 : index
    %5 = vector.load %arg4[%c0_4, %c0_5] : memref<1x128xf32, #tpu.memory_space<vmem>>, vector<1x128xf32>
    %cst = arith.constant dense<0.000000e+00> : vector<32xf32>
    %6 = vector.multi_reduction <add>, %3, %cst [1] : vector<32x128xf32> to vector<32xf32>
    %7 = vector.shape_cast %6 : vector<32xf32> to vector<32x1xf32>
    %cst_6 = arith.constant 1.280000e+02 : f32
    %8 = vector.broadcast %cst_6 : f32 to vector<32x1xf32>
    %9 = arith.divf %7, %8 : vector<32x1xf32>
    %10 = vector.broadcast %9 : vector<32x1xf32> to vector<32x128xf32>
    %11 = arith.subf %3, %10 : vector<32x128xf32>
    %12 = arith.mulf %11, %11 : vector<32x128xf32>
    %cst_7 = arith.constant dense<0.000000e+00> : vector<32xf32>
    %13 = vector.multi_reduction <add>, %12, %cst_7 [1] : vector<32x128xf32> to vector<32xf32>
    %14 = vector.shape_cast %13 : vector<32xf32> to vector<32x1xf32>
    %cst_8 = arith.constant 1.280000e+02 : f32
    %15 = vector.broadcast %cst_8 : f32 to vector<32x1xf32>
    %16 = arith.divf %14, %15 : vector<32x1xf32>
    %17 = vector.broadcast %9 : vector<32x1xf32> to vector<32x128xf32>
    %18 = arith.subf %3, %17 : vector<32x128xf32>
    %cst_9 = arith.constant 9.99999974E-6 : f32
    %19 = vector.broadcast %cst_9 : f32 to vector<32x1xf32>
    %20 = arith.addf %16, %19 : vector<32x1xf32>
    %21 = math.rsqrt %20 : vector<32x1xf32>
    %22 = vector.broadcast %21 : vector<32x1xf32> to vector<32x128xf32>
    %23 = arith.mulf %18, %22 : vector<32x128xf32>
    %24 = vector.broadcast %4 : vector<1x128xf32> to vector<32x128xf32>
    %25 = arith.mulf %23, %24 : vector<32x128xf32>
    %26 = vector.broadcast %5 : vector<1x128xf32> to vector<32x128xf32>
    %27 = arith.addf %25, %26 : vector<32x128xf32>
    %c0_10 = arith.constant 0 : index
    %c0_11 = arith.constant 0 : index
    %28 = vector.load %arg5[%c0_10, %c0_11] : memref<128x256xbf16, #tpu.memory_space<vmem>>, vector<128x256xbf16>
    %29 = arith.truncf %27 : vector<32x128xf32> to vector<32x128xbf16>
    %cst_12 = arith.constant dense<0.000000e+00> : vector<32x256xf32>
    %30 = tpu.matmul %29, %28, %cst_12 {dimension_numbers = #tpu.dot_dimension_numbers<[1], [0], [0], [1], [0, 0, 1, 1], [], []>} : vector<32x128xbf16>, vector<128x256xbf16>, vector<32x256xf32> -> vector<32x256xf32>
    %c0_13 = arith.constant 0 : index
    %c0_14 = arith.constant 0 : index
    %31 = vector.load %arg6[%c0_13, %c0_14] : memref<1x256xf32, #tpu.memory_space<vmem>>, vector<1x256xf32>
    %32 = vector.broadcast %31 : vector<1x256xf32> to vector<32x256xf32>
    %33 = arith.addf %30, %32 : vector<32x256xf32>
    %34 = arith.mulf %33, %33 : vector<32x256xf32>
    %35 = arith.mulf %33, %34 : vector<32x256xf32>
    %cst_15 = arith.constant 4.471500e-02 : f32
    %36 = vector.broadcast %cst_15 : f32 to vector<32x256xf32>
    %37 = arith.mulf %36, %35 : vector<32x256xf32>
    %38 = arith.addf %33, %37 : vector<32x256xf32>
    %cst_16 = arith.constant 0.797884583 : f32
    %39 = vector.broadcast %cst_16 : f32 to vector<32x256xf32>
    %40 = arith.mulf %39, %38 : vector<32x256xf32>
    %41 = math.tanh %40 : vector<32x256xf32>
    %cst_17 = arith.constant 1.000000e+00 : f32
    %42 = vector.broadcast %cst_17 : f32 to vector<32x256xf32>
    %43 = arith.addf %42, %41 : vector<32x256xf32>
    %cst_18 = arith.constant 5.000000e-01 : f32
    %44 = vector.broadcast %cst_18 : f32 to vector<32x256xf32>
    %45 = arith.mulf %44, %43 : vector<32x256xf32>
    %46 = arith.mulf %33, %45 : vector<32x256xf32>
    %c0_19 = arith.constant 0 : index
    %c0_20 = arith.constant 0 : index
    %47 = vector.load %arg12[%c0_19, %c0_20] : memref<32x128xf32, #tpu.memory_space<vmem>>, vector<32x128xf32>
    %c0_21 = arith.constant 0 : index
    %c0_22 = arith.constant 0 : index
    %48 = vector.load %arg7[%c0_21, %c0_22] : memref<1x256xf32, #tpu.memory_space<vmem>>, vector<1x256xf32>
    %49 = vector.broadcast %48 : vector<1x256xf32> to vector<32x256xf32>
    %50 = arith.mulf %46, %49 : vector<32x256xf32>
    %c0_23 = arith.constant 0 : index
    %c0_24 = arith.constant 0 : index
    %51 = vector.load %arg10[%c0_23, %c0_24] : memref<256x128xbf16, #tpu.memory_space<vmem>>, vector<256x128xbf16>
    %52 = arith.truncf %50 : vector<32x256xf32> to vector<32x256xbf16>
    %cst_25 = arith.constant dense<0.000000e+00> : vector<32x128xf32>
    %53 = tpu.matmul %52, %51, %cst_25 {dimension_numbers = #tpu.dot_dimension_numbers<[1], [0], [0], [1], [0, 0, 1, 1], [], []>} : vector<32x256xbf16>, vector<256x128xbf16>, vector<32x128xf32> -> vector<32x128xf32>
    %54 = arith.addf %47, %53 : vector<32x128xf32>
    %c0_26 = arith.constant 0 : index
    %c0_27 = arith.constant 0 : index
    %55 = vector.load %arg12[%c0_26, %c0_27] : memref<32x128xf32, #tpu.memory_space<vmem>>, vector<32x128xf32>
    tpu.vector_store %arg12[%c0_26, %c0_27], %54 {strides = array<i32>} : memref<32x128xf32, #tpu.memory_space<vmem>>, vector<32x128xf32>,
    %c0_28 = arith.constant 0 : index
    %c0_29 = arith.constant 0 : index
    %56 = vector.load %arg13[%c0_28, %c0_29] : memref<32x1xf32, #tpu.memory_space<vmem>>, vector<32x1xf32>
    %cst_30 = arith.constant dense<0.000000e+00> : vector<32xf32>
    %57 = vector.multi_reduction <add>, %46, %cst_30 [1] : vector<32x256xf32> to vector<32xf32>
    %58 = vector.shape_cast %57 : vector<32xf32> to vector<32x1xf32>
    %59 = arith.addf %56, %58 : vector<32x1xf32>
    %c0_31 = arith.constant 0 : index
    %c0_32 = arith.constant 0 : index
    %60 = vector.load %arg13[%c0_31, %c0_32] : memref<32x1xf32, #tpu.memory_space<vmem>>, vector<32x1xf32>
    tpu.vector_store %arg13[%c0_31, %c0_32], %59 {strides = array<i32>} : memref<32x1xf32, #tpu.memory_space<vmem>>, vector<32x1xf32>,
    %c0_33 = arith.constant 0 : index
    %c0_34 = arith.constant 0 : index
    %61 = vector.load %arg14[%c0_33, %c0_34] : memref<32x1xf32, #tpu.memory_space<vmem>>, vector<32x1xf32>
    %62 = arith.mulf %46, %46 : vector<32x256xf32>
    %cst_35 = arith.constant dense<0.000000e+00> : vector<32xf32>
    %63 = vector.multi_reduction <add>, %62, %cst_35 [1] : vector<32x256xf32> to vector<32xf32>
    %64 = vector.shape_cast %63 : vector<32xf32> to vector<32x1xf32>
    %65 = arith.addf %61, %64 : vector<32x1xf32>
    %c0_36 = arith.constant 0 : index
    %c0_37 = arith.constant 0 : index
    %66 = vector.load %arg14[%c0_36, %c0_37] : memref<32x1xf32, #tpu.memory_space<vmem>>, vector<32x1xf32>
    tpu.vector_store %arg14[%c0_36, %c0_37], %65 {strides = array<i32>} : memref<32x1xf32, #tpu.memory_space<vmem>>, vector<32x1xf32>,
    %c1_i32 = arith.constant 1 : i32
    %67 = arith.cmpi eq, %arg1, %c1_i32 : i32
    %68 = arith.extui %67 : i1 to i32
    %c0_i32_38 = arith.constant 0 : i32
    %69 = arith.cmpi ne, %68, %c0_i32_38 : i32
    scf.if %69 {
      %c0_39 = arith.constant 0 : index
      %c0_40 = arith.constant 0 : index
      %70 = vector.load %arg13[%c0_39, %c0_40] : memref<32x1xf32, #tpu.memory_space<vmem>>, vector<32x1xf32>
      %cst_41 = arith.constant 0.001953125 : f32
      %71 = vector.broadcast %cst_41 : f32 to vector<32x1xf32>
      %72 = arith.mulf %70, %71 : vector<32x1xf32>
      %c0_42 = arith.constant 0 : index
      %c0_43 = arith.constant 0 : index
      %73 = vector.load %arg14[%c0_42, %c0_43] : memref<32x1xf32, #tpu.memory_space<vmem>>, vector<32x1xf32>
      %cst_44 = arith.constant 0.001953125 : f32
      %74 = vector.broadcast %cst_44 : f32 to vector<32x1xf32>
      %75 = arith.mulf %73, %74 : vector<32x1xf32>
      %76 = arith.mulf %72, %72 : vector<32x1xf32>
      %77 = arith.subf %75, %76 : vector<32x1xf32>
      %cst_45 = arith.constant 9.99999974E-6 : f32
      %78 = vector.broadcast %cst_45 : f32 to vector<32x1xf32>
      %79 = arith.addf %77, %78 : vector<32x1xf32>
      %80 = math.rsqrt %79 : vector<32x1xf32>
      %c0_46 = arith.constant 0 : index
      %c0_47 = arith.constant 0 : index
      %81 = vector.load %arg12[%c0_46, %c0_47] : memref<32x128xf32, #tpu.memory_space<vmem>>, vector<32x128xf32>
      %82 = vector.broadcast %80 : vector<32x1xf32> to vector<32x128xf32>
      %83 = arith.mulf %81, %82 : vector<32x128xf32>
      %84 = arith.mulf %72, %80 : vector<32x1xf32>
      %c0_48 = arith.constant 0 : index
      %c0_49 = arith.constant 0 : index
      %85 = vector.load %arg8[%c0_48, %c0_49] : memref<1x128xf32, #tpu.memory_space<vmem>>, vector<1x128xf32>
      %86 = vector.broadcast %84 : vector<32x1xf32> to vector<32x128xf32>
      %87 = vector.broadcast %85 : vector<1x128xf32> to vector<32x128xf32>
      %88 = arith.mulf %86, %87 : vector<32x128xf32>
      %89 = arith.subf %83, %88 : vector<32x128xf32>
      %c0_50 = arith.constant 0 : index
      %c0_51 = arith.constant 0 : index
      %90 = vector.load %arg9[%c0_50, %c0_51] : memref<1x128xf32, #tpu.memory_space<vmem>>, vector<1x128xf32>
      %91 = vector.broadcast %90 : vector<1x128xf32> to vector<32x128xf32>
      %92 = arith.addf %89, %91 : vector<32x128xf32>
      %93 = arith.addf %3, %92 : vector<32x128xf32>
      %c0_52 = arith.constant 0 : index
      %c0_53 = arith.constant 0 : index
      %94 = vector.load %arg11[%c0_52, %c0_53] : memref<32x128xf32, #tpu.memory_space<vmem>>, vector<32x128xf32>
      tpu.vector_store %arg11[%c0_52, %c0_53], %93 {strides = array<i32>} : memref<32x128xf32, #tpu.memory_space<vmem>>, vector<32x128xf32>,
    } else {
    }
    return
  }
  func.func @transform_0(%arg0: i32, %arg1: i32) -> (i32, i32) {
    %c0_i32 = arith.constant 0 : i32
    %c0_i32_0 = arith.constant 0 : i32
    return %arg0, %c0_i32 : i32, i32
  }
  func.func @transform_1(%arg0: i32, %arg1: i32) -> (i32, i32) {
    %c0_i32 = arith.constant 0 : i32
    %c0_i32_0 = arith.constant 0 : i32
    %c0_i32_1 = arith.constant 0 : i32
    return %c0_i32, %c0_i32_0 : i32, i32
  }
  func.func @transform_2(%arg0: i32, %arg1: i32) -> (i32, i32) {
    %c0_i32 = arith.constant 0 : i32
    %c0_i32_0 = arith.constant 0 : i32
    %c0_i32_1 = arith.constant 0 : i32
    return %c0_i32, %c0_i32_0 : i32, i32
  }
  func.func @transform_3(%arg0: i32, %arg1: i32) -> (i32, i32) {
    %c0_i32 = arith.constant 0 : i32
    %c0_i32_0 = arith.constant 0 : i32
    return %c0_i32, %arg1 : i32, i32
  }
  func.func @transform_4(%arg0: i32, %arg1: i32) -> (i32, i32) {
    %c0_i32 = arith.constant 0 : i32
    %c0_i32_0 = arith.constant 0 : i32
    return %c0_i32, %arg1 : i32, i32
  }
  func.func @transform_5(%arg0: i32, %arg1: i32) -> (i32, i32) {
    %c0_i32 = arith.constant 0 : i32
    %c0_i32_0 = arith.constant 0 : i32
    return %c0_i32, %arg1 : i32, i32
  }
  func.func @transform_6(%arg0: i32, %arg1: i32) -> (i32, i32) {
    %c0_i32 = arith.constant 0 : i32
    %c0_i32_0 = arith.constant 0 : i32
    %c0_i32_1 = arith.constant 0 : i32
    return %c0_i32, %c0_i32_0 : i32, i32
  }
  func.func @transform_7(%arg0: i32, %arg1: i32) -> (i32, i32) {
    %c0_i32 = arith.constant 0 : i32
    %c0_i32_0 = arith.constant 0 : i32
    %c0_i32_1 = arith.constant 0 : i32
    return %c0_i32, %c0_i32_0 : i32, i32
  }
  func.func @transform_8(%arg0: i32, %arg1: i32) -> (i32, i32) {
    %c0_i32 = arith.constant 0 : i32
    %c0_i32_0 = arith.constant 0 : i32
    return %arg1, %c0_i32 : i32, i32
  }
  func.func @transform_9(%arg0: i32, %arg1: i32) -> (i32, i32) {
    %c0_i32 = arith.constant 0 : i32
    %c0_i32_0 = arith.constant 0 : i32
    return %arg0, %c0_i32 : i32, i32
  }
}

</mosaic_0001>

<bundles_post_ra>
// kernel: mul.15
= control target key start
LH: loop header
LB: loop body
LE: loop exit
PB: predicated region body
PF: predicated region fallthrough
CT: control target
= control target key end

     0   :  { %vm7_vm0 = vcmask 261120   ;;  %s37_s8 = smov 32   ;;  %s38_s9 = smov 64   ;;  %vm13_vm1 = vcmask 1048320   ;;  %vm19_vm2 = vcmask 785920   ;;  %vm25_vm3 = vcmask 523520   ;;  %s55_s0 = inlined_call_operand.vmem [shape: f32[4,32], index: 0, kind: input, shape index: {}]   ;;  %s56_s1 = inlined_call_operand.vmem [shape: f32[128], index: 1, kind: output, shape index: {}]  }
   0x1   :  { %v4_v0 = vld [vmem:[%s55_s0] sm:$0xf]  ;;  %s36_s0 = smov 96  }
   0x2   :  { %5 = vst [vmem:[#allocation1] sm:$0xf] %v4_v0 }
   0x9   :  { %v10_v1 = vld [vmem:[#allocation1 + $0x3] sm:$0x1]   ;;  %v22_v2 = vld [vmem:[#allocation1 + $0x1] sm:$0x1]   ;;  %v6_v3 = vld [vmem:[#allocation1] sm:$0x1]  }
   0xa   :  { %11 = vrot.lane.b32.xlu0 %v10_v1, %s36_s0  ;;  %23 = vrot.lane.b32.xlu1 %v22_v2, %s37_s8  ;;  %v16_v4 = vld [vmem:[#allocation1 + $0x2] sm:$0x1]   ;;  %8 = vst.msk [vmem:[#allocation0] sm:$0x1] %vm7_vm0, %v6_v3  }
   0xe   :  { %17 = vrot.lane.b32.xlu0 %v16_v4, %s38_s9 }
  0x7c   :  { %v12_v5 = vpop.permute.xlu0 %11   ;;  %v24_v6 = vpop.permute.xlu1 %23  }
  0x7d   :  { %14 = vst.msk [vmem:[#allocation0] sm:$0x1] %vm13_vm1, %v12_v5  }
  0x80   :  { %v18_v7 = vpop.permute.xlu0 %17  }
  0x81   :  { %20 = vst.msk [vmem:[#allocation0] sm:$0x1] %vm19_vm2, %v18_v7  }
  0x82   :  { %26 = vst.msk [vmem:[#allocation0] sm:$0x1] %vm25_vm3, %v24_v6  }
  0x89   :  { %v30_v8 = vld [vmem:[#allocation0] sm:$0x1] }
  0x8a   :  { %32 = vst [vmem:[%s56_s1] sm:$0x1] %v30_v8 }

// kernel: mul.21
= control target key start
LH: loop header
LB: loop body
LE: loop exit
PB: predicated region body
PF: predicated region fallthrough
CT: control target
= control target key end

     0   :  { %s101_s0 = inlined_call_operand.vmem [shape: f32[4,32], index: 0, kind: input, shape index: {}]   ;;  %s102_s1 = inlined_call_operand.hbm [shape: f32[128], index: 1, kind: output, shape index: {}]  }
   0x1   :  { %v5_v0 = vld [vmem:[%s101_s0] sm:$0xf] }
   0x2   :  { %6 = vst [vmem:[#allocation3] sm:$0xf] %v5_v0 }
   0x3   :  { %2 = vsyncpa [#allocation1], 0  ;;  %vm8_vm0 = vcmask 261120   ;;  %s72_s0 = smov 96   ;;  %s73_s8 = smov 32   ;;  %vm14_vm1 = vcmask 1048320  }
   0x4   :  { %s74_s9 = smov 64   ;;  %vm20_vm2 = vcmask 785920   ;;  %vm26_vm3 = vcmask 523520   ;;  %s75_s10 = smov [#allocation0]  }
   0x5   :  { %s38_s11 = sshll.u32 %s75_s10, 4  ;;  %s39_s11 = int_to_ptr.vmem [resolvable:$true] %s38_s11 }
   0x6   :  { %s48_s12 = scalar_lea.vmem %s39_s11, 16  ;;  %s52_s13 = scalar_lea.vmem %s39_s11, 32 }
   0x7   :  { %p49_p0 = scmp.ne.s32.totalorder %s39_s11, %s48_s12  ;;  %p53_p1 = scmp.lt.s32.totalorder %s39_s11, %s39_s11 }
   0x8   :  { %p54_p2 = scmp.lt.s32.totalorder %s52_s13, %s48_s12 }
   0x9   :  { %v11_v1 = vld [vmem:[#allocation3 + $0x3] sm:$0x1]   ;;  %v23_v2 = vld [vmem:[#allocation3 + $0x1] sm:$0x1]   ;;  %v7_v3 = vld [vmem:[#allocation3] sm:$0x1]  }
   0xa   :  { %12 = vrot.lane.b32.xlu0 %v11_v1, %s72_s0  ;;  %24 = vrot.lane.b32.xlu1 %v23_v2, %s73_s8  ;;  %v17_v4 = vld [vmem:[#allocation3 + $0x2] sm:$0x1]   ;;  %9 = vst.msk [vmem:[#allocation2] sm:$0x1] %vm8_vm0, %v7_v3   ;;  %p55_p3 = por %p54_p2, %p53_p1 }
   0xc   :  { %p56_p4 = pnand %p55_p3, %p49_p0 }
   0xe   :  { %18 = vrot.lane.b32.xlu0 %v17_v4, %s74_s9 }
  0x7c   :  { %v13_v5 = vpop.permute.xlu0 %12   ;;  %v25_v6 = vpop.permute.xlu1 %24  }
  0x7d   :  { %15 = vst.msk [vmem:[#allocation2] sm:$0x1] %vm14_vm1, %v13_v5  }
  0x80   :  { %v19_v7 = vpop.permute.xlu0 %18  }
  0x81   :  { %21 = vst.msk [vmem:[#allocation2] sm:$0x1] %vm20_vm2, %v19_v7  }
  0x82   :  { %27 = vst.msk [vmem:[#allocation2] sm:$0x1] %vm26_vm3, %v25_v6  }
  0x89   :  { %v31_v8 = vld [vmem:[#allocation2] sm:$0x1] }
  0x8a   :  { %33 = vst [vmem:[#allocation0] sm:$0x1] %v31_v8 }
  0x8b   :  { %59 = shalt.err (!%p56_p4)
}
  0x8c   :  { %s60_s16 = scalar_lea.hbm %s102_s1, 16 }
  0x8d   :  { %p61_p5 = scmp.ne.s32.totalorder %s102_s1, %s60_s16  ;;  %p64_p6 = scmp.lt.u32.totalorder %s60_s16, %s102_s1 }
  0x8f   :  { %p66_p7 = pnand %p64_p6, %p61_p5 }
  0x91   :  { %69 = shalt.err (!%p66_p7)
}
  0x92   :  { %41 = dma.vmem_to_hbm [thread:$0]  %s39_s11, 16, %s102_s1, [#allocation1]  }
  0x93   :  { %70 = dma.done.wait [#allocation1], 16  }
  0x94   :  { %71 = vsyncadd [#allocation1], 4294967280 }
  0x95   :  { %43 = vsyncpa [#allocation1], 1 }

// kernel: ofa_decoder_layer.3
= control target key start
LH: loop header
LB: loop body
LE: loop exit
PB: predicated region body
PF: predicated region fallthrough
CT: control target
= control target key end

     0   :  { %s3685_s0 = inlined_call_operand.hbm [shape: f32[2,16,128], index: 0, kind: input, shape index: {}]   ;;  %s3686_s1 = inlined_call_operand.hbm [shape: f32[1,128], index: 1, kind: input, shape index: {}]   ;;  %s3687_s2 = inlined_call_operand.hbm [shape: f32[1,128], index: 2, kind: input, shape index: {}]   ;;  %s3688_s3 = inlined_call_operand.hbm [shape: bf16[128,128], index: 3, kind: input, shape index: {}]   ;;  %s3689_s4 = inlined_call_operand.hbm [shape: f32[1,128], index: 4, kind: input, shape index: {}]   ;;  %s3690_s5 = inlined_call_operand.hbm [shape: bf16[128,256], index: 5, kind: input, shape index: {}]   ;;  %s3691_s6 = inlined_call_operand.hbm [shape: f32[1,256], index: 6, kind: input, shape index: {}]   ;;  %s3692_s7 = inlined_call_operand.hbm [shape: bf16[128,128], index: 7, kind: input, shape index: {}]   ;;  %s3693_s8 = inlined_call_operand.hbm [shape: f32[1,128], index: 8, kind: input, shape index: {}]   ;;  %s3694_s9 = inlined_call_operand.hbm [shape: f32[1,128], index: 9, kind: input, shape index: {}]   ;;  %s3695_s10 = inlined_call_operand.hbm [shape: f32[1,128], index: 10, kind: input, shape index: {}]   ;;  %s3696_s11 = inlined_call_operand.hbm [shape: f32[2,1,16,16], index: 11, kind: input, shape index: {}]   ;;  %s3697_s12 = inlined_call_operand.hbm [shape: bf16[2,4,16,16], index: 12, kind: input, shape index: {}]   ;;  %s3698_s13 = inlined_call_operand.hbm [shape: f32[2,16,128], index: 13, kind: output, shape index: {}]  }
   0x1   :  { %3746 = sst [smem:[#allocation49_spill]] %s3685_s0 }
   0x2   :  { %3747 = sst [smem:[#allocation50_spill]] %s3686_s1 }
   0x3   :  { %3748 = sst [smem:[#allocation51_spill]] %s3687_s2 }
   0x4   :  { %3749 = sst [smem:[#allocation52_spill]] %s3688_s3 }
   0x5   :  { %3750 = sst [smem:[#allocation53_spill]] %s3689_s4 }
   0x6   :  { %3751 = sst [smem:[#allocation54_spill]] %s3690_s5 }
   0x7   :  { %3752 = sst [smem:[#allocation55_spill]] %s3691_s6 }
   0x8   :  { %3753 = sst [smem:[#allocation56_spill]] %s3692_s7 }
   0x9   :  { %3754 = sst [smem:[#allocation57_spill]] %s3693_s8 }
   0xa   :  { %3755 = sst [smem:[#allocation58_spill]] %s3694_s9 }
   0xb   :  { %3756 = sst [smem:[#allocation59_spill]] %s3695_s10 }
   0xc   :  { %3757 = sst [smem:[#allocation60_spill]] %s3696_s11 }
   0xd   :  { %3758 = sst [smem:[#allocation61_spill]] %s3697_s12 }
   0xe   :  { %3759 = sst [smem:[#allocation62_spill]] %s3698_s13 }
   0xf   :  { %18 = vsyncpa [#allocation4], 0 }
  0x10   :  { %20 = vsyncpa [#allocation4 + $0x1], 0 }
  0x11   :  { %21 = vsyncpa [#allocation7], 0 }
  0x12   :  { %22 = vsyncpa [#allocation10], 0 }
  0x13   :  { %23 = vsyncpa [#allocation13], 0 }
  0x14   :  { %24 = vsyncpa [#allocation16], 0 }
  0x15   :  { %25 = vsyncpa [#allocation19], 0 }
  0x16   :  { %26 = vsyncpa [#allocation22], 0 }
  0x17   :  { %28 = vsyncpa [#allocation22 + $0x1], 0 }
  0x18   :  { %29 = vsyncpa [#allocation5], 0 }
  0x19   :  { %31 = vsyncpa [#allocation5 + $0x1], 0  ;;  %s3003_s25 = smov 0   ;;  %s3005_s26 = smov 0  }
  0x1a   :  { %s3007_s27 = smov 0   ;;  %s3009_s28 = smov 0  }
  0x1b   :  { %s3011_s29 = smov 0   ;;  %s3013_s30 = smov 0  }
  0x1c   :  { %s3015_s14 = smov 0   ;;  %s3017_s15 = smov 0  }
  0x1d   :  { %s3019_s16 = smov 0   ;;  %s3021_s17 = smov 0  }
  0x1e   :  { %s3023_s18 = smov 0  }
  0x1f LB: > { %3760 = sst [smem:[#allocation33_spill]] %s2867_s25  ;;  %s3059_s19 = sadd.s32 4294967295, %s2907_s18   ;;  %s2907_s18 = sphi %s3023_s18, %s37_s18   ;;  %s2903_s17 = sphi %s3021_s17, %s3858_s17   ;;  %s2899_s16 = sphi %s3019_s16, %s3857_s16   ;;  %s2895_s15 = sphi %s3017_s15, %s3856_s15   ;;  %s2891_s14 = sphi %s3015_s14, %s3855_s14   ;;  %s2887_s30 = sphi %s3013_s30, %s3854_s30   ;;  %s2883_s29 = sphi %s3011_s29, %s3853_s29   ;;  %s2879_s28 = sphi %s3009_s28, %s3852_s28   ;;  %s2875_s27 = sphi %s3007_s27, %s3848_s27   ;;  %s2871_s26 = sphi %s3005_s26, %s3847_s26   ;;  %s2867_s25 = sphi %s3003_s25, %s3846_s25  }
  0x20   : > { %3761 = sst [smem:[#allocation34_spill]] %s2871_s26  ;;  %p1881_p0 = scmp.ge.s32.totalorder %s2907_s18, 1 }
  0x21   : > { %3762 = sst [smem:[#allocation35_spill]] %s2875_s27  ;;  %p3706_p1 = scmp.eq.s32.totalorder %s3059_s19, 0 }
  0x22   : > { %3763 = sst [smem:[#allocation36_spill]] %s2891_s14  ;;  %p374_p2 = scmp.lt.s32.totalorder %s2907_s18, 5 }
  0x23   : > { %3764 = sst [smem:[#allocation37_spill]] %s2895_s15  ;;  %s2909_s21 = smov [#allocation6]  }
  0x24   : > { %3765 = sst [smem:[#allocation38_spill]] %s2907_s18  ;;  %p3064_p3 = pnand %p1881_p0, %p374_p2 }
  0x25   : > { %3766 = sst [smem:[#allocation39_spill]] %s3059_s19  ;;  %s387_s22 = sshll.u32 %s2909_s21, 4  ;;  %s388_s22 = int_to_ptr.vmem [resolvable:$true] %s387_s22 }
  0x26   : > { %s3767_s20 = scalar_select %p3064_p3, 1, 0 }
  0x27   : > { %p2152_p4 = pneg %p3064_p3  ;;  %s2910_s23 = smov [#allocation9]  }
  0x28   : > { %3768 = sst [smem:[#allocation40_spill]] %s3767_s20  ;;  %s408_s24 = sshll.u32 %s2910_s23, 4  ;;  %s3076_s24 = int_to_ptr.vmem [resolvable:$true] %s408_s24 }
  0x29   : > { %p3072_p5 = pnand %p2152_p4, %p3706_p1  ;;  %s2911_s15 = smov [#allocation12]  }
  0x2a   : > { %s3078_s14 = sshll.u32 %s2911_s15, 4  ;;  %s3770_s1 = sld [smem:[#allocation50_spill]]  ;;  %s433_s14 = int_to_ptr.vmem [resolvable:$true] %s3078_s14 }
  0x2b   : > { %s3769_s13 = scalar_select %p3072_p5, 1, 0 }
  0x2c   : > { %p3088_p7 = pneg %p3072_p5 }
  0x30   : > { %s2391_s21 = scalar_lea.hbm %s3770_s1, 16 }
  0x31   : > { %p2392_p6 = scmp.ne.s32.totalorder %s3770_s1, %s2391_s21  ;;  %p2398_p10 = scmp.lt.u32.totalorder %s2391_s21, %s3770_s1 }
  0x33   : > { %p2394_p8 = pnand %p3088_p7, %p2392_p6 }
  0x35   : > { %p2395_p9 = pneg %p2394_p8 }
  0x37   : > { %p2400_p11 = pnand %p2398_p10, %p2395_p9 }
  0x39   : > { %2403 = shalt.err (!%p2400_p11)
}
  0x3a   : > { %s2404_s0 = scalar_lea.vmem %s388_s22, 16  ;;  %s2411_s8 = scalar_lea.vmem %s388_s22, 32 }
  0x3b   : > { %p2405_p12 = scmp.ne.s32.totalorder %s388_s22, %s2404_s0  ;;  %p2412_p2 = scmp.lt.s32.totalorder %s388_s22, %s388_s22 }
  0x3c   : > { %p2413_p4 = scmp.lt.s32.totalorder %s2411_s8, %s2404_s0 }
  0x3d   : > { %p2407_p13 = pnand %p2405_p12, %p3088_p7 }
  0x3e   : > { %p2414_p1 = por %p2413_p4, %p2412_p2 }
  0x3f   : > { %p2408_p0 = pneg %p2407_p13 }
  0x41   : > { %p2415_p3 = pnand %p2414_p1, %p2408_p0 }
  0x43   : > { %2418 = shalt.err (!%p2415_p3)
}
  0x44   : > { %2155 = dma.hbm_to_vmem [thread:$0]  (!%p3072_p5), %s3770_s1, 16, %s388_s22, [#allocation7]  }
  0x45   : > { %s3772_s3 = sld [smem:[#allocation52_spill]] }
  0x4b   : > { %s2419_s15 = scalar_lea.hbm %s3772_s3, 1024 }
  0x4c   : > { %p2420_p6 = scmp.ne.s32.totalorder %s3772_s3, %s2419_s15  ;;  %p2426_p1 = scmp.lt.u32.totalorder %s2419_s15, %s3772_s3 }
  0x4e   : > { %p2422_p8 = pnand %p2420_p6, %p3088_p7 }
  0x50   : > { %p2423_p9 = pneg %p2422_p8 }
  0x52   : > { %p2428_p3 = pnand %p2426_p1, %p2423_p9 }
  0x54   : > { %2431 = shalt.err (!%p2428_p3)
}
  0x55   : > { %s2432_s22 = scalar_lea.vmem %s3076_s24, 1024  ;;  %p2440_p13 = scmp.lt.s32.totalorder %s3076_s24, %s3076_s24 }
  0x56   : > { %p2433_p10 = scmp.ne.s32.totalorder %s3076_s24, %s2432_s22  ;;  %p2441_p0 = scmp.lt.s32.totalorder %s2432_s22, %s2432_s22 }
  0x58   : > { %p2435_p11 = pnand %p2433_p10, %p3088_p7  ;;  %p2442_p2 = por %p2441_p0, %p2440_p13 }
  0x5a   : > { %p2436_p12 = pneg %p2435_p11 }
  0x5c   : > { %p2443_p4 = pnand %p2442_p2, %p2436_p12 }
  0x5e   : > { %2446 = shalt.err (!%p2443_p4)
}
  0x5f   : > { %s3710_s2 = smov 64   ;;  %s3712_s4 = smov 4  }
  0x60   : > { %2161 = dma.hbm_to_vmem [thread:$0]  (!%p3072_p5), %s3772_s3, 1024, %s3076_s24, [#allocation10], %s3710_s2, %s3710_s2, %s3712_s4  }
  0x61   : > { %s3773_s5 = sld [smem:[#allocation54_spill]] }
  0x67   : > { %s2447_s15 = scalar_lea.hbm %s3773_s5, 2048 }
  0x68   : > { %p2448_p6 = scmp.ne.s32.totalorder %s3773_s5, %s2447_s15  ;;  %p2454_p1 = scmp.lt.u32.totalorder %s2447_s15, %s3773_s5 }
  0x6a   : > { %p2450_p8 = pnand %p2448_p6, %p3088_p7 }
  0x6c   : > { %p2451_p9 = pneg %p2450_p8 }
  0x6e   : > { %p2456_p3 = pnand %p2454_p1, %p2451_p9 }
  0x70   : > { %2459 = shalt.err (!%p2456_p3)
}
  0x71   : > { %s2460_s10 = scalar_lea.vmem %s433_s14, 2048  ;;  %p2468_p13 = scmp.lt.s32.totalorder %s433_s14, %s433_s14 }
  0x72   : > { %p2461_p10 = scmp.ne.s32.totalorder %s433_s14, %s2460_s10  ;;  %p2469_p0 = scmp.lt.s32.totalorder %s2460_s10, %s2460_s10 }
  0x74   : > { %p2463_p11 = pnand %p2461_p10, %p3088_p7  ;;  %p2470_p2 = por %p2469_p0, %p2468_p13 }
  0x76   : > { %p2464_p12 = pneg %p2463_p11 }
  0x78   : > { %p2471_p4 = pnand %p2470_p2, %p2464_p12 }
  0x7a   : > { %2474 = shalt.err (!%p2471_p4)
}
  0x7b   : > { %s3716_s24 = smov 128   ;;  %s3719_s20 = smov 8  }
  0x7c   : > { %2167 = dma.hbm_to_vmem [thread:$0]  (!%p3072_p5), %s3773_s5, 2048, %s433_s14, [#allocation13], %s3716_s24, %s3716_s24, %s3719_s20  }
  0x7d   : > { %s2916_s21 = smov [#allocation15]   ;;  %s2917_s0 = smov [#allocation18]  }
  0x7e   : > { %s456_s15 = sshll.u32 %s2916_s21, 4  ;;  %s481_s8 = sshll.u32 %s2917_s0, 4  ;;  %s457_s15 = int_to_ptr.vmem [resolvable:$true] %s456_s15  ;;  %s482_s8 = int_to_ptr.vmem [resolvable:$true] %s481_s8 }
  0x7f   : > { %s3774_s7 = sld [smem:[#allocation56_spill]] }
  0x85   : > { %s2475_s2 = scalar_lea.hbm %s3774_s7, 1024 }
  0x86   : > { %p2476_p6 = scmp.ne.s32.totalorder %s3774_s7, %s2475_s2  ;;  %p2482_p1 = scmp.lt.u32.totalorder %s2475_s2, %s3774_s7 }
  0x88   : > { %p2478_p8 = pnand %p2476_p6, %p3088_p7 }
  0x8a   : > { %p2479_p9 = pneg %p2478_p8 }
  0x8c   : > { %p2484_p3 = pnand %p2482_p1, %p2479_p9 }
  0x8e   : > { %2487 = shalt.err (!%p2484_p3)
}
  0x8f   : > { %s2488_s14 = scalar_lea.vmem %s457_s15, 1024  ;;  %p2496_p13 = scmp.lt.s32.totalorder %s457_s15, %s457_s15 }
  0x90   : > { %p2489_p10 = scmp.ne.s32.totalorder %s457_s15, %s2488_s14  ;;  %p2497_p0 = scmp.lt.s32.totalorder %s2488_s14, %s2488_s14 }
  0x92   : > { %p2491_p11 = pnand %p2489_p10, %p3088_p7  ;;  %p2498_p2 = por %p2497_p0, %p2496_p13 }
  0x94   : > { %p2492_p12 = pneg %p2491_p11 }
  0x96   : > { %p2499_p4 = pnand %p2498_p2, %p2492_p12 }
  0x98   : > { %2502 = shalt.err (!%p2499_p4)
}
  0x99   : > { %s3775_s3 = smov 4   ;;  %s3776_s4 = smov 64  }
  0x9a   : > { %2173 = dma.hbm_to_vmem [thread:$0]  (!%p3072_p5), %s3774_s7, 1024, %s457_s15, [#allocation16], %s3776_s4, %s3776_s4, %s3775_s3  }
  0x9b   : > { %s3777_s9 = sld [smem:[#allocation58_spill]] }
  0xa1   : > { %s2503_s6 = scalar_lea.hbm %s3777_s9, 16 }
  0xa2   : > { %p2504_p6 = scmp.ne.s32.totalorder %s3777_s9, %s2503_s6  ;;  %p2510_p1 = scmp.lt.u32.totalorder %s2503_s6, %s3777_s9 }
  0xa4   : > { %p2506_p8 = pnand %p2504_p6, %p3088_p7 }
  0xa6   : > { %p2507_p9 = pneg %p2506_p8 }
  0xa8   : > { %p2512_p3 = pnand %p2510_p1, %p2507_p9 }
  0xaa   : > { %2515 = shalt.err (!%p2512_p3)
}
  0xab   : > { %s2516_s14 = scalar_lea.vmem %s482_s8, 16  ;;  %s2523_s15 = scalar_lea.vmem %s482_s8, 32 }
  0xac   : > { %p2517_p10 = scmp.ne.s32.totalorder %s482_s8, %s2516_s14  ;;  %p2524_p13 = scmp.lt.s32.totalorder %s482_s8, %s482_s8 }
  0xad   : > { %p2525_p0 = scmp.lt.s32.totalorder %s2523_s15, %s2516_s14 }
  0xae   : > { %p2519_p11 = pnand %p2517_p10, %p3088_p7 }
  0xaf   : > { %p2526_p2 = por %p2525_p0, %p2524_p13 }
  0xb0   : > { %p2520_p12 = pneg %p2519_p11 }
  0xb2   : > { %p2527_p4 = pnand %p2526_p2, %p2520_p12 }
  0xb4   : > { %2530 = shalt.err (!%p2527_p4)
}
  0xb5   : > { %2179 = dma.hbm_to_vmem [thread:$0]  (!%p3072_p5), %s3777_s9, 16, %s482_s8, [#allocation19]  }
  0xb6   : > { %s1880_s2 = sadd.s32 4294967294, %s2907_s18   ;;  %s46_s1 = sadd.s32 1, %s2899_s16 }
  0xb7   : > { %s49_s6 = sadd.s32 1, %s2903_s17  ;;  %p47_p6 = scmp.ge.s32.totalorder %s46_s1, 2 }
  0xb8   : > { %s56_s21 = sadd.s32 1, %s2887_s30  ;;  %p63_p8 = scmp.ne.s32.totalorder %s2887_s30, %s2883_s29 }
  0xb9   : > { %p64_p9 = scmp.eq.s32.totalorder %s2907_s18, 0  ;;  %s3860_s1 = smov (%p47_p6, %s46_s1), 0 }
  0xba   : > { %3778 = sst [smem:[#allocation41_spill]] %s3860_s1  ;;  %s3862_s6 = smov (!%p47_p6, %s49_s6), %s2903_s17 }
  0xbb   : > { %p3203_p1 = por %p64_p9, %p63_p8  ;;  %p69_p3 = scmp.ne.s32.totalorder %s2883_s29, %s2879_s28 }
  0xbc   : > { %p51_p10 = scmp.ge.s32.totalorder %s3862_s6, 2  ;;  %s290_s0 = ssub.s32 %s2899_s16, %s3860_s1 }
  0xbd   : > { %p3780_p11 = scmp.eq.s32.totalorder %s3059_s19, 0  ;;  %s294_s10 = sadd.s32 1, %s2875_s27 }
  0xbe   : > { %s3864_s6 = smov (%p51_p10, %s3862_s6), 0  ;;  %p301_p13 = scmp.ne.s32.totalorder %s2875_s27, %s2871_s26 }
  0xbf   : > { %p3213_p12 = por %p3780_p11, %p69_p3  ;;  %3783 = sst [smem:[#allocation43_spill]] %s3864_s6 }
  0xc0   : > { %p307_p0 = scmp.ne.s32.totalorder %s2871_s26, %s2867_s25  ;;  %s53_s28 = ssub.s32 %s2903_s17, %s3864_s6 }
  0xc1   : > { %s3781_s22 = scalar_select %p3213_p12, 1, 0 }
  0xc2   : > { %p361_p2 = scmp.eq.s32.totalorder %s3059_s19, 3  ;;  %p54_p4 = scmp.eq.s32.totalorder %s53_s28, 0 }
  0xc3   : > { %3782 = sst [smem:[#allocation42_spill]] %s3781_s22  ;;  %s291_s14 = sor.u32 %s290_s0, %s53_s28 }
  0xc4   : > { %p292_p6 = scmp.eq.s32.totalorder %s291_s14, 0  ;;  %p3229_p8 = por %p301_p13, %p64_p9 }
  0xc5   : > { %s3234_s11 = scalar_select %p54_p4, %s2887_s30, %s56_s21  }
  0xc6   : > { %s3237_s12 = scalar_select %p292_p6, %s2875_s27, %s294_s10  }
  0xc7   : > { %3785 = sst [smem:[#allocation44_spill]] %s3234_s11  ;;  %p3787_p3 = pmov %p3780_p11 }
  0xc8   : > { %3786 = sst [smem:[#allocation45_spill]] %s3237_s12  ;;  %p3248_p11 = por %p361_p2, %p301_p13 }
  0xc9   : > { %p3244_p10 = por %p307_p0, %p3787_p3  ;;  %p367_p12 = scmp.eq.s32.totalorder %s1880_s2, 3 }
  0xca   : > { %s3790_s0 = scalar_select %p3248_p11, 1, 0 }
  0xcb   : > { %s3788_s24 = scalar_select %p3244_p10, 1, 0 }
  0xcc   : > { %3791 = sst [smem:[#allocation47_spill]] %s3790_s0  ;;  %p2207_p9 = scmp.lt.s32.totalorder %s2907_s18, 4 }
  0xcd   : > { %3789 = sst [smem:[#allocation46_spill]] %s3788_s24  ;;  %s524_s28 = sand.u32 1, %s2907_s18  }
  0xce   : > { %s526_s14 = sand.u32 1, %s2875_s27   ;;  %p3258_p4 = por %p367_p12, %p307_p0 }
  0xcf   : > { %p3264_p6 = pnand %p2207_p9, %p3203_p1  ;;  %s1896_s20 = sshll.u32 %s526_s14, 3 }
  0xd0   : > { %s3792_s21 = scalar_select %p3258_p4, 1, 0 }
  0xd1   : > { %s3794_s10 = scalar_select %p3264_p6, 1, 0 }
  0xd2   : > { %3793 = sst [smem:[#allocation48_spill]] %s3792_s21  ;;  %s1897_s5 = sshll.u32 %s2903_s17, 1 }
  0xd3   : > { %s528_s7 = scalar_lea.vmem [#allocation21], %s1896_s20  ;;  %s533_s6 = sadd.s32 %s2899_s16, %s1897_s5 }
  0xd4   : > { %s537_s9 = sshll.u32 %s528_s7, 4  ;;  %s1898_s2 = sshll.u32 %s533_s6, 7  ;;  %s3270_s9 = int_to_ptr.vmem [resolvable:$true] %s537_s9 }
  0xd5   : > { %p3274_p13 = pnand %p2207_p9, %p3229_p8  ;;  %s3796_s8 = sld [smem:[#allocation60_spill]] }
  0xd6   : > { %s3283_s5 = sshll.u32 %s526_s14, 4  ;;  %s3285_s7 = scalar_lea.sflag [#allocation22], %s524_s28 }
  0xd7   : > { %s3795_s1 = scalar_select %p3274_p13, 1, 0 }
  0xd8   : > { %p3742_p12 = pneg %p3274_p13 }
  0xdb   : > { %s3281_s27 = scalar_lea.hbm %s3796_s8, %s1898_s2  ;;  %s2536_s11 = scalar_lea.hbm %s3796_s8, 512 }
  0xdc   : > { %s2531_s20 = scalar_lea.hbm %s3281_s27, 128  ;;  %p2537_p8 = scmp.lt.u32.totalorder %s3281_s27, %s3796_s8 }
  0xdd   : > { %p2532_p1 = scmp.ne.s32.totalorder %s3281_s27, %s2531_s20  ;;  %p2538_p3 = scmp.lt.u32.totalorder %s2536_s11, %s2531_s20 }
  0xde   : > { %p2540_p4 = scmp.lt.u32.totalorder %s2531_s20, %s3281_s27 }
  0xdf   : > { %p2534_p0 = pnand %p3742_p12, %p2532_p1  ;;  %p2539_p9 = por %p2538_p3, %p2537_p8 }
  0xe1   : > { %p2535_p2 = pneg %p2534_p0  ;;  %p2541_p11 = por %p2540_p4, %p2539_p9 }
  0xe3   : > { %p2542_p10 = pnand %p2541_p11, %p2535_p2 }
  0xe5   : > { %2545 = shalt.err (!%p2542_p10)
}
  0xe6   : > { %s2546_s28 = scalar_lea.vmem %s3270_s9, 128  ;;  %s2918_s14 = smov [#allocation21]  }
  0xe7   : > { %p2547_p1 = scmp.ne.s32.totalorder %s3270_s9, %s2546_s28  ;;  %s2551_s6 = sshll.u32 %s2918_s14, 4  ;;  %s2552_s6 = int_to_ptr.vmem [resolvable:$false] %s2551_s6 }
  0xe8   : > { %s2553_s15 = scalar_lea.vmem %s2552_s6, 256  ;;  %p2554_p5 = scmp.lt.s32.totalorder %s3270_s9, %s2552_s6 }
  0xe9   : > { %p2549_p0 = pnand %p2547_p1, %p3742_p12  ;;  %p2555_p8 = scmp.lt.s32.totalorder %s2553_s15, %s2546_s28 }
  0xeb   : > { %p2550_p6 = pneg %p2549_p0  ;;  %p2556_p3 = por %p2555_p8, %p2554_p5 }
  0xed   : > { %p2557_p4 = pnand %p2556_p3, %p2550_p6 }
  0xef   : > { %2560 = shalt.err (!%p2557_p4)
}
  0xf0   : > { %2189 = dma.hbm_to_vmem [thread:$0]  (!%p3274_p13), %s3281_s27, 128, %s3270_s9, %s3285_s7  }
  0xf1   : > { %s1900_s20 = sshll.u32 %s2903_s17, 3  ;;  %s548_s11 = scalar_lea.vmem [#allocation23], %s3283_s5 }
  0xf2   : > { %s556_s12 = sshll.u32 %s548_s11, 4  ;;  %s553_s2 = sadd.s32 %s2899_s16, %s1900_s20  ;;  %s3316_s12 = int_to_ptr.vmem [resolvable:$true] %s556_s12 }
  0xf3   : > { %s1901_s28 = sshll.u32 %s553_s2, 6  ;;  %s3797_s15 = sld [smem:[#allocation61_spill]] }
  0xf4   : > { %s2919_s25 = smov [#allocation8]   ;;  %s3799_s26 = sld [smem:[#allocation51_spill]] }
  0xf5   : > { %s398_s18 = sshll.u32 %s2919_s25, 4  ;;  %s399_s18 = int_to_ptr.vmem [resolvable:$true] %s398_s18 }
  0xf9   : > { %s3798_s8 = smov %s3797_s15  ;;  %s3321_s21 = scalar_lea.hbm %s3797_s15, %s1901_s28 }
  0xfa   : > { %s3800_s19 = smov %s3799_s26  ;;  %s2561_s22 = scalar_lea.hbm %s3799_s26, 16 }
  0xfb   : > { %p2562_p5 = scmp.ne.s32.totalorder %s3800_s19, %s2561_s22  ;;  %p2568_p6 = scmp.lt.u32.totalorder %s2561_s22, %s3800_s19 }
  0xfd   : > { %p2564_p10 = pnand %p2562_p5, %p3088_p7 }
  0xff   : > { %p2565_p11 = pneg %p2564_p10 }
 0x101   : > { %p2570_p2 = pnand %p2568_p6, %p2565_p11 }
 0x103   : > { %2573 = shalt.err (!%p2570_p2)
}
 0x104   : > { %s2574_s11 = scalar_lea.vmem %s399_s18, 16  ;;  %s2581_s25 = scalar_lea.vmem %s399_s18, 32 }
 0x105   : > { %p2575_p9 = scmp.ne.s32.totalorder %s399_s18, %s2574_s11  ;;  %p2582_p8 = scmp.lt.s32.totalorder %s399_s18, %s399_s18 }
 0x106   : > { %p2583_p3 = scmp.lt.s32.totalorder %s2581_s25, %s2574_s11 }
 0x107   : > { %p2577_p1 = pnand %p2575_p9, %p3088_p7 }
 0x108   : > { %p2584_p4 = por %p2583_p3, %p2582_p8 }
 0x109   : > { %p2578_p0 = pneg %p2577_p1 }
 0x10b   : > { %p2585_p12 = pnand %p2584_p4, %p2578_p0 }
 0x10d   : > { %2588 = shalt.err (!%p2585_p12)
}
 0x10e   : > { %p3801_p5 = scmp.ne.s32.totalorder %s3769_s13, 0  ;;  %s2920_s22 = smov [#allocation11]  }
 0x10f   : > { %s422_s0 = sshll.u32 %s2920_s22, 4  ;;  %s2921_s2 = smov [#allocation14]   ;;  %s423_s0 = int_to_ptr.vmem [resolvable:$true] %s422_s0 }
 0x110   : > { %2158 = dma.hbm_to_vmem [thread:$0]  (!%p3801_p5), %s3800_s19, 16, %s399_s18, [#allocation7]  }
 0x111   : > { %s446_s28 = sshll.u32 %s2921_s2, 4  ;;  %s3802_s15 = sld [smem:[#allocation53_spill]]  ;;  %s447_s28 = int_to_ptr.vmem [resolvable:$true] %s446_s28 }
 0x117   : > { %s3803_s9 = smov %s3802_s15  ;;  %s2589_s27 = scalar_lea.hbm %s3802_s15, 16 }
 0x118   : > { %p2590_p12 = scmp.ne.s32.totalorder %s3803_s9, %s2589_s27  ;;  %p2596_p6 = scmp.lt.u32.totalorder %s2589_s27, %s3803_s9 }
 0x11a   : > { %p2592_p10 = pnand %p2590_p12, %p3088_p7 }
 0x11c   : > { %p2593_p11 = pneg %p2592_p10 }
 0x11e   : > { %p2598_p2 = pnand %p2596_p6, %p2593_p11 }
 0x120   : > { %2601 = shalt.err (!%p2598_p2)
}
 0x121   : > { %s2602_s18 = scalar_lea.vmem %s423_s0, 16  ;;  %s2609_s26 = scalar_lea.vmem %s423_s0, 32 }
 0x122   : > { %p2603_p9 = scmp.ne.s32.totalorder %s423_s0, %s2602_s18  ;;  %p2610_p8 = scmp.lt.s32.totalorder %s423_s0, %s423_s0 }
 0x123   : > { %p2611_p3 = scmp.lt.s32.totalorder %s2609_s26, %s2602_s18 }
 0x124   : > { %p2605_p1 = pnand %p2603_p9, %p3088_p7 }
 0x125   : > { %p2612_p4 = por %p2611_p3, %p2610_p8 }
 0x126   : > { %p2606_p0 = pneg %p2605_p1 }
 0x128   : > { %p2613_p13 = pnand %p2612_p4, %p2606_p0 }
 0x12a   : > { %2616 = shalt.err (!%p2613_p13)
}
 0x12b   : > { %2164 = dma.hbm_to_vmem [thread:$0]  (!%p3801_p5), %s3803_s9, 16, %s423_s0, [#allocation10]  }
 0x12c   : > { %s3804_s6 = sld [smem:[#allocation55_spill]] }
 0x132   : > { %s2617_s15 = scalar_lea.hbm %s3804_s6, 32 }
 0x133   : > { %p2618_p12 = scmp.ne.s32.totalorder %s3804_s6, %s2617_s15  ;;  %p2624_p13 = scmp.lt.u32.totalorder %s2617_s15, %s3804_s6 }
 0x135   : > { %p2620_p10 = pnand %p2618_p12, %p3088_p7 }
 0x137   : > { %p2621_p11 = pneg %p2620_p10 }
 0x139   : > { %p2626_p6 = pnand %p2624_p13, %p2621_p11 }
 0x13b   : > { %2629 = shalt.err (!%p2626_p6)
}
 0x13c   : > { %s2630_s25 = scalar_lea.vmem %s447_s28, 32  ;;  %p2638_p0 = scmp.lt.s32.totalorder %s447_s28, %s447_s28 }
 0x13d   : > { %p2631_p2 = scmp.ne.s32.totalorder %s447_s28, %s2630_s25  ;;  %p2639_p8 = scmp.lt.s32.totalorder %s2630_s25, %s2630_s25 }
 0x13f   : > { %p2633_p9 = pnand %p2631_p2, %p3088_p7  ;;  %p2640_p3 = por %p2639_p8, %p2638_p0 }
 0x141   : > { %p2634_p1 = pneg %p2633_p9 }
 0x143   : > { %p2641_p4 = pnand %p2640_p3, %p2634_p1 }
 0x145   : > { %2644 = shalt.err (!%p2641_p4)
}
 0x146   : > { %2170 = dma.hbm_to_vmem [thread:$0]  (!%p3801_p5), %s3804_s6, 32, %s447_s28, [#allocation13]  }
 0x147   : > { %s2922_s26 = smov [#allocation17]   ;;  %s2923_s22 = smov [#allocation20]  }
 0x148   : > { %s470_s24 = sshll.u32 %s2922_s26, 4  ;;  %s492_s2 = sshll.u32 %s2923_s22, 4  ;;  %s471_s24 = int_to_ptr.vmem [resolvable:$true] %s470_s24  ;;  %s493_s2 = int_to_ptr.vmem [resolvable:$true] %s492_s2 }
 0x149   : > { %s3805_s27 = sld [smem:[#allocation57_spill]] }
 0x14f   : > { %s3806_s5 = smov %s3805_s27  ;;  %s2645_s20 = scalar_lea.hbm %s3805_s27, 16 }
 0x150   : > { %p2646_p12 = scmp.ne.s32.totalorder %s3806_s5, %s2645_s20  ;;  %p2652_p13 = scmp.lt.u32.totalorder %s2645_s20, %s3806_s5 }
 0x152   : > { %p2648_p10 = pnand %p2646_p12, %p3088_p7 }
 0x154   : > { %p2649_p11 = pneg %p2648_p10 }
 0x156   : > { %p2654_p6 = pnand %p2652_p13, %p2649_p11 }
 0x158   : > { %2657 = shalt.err (!%p2654_p6)
}
 0x159   : > { %s2658_s28 = scalar_lea.vmem %s471_s24, 16  ;;  %s2665_s18 = scalar_lea.vmem %s471_s24, 32 }
 0x15a   : > { %p2659_p2 = scmp.ne.s32.totalorder %s471_s24, %s2658_s28  ;;  %p2666_p0 = scmp.lt.s32.totalorder %s471_s24, %s471_s24 }
 0x15b   : > { %p2667_p8 = scmp.lt.s32.totalorder %s2665_s18, %s2658_s28 }
 0x15c   : > { %p2661_p9 = pnand %p2659_p2, %p3088_p7 }
 0x15d   : > { %p2668_p3 = por %p2667_p8, %p2666_p0 }
 0x15e   : > { %p2662_p1 = pneg %p2661_p9 }
 0x160   : > { %p2669_p4 = pnand %p2668_p3, %p2662_p1 }
 0x162   : > { %2672 = shalt.err (!%p2669_p4)
}
 0x163   : > { %2176 = dma.hbm_to_vmem [thread:$0]  (!%p3801_p5), %s3806_s5, 16, %s471_s24, [#allocation16]  }
 0x164   : > { %s503_s9 = sand.u32 1, %s2887_s30   ;;  %s3807_s27 = sld [smem:[#allocation59_spill]] }
 0x16a   : > { %s3808_s20 = smov %s3807_s27  ;;  %s2673_s11 = scalar_lea.hbm %s3807_s27, 16 }
 0x16b   : > { %p2674_p12 = scmp.ne.s32.totalorder %s3808_s20, %s2673_s11  ;;  %p2680_p13 = scmp.lt.u32.totalorder %s2673_s11, %s3808_s20 }
 0x16d   : > { %p2676_p10 = pnand %p2674_p12, %p3088_p7 }
 0x16f   : > { %p2677_p11 = pneg %p2676_p10 }
 0x171   : > { %p2682_p6 = pnand %p2680_p13, %p2677_p11 }
 0x173   : > { %2685 = shalt.err (!%p2682_p6)
}
 0x174   : > { %s2686_s24 = scalar_lea.vmem %s493_s2, 16  ;;  %s2693_s26 = scalar_lea.vmem %s493_s2, 32 }
 0x175   : > { %p2687_p2 = scmp.ne.s32.totalorder %s493_s2, %s2686_s24  ;;  %p2694_p0 = scmp.lt.s32.totalorder %s493_s2, %s493_s2 }
 0x176   : > { %p2695_p8 = scmp.lt.s32.totalorder %s2693_s26, %s2686_s24 }
 0x177   : > { %p2689_p9 = pnand %p2687_p2, %p3088_p7 }
 0x178   : > { %p2696_p3 = por %p2695_p8, %p2694_p0 }
 0x179   : > { %p2690_p1 = pneg %p2689_p9 }
 0x17b   : > { %p2697_p4 = pnand %p2696_p3, %p2690_p1 }
 0x17d   : > { %2700 = shalt.err (!%p2697_p4)
}
 0x17e   : > { %2182 = dma.hbm_to_vmem [thread:$0]  (!%p3801_p5), %s3808_s20, 16, %s493_s2, [#allocation19]  }
 0x17f   : > { %s1893_s15 = sshll.u32 %s503_s9, 4  ;;  %s1972_s27 = sshll.u32 %s2903_s17, 8 }
 0x180   : > { %s3809_s25 = sld [smem:[#allocation49_spill]]  ;;  %s507_s18 = scalar_lea.vmem [#allocation3], %s1893_s15 }
 0x181   : > { %s514_s13 = sshll.u32 %s507_s18, 4  ;;  %s3422_s24 = scalar_lea.sflag [#allocation4], %s503_s9  ;;  %s3420_s13 = int_to_ptr.vmem [resolvable:$true] %s514_s13 }
 0x182   : > { %p3811_p5 = scmp.ne.s32.totalorder %s3794_s10, 0 }
 0x184   : > { %p2703_p12 = pneg %p3811_p5 }
 0x186   : > { %s3810_s0 = smov %s3809_s25  ;;  %s3418_s28 = scalar_lea.hbm %s3809_s25, %s1972_s27 }
 0x187   : > { %s2701_s26 = scalar_lea.hbm %s3418_s28, 256  ;;  %s2706_s14 = scalar_lea.hbm %s3810_s0, 512 }
 0x188   : > { %p2702_p7 = scmp.ne.s32.totalorder %s3418_s28, %s2701_s26  ;;  %p2707_p13 = scmp.lt.u32.totalorder %s3418_s28, %s3810_s0 }
 0x189   : > { %p2708_p6 = scmp.lt.u32.totalorder %s2706_s14, %s2701_s26  ;;  %p2710_p9 = scmp.lt.u32.totalorder %s2701_s26, %s3418_s28 }
 0x18a   : > { %p2704_p10 = pnand %p2703_p12, %p2702_p7 }
 0x18b   : > { %p2709_p2 = por %p2708_p6, %p2707_p13 }
 0x18c   : > { %p2705_p11 = pneg %p2704_p10 }
 0x18d   : > { %p2711_p1 = por %p2710_p9, %p2709_p2 }
 0x18f   : > { %p2712_p0 = pnand %p2711_p1, %p2705_p11 }
 0x191   : > { %2715 = shalt.err (!%p2712_p0)
}
 0x192   : > { %s2716_s9 = scalar_lea.vmem %s3420_s13, 256  ;;  %s2924_s15 = smov [#allocation3]  }
 0x193   : > { %p2717_p8 = scmp.ne.s32.totalorder %s3420_s13, %s2716_s9  ;;  %s2721_s11 = sshll.u32 %s2924_s15, 4  ;;  %s2722_s11 = int_to_ptr.vmem [resolvable:$false] %s2721_s11 }
 0x194   : > { %s2723_s25 = scalar_lea.vmem %s2722_s11, 512  ;;  %p2724_p7 = scmp.lt.s32.totalorder %s3420_s13, %s2722_s11 }
 0x195   : > { %p2719_p3 = pnand %p2717_p8, %p2703_p12  ;;  %p2725_p10 = scmp.lt.s32.totalorder %s2723_s25, %s2716_s9 }
 0x197   : > { %p2720_p4 = pneg %p2719_p3  ;;  %p2726_p13 = por %p2725_p10, %p2724_p7 }
 0x199   : > { %p2727_p6 = pnand %p2726_p13, %p2720_p4 }
 0x19b   : > { %2730 = shalt.err (!%p2727_p6)
}
 0x19c   : > { %s3812_s18 = smov 8   ;;  %s3813_s26 = smov 128  }
 0x19d   : > { %2186 = dma.hbm_to_vmem [thread:$0]  (!%p3811_p5), %s3418_s28, 256, %s3420_s13, %s3422_s24, %s3813_s26, %s3813_s26, %s3812_s18  }
 0x19e   : > { %s2731_s2 = scalar_lea.hbm %s3321_s21, 256  ;;  %p3814_p11 = scmp.ne.s32.totalorder %s3795_s1, 0 }
 0x19f   : > { %p2732_p12 = scmp.ne.s32.totalorder %s3321_s21, %s2731_s2  ;;  %s2736_s14 = scalar_lea.hbm %s3798_s8, 1024 }
 0x1a0   : > { %p3815_p2 = pneg %p3814_p11  ;;  %p2737_p0 = scmp.lt.u32.totalorder %s3321_s21, %s3798_s8 }
 0x1a1   : > { %p2738_p8 = scmp.lt.u32.totalorder %s2736_s14, %s2731_s2  ;;  %p2740_p4 = scmp.lt.u32.totalorder %s2731_s2, %s3321_s21 }
 0x1a2   : > { %p2734_p9 = pnand %p2732_p12, %p3815_p2 }
 0x1a3   : > { %p2739_p3 = por %p2738_p8, %p2737_p0 }
 0x1a4   : > { %p2735_p1 = pneg %p2734_p9 }
 0x1a5   : > { %p2741_p7 = por %p2740_p4, %p2739_p3 }
 0x1a7   : > { %p2742_p10 = pnand %p2741_p7, %p2735_p1 }
 0x1a9   : > { %2745 = shalt.err (!%p2742_p10)
}
 0x1aa   : > { %s2746_s28 = scalar_lea.vmem %s3316_s12, 256  ;;  %p3816_p13 = pmov %p3815_p2 }
 0x1ab   : > { %p2747_p5 = scmp.ne.s32.totalorder %s3316_s12, %s2746_s28  ;;  %s2925_s13 = smov [#allocation23]  }
 0x1ac   : > { %s2751_s24 = sshll.u32 %s2925_s13, 4  ;;  %s2752_s24 = int_to_ptr.vmem [resolvable:$false] %s2751_s24 }
 0x1ad   : > { %p2749_p6 = pnand %p2747_p5, %p3816_p13  ;;  %s2753_s9 = scalar_lea.vmem %s2752_s24, 512 }
 0x1ae   : > { %p2754_p2 = scmp.lt.s32.totalorder %s3316_s12, %s2752_s24  ;;  %p2755_p9 = scmp.lt.s32.totalorder %s2753_s9, %s2746_s28 }
 0x1af   : > { %p2750_p12 = pneg %p2749_p6 }
 0x1b0   : > { %p2756_p0 = por %p2755_p9, %p2754_p2 }
 0x1b2   : > { %p2757_p8 = pnand %p2756_p0, %p2750_p12 }
 0x1b4   : > { %2760 = shalt.err (!%p2757_p8)
}
 0x1b5   : > { %2192 = dma.hbm_to_vmem [thread:$0]  (!%p3814_p11), %s3321_s21, 256, %s3316_s12, %s3285_s7, %s3813_s26, %s3776_s4, %s3775_s3  }
 0x1b6   : > { %s3817_s15 = sld [smem:[#allocation40_spill]] }
 0x1bc   : > { %p3818_p1 = scmp.ne.s32.totalorder %s3817_s15, 0 }
 0x1bd   : > { %s3819_s11 = sld [smem:[#allocation42_spill]] (!%p3818_p1)  ;;  %s570_s25 = sand.u32 (!%p3818_p1), 1, %s2883_s29  }
 0x1be   : > { %568 = sbr.rel (%p3818_p1) target bundleno = 3140 (0xc44), region = 72  ;;  %s1903_s18 = sshll.u32 (!%p3818_p1), %s570_s25, 4 }
 0x1bf   : > { %s571_s2 = scalar_lea.sflag (!%p3818_p1), [#allocation4], %s570_s25  ;;  %s3483_s22 = scalar_lea.vmem (!%p3818_p1), [#allocation3], %s1903_s18 }
 0x1c3   : > { %p3820_p3 = scmp.ne.s32.totalorder (!%p3818_p1), %s3819_s11, 0 }
 0x1c5   : > { %2834 = dma.done.wait (%p3820_p3), %s571_s2, 256  }
 0x1c6   : > { %2836 = vsyncadd (%p3820_p3), %s571_s2, 4294967040  ;;  %s3821_s1 = sld [smem:[#allocation39_spill]] }
 0x1cc   : > { %p3822_p4 = scmp.eq.s32.totalorder %s3821_s1, 0 }
 0x1ce   : > { %2838 = dma.done.wait (%p3822_p4), [#allocation7], 32   ;;  %p3823_p11 = pmov %p3822_p4 }
 0x1cf   : > { %p3824_p7 = pmov %p3822_p4 }
 0x1d0   : > { %2840 = vsyncadd (%p3823_p11), [#allocation7], 4294967264 }
 0x1d1   : > { %2842 = dma.done.wait (%p3824_p7), [#allocation10], 1040   ;;  %p3825_p10 = pmov %p3822_p4 }
 0x1d2   : > { %p3826_p5 = pmov %p3822_p4 }
 0x1d3   : > { %2844 = vsyncadd (%p3825_p10), [#allocation10], 4294966256 }
 0x1d4   : > { %2846 = dma.done.wait (%p3826_p5), [#allocation13], 2080   ;;  %p3827_p13 = pmov %p3822_p4 }
 0x1d5   : > { %p3828_p6 = pmov %p3822_p4 }
 0x1d6   : > { %2848 = vsyncadd (%p3827_p13), [#allocation13], 4294965216 }
 0x1d7   : > { %2850 = dma.done.wait (%p3828_p6), [#allocation16], 1040   ;;  %p3829_p12 = pmov %p3822_p4 }
 0x1d8   : > { %p3830_p2 = pmov %p3822_p4 }
 0x1d9   : > { %2852 = vsyncadd (%p3829_p12), [#allocation16], 4294966256 }
 0x1da   : > { %2854 = dma.done.wait (%p3830_p2), [#allocation19], 32   ;;  %p3831_p9 = pmov %p3830_p2 }
 0x1db   : > { %s3832_s3 = sld [smem:[#allocation34_spill]]  ;;  %s3833_s4 = sld [smem:[#allocation46_spill]] }
 0x1dc   : > { %2856 = vsyncadd (%p3831_p9), [#allocation19], 4294967264  ;;  %s619_s21 = sand.u32 1, %s3821_s1  }
 0x1dd   : > { %s620_s26 = scalar_lea.sflag [#allocation22], %s619_s21 }
 0x1e1   : > { %s3511_s7 = sand.u32 1, %s3832_s3   ;;  %p3834_p0 = scmp.ne.s32.totalorder %s3833_s4, 0 }
 0x1e2   : > { %s1914_s12 = sshll.u32 %s3511_s7, 3 }
 0x1e3   : > { %s3514_s10 = scalar_lea.vmem [#allocation21], %s1914_s12 }
 0x1e4   : > { %2858 = dma.done.wait (%p3834_p0), %s620_s26, 384  }
 0x1e5   : > { %2860 = vsyncadd (%p3834_p0), %s620_s26, 4294966912  ;;  %s1915_s14 = sshll.u32 %s3511_s7, 4  ;;  %s3523_s23 = scalar_lea.vmem [#allocation24], %s1914_s12 }
 0x1e6   : > { %s3521_s27 = scalar_lea.vmem [#allocation23], %s1915_s14  ;;  %s3835_s28 = sld [smem:[#allocation36_spill]] }
 0x1ec   : > { %p1917_p8 = scmp.ne.s32.totalorder %s3835_s28, 0 }
 0x1ed   : > { %v690_v0 = vld [vmem:[%s3483_s22] sm:$0xff] (!%p1917_p8)  ;;  %v691_v1 = vld [vmem:[%s3483_s22 + $0x8] sm:$0xff] (!%p1917_p8)  ;;  %v2926_v21 = vmov (!%p1917_p8), 0   ;;  %v752_v44 = vlaneseq (!%p1917_p8) }
 0x1ee   : > { %689 = sbr.rel (%p1917_p8) target bundleno = 1031 (0x407), region = 128  ;;  %694 = vadd.xlane.f32.xlu0 (!%p1917_p8), %v690_v0  ;;  %v2327_v2 = vld [vmem:[#allocation12 + $0x4] ss:$8 sps:$4 sm:$0xff] (!%p1917_p8)   ;;  %v2329_v3 = vld [vmem:[#allocation12] ss:$8 sps:$4 sm:$0xff] (!%p1917_p8)   ;;  %874 = vmatprep.mubr.bf16.mxu0 (!%p1917_p8), %v2926_v21 }
 0x1ef   : > { %v2330_v4 = vld [vmem:[#allocation12 + $0x14] ss:$8 sps:$4 sm:$0xff] (!%p1917_p8)   ;;  %842 = vmatprep.subr.bf16.mxu0 (!%p1917_p8), %v2327_v2  ;;  %v2332_v13 = vld [vmem:[#allocation12 + $0x10] ss:$8 sps:$4 sm:$0xff] (!%p1917_p8)   ;;  %v2333_v14 = vld [vmem:[#allocation12 + $0x24] ss:$8 sps:$4 sm:$0xff] (!%p1917_p8)  }
 0x1f0   : > { %843 = vmatpush1.bf16.msra.mxu0 (!%p1917_p8), %v2329_v3  ;;  %v2335_v15 = vld [vmem:[#allocation12 + $0x20] ss:$8 sps:$4 sm:$0xff] (!%p1917_p8)   ;;  %v2336_v16 = vld [vmem:[#allocation12 + $0x34] ss:$8 sps:$4 sm:$0xff] (!%p1917_p8)   ;;  %v2338_v17 = vld [vmem:[#allocation12 + $0x30] ss:$8 sps:$4 sm:$0xff] (!%p1917_p8)  }
 0x1f1   : > { %844 = vmatprep.subr.bf16.mxu0 (!%p1917_p8), %v2330_v4  ;;  %v2339_v18 = vld [vmem:[#allocation12 + $0x44] ss:$8 sps:$4 sm:$0xff] (!%p1917_p8)   ;;  %v2341_v19 = vld [vmem:[#allocation12 + $0x40] ss:$8 sps:$4 sm:$0xff] (!%p1917_p8)   ;;  %v2342_v20 = vld [vmem:[#allocation12 + $0x54] ss:$8 sps:$4 sm:$0xff] (!%p1917_p8)  }
 0x1f2   : > { %696 = vadd.xlane.f32.xlu0 (!%p1917_p8), %v691_v1  ;;  %v2344_v22 = vld [vmem:[#allocation12 + $0x50] ss:$8 sps:$4 sm:$0xff] (!%p1917_p8)   ;;  %v2345_v23 = vld [vmem:[#allocation12 + $0x64] ss:$8 sps:$4 sm:$0xff] (!%p1917_p8)   ;;  %v2347_v24 = vld [vmem:[#allocation12 + $0x60] ss:$8 sps:$4 sm:$0xff] (!%p1917_p8)  }
 0x1f3   : > { %v2348_v25 = vld [vmem:[#allocation12 + $0x74] ss:$8 sps:$4 sm:$0xff] (!%p1917_p8)   ;;  %v2350_v26 = vld [vmem:[#allocation12 + $0x70] ss:$8 sps:$4 sm:$0xff] (!%p1917_p8)   ;;  %v753_v45 = vshrl.u32 (!%p1917_p8), %v752_v44, 7 }
 0x1f4   : > { %845 = vmatpush1.bf16.msra.mxu0 (!%p1917_p8), %v2332_v13  ;;  %v1918_v35 = vld [vmem:[#allocation6] ss:$0 sm:$0xff] (!%p1917_p8)  ;;  %v1919_v39 = vld [vmem:[#allocation8] ss:$0 sm:$0xff] (!%p1917_p8)  ;;  %v750_v47 = vld [vmem:[#allocation14] sm:$0x3] (!%p1917_p8) }
 0x1f5   : > { %846 = vmatprep.subr.bf16.mxu0 %v2333_v14  ;;  %v754_v46 = vsub.s32 0, %v753_v45  ;;  %v758_v48 = vsub.s32 1, %v753_v45 }
 0x1f7   : > { %v755_v49 = vrot.slane %v750_v47, %v754_v46  ;;  %v759_v51 = vrot.slane %v750_v47, %v758_v48 }
 0x1f8   : > { %847 = vmatpush1.bf16.msra.mxu0 %v2335_v15 }
 0x1f9   : > { %848 = vmatprep.subr.bf16.mxu0 %v2336_v16 }
 0x1fc   : > { %849 = vmatpush1.bf16.msra.mxu0 %v2338_v17 }
 0x1fd   : > { %850 = vmatprep.subr.bf16.mxu0 %v2339_v18 }
 0x200   : > { %851 = vmatpush1.bf16.msra.mxu0 %v2341_v19 }
 0x201   : > { %852 = vmatprep.subr.bf16.mxu0 %v2342_v20 }
 0x204   : > { %853 = vmatpush1.bf16.msra.mxu0 %v2344_v22 }
 0x205   : > { %854 = vmatprep.subr.bf16.mxu0 %v2345_v23 }
 0x208   : > { %855 = vmatpush1.bf16.msra.mxu0 %v2347_v24 }
 0x209   : > { %856 = vmatprep.subr.bf16.mxu0 %v2348_v25 }
 0x20c   : > { %857 = vmatpush1.bf16.msra.mxu0 %v2350_v26 }
 0x27b   : > { %v695_v5 = vpop.xlane.xlu0 %694 }
 0x27c   : > { %v699_v6 = vmul.f32 0.0078125, %v695_v5 }
 0x27e   : > { %v701_v7 = vsub.f32 %v690_v0, %v699_v6 }
 0x27f   : > { %v697_v8 = vpop.xlane.xlu0 %696 }
 0x280   : > { %v700_v9 = vmul.f32 0.0078125, %v697_v8  ;;  %v703_v10 = vmul.f32 %v701_v7, %v701_v7 }
 0x282   : > { %v702_v11 = vsub.f32 %v691_v1, %v700_v9  ;;  %705 = vadd.xlane.f32.xlu1 %v703_v10 }
 0x284   : > { %v704_v12 = vmul.f32 %v702_v11, %v702_v11 }
 0x286   : > { %707 = vadd.xlane.f32.xlu1 %v704_v12 }
 0x30f   : > { %v706_v27 = vpop.xlane.xlu1 %705 }
 0x310   : > { %v709_v28 = vmul.f32 0.0078125, %v706_v27 }
 0x312   : > { %v711_v29 = vadd.f32 1e-05, %v709_v28 }
 0x313   : > { %v708_v30 = vpop.xlane.xlu1 %707 }
 0x314   : > { %2351 = vrsqrt.f32 %v711_v29  ;;  %v710_v31 = vmul.f32 0.0078125, %v708_v30 }
 0x316   : > { %v712_v32 = vadd.f32 1e-05, %v710_v31 }
 0x318   : > { %2353 = vrsqrt.f32 %v712_v32 }
 0x31e   : > { %v2352_v33 = vpop.eup %2351 }
 0x31f   : > { %v715_v34 = vmul.f32 %v2352_v33, %v701_v7 }
 0x321   : > { %v723_v38 = vmul.f32 %v1918_v35, %v715_v34 }
 0x322   : > { %v2354_v36 = vpop.eup %2353 }
 0x323   : > { %v716_v37 = vmul.f32 %v2354_v36, %v702_v11  ;;  %v731_v41 = vadd.f32 %v1919_v39, %v723_v38 }
 0x325   : > { %v724_v40 = vmul.f32 %v1918_v35, %v716_v37 }
 0x327   : > { %v732_v42 = vadd.f32 %v1919_v39, %v724_v40 }
 0x329   : > { %v749_v43 = vpack.c.bf16 %v732_v42, %v731_v41 }
 0x32b   : > { %875 = vmatmul.mubr.bf16.vlgmr.msra.gmra.mrb[0].mxu0 %v749_v43 }
 0x3fe   : > { %v876_v50 = vpop.f32.mrb[0].mxu0 }
 0x3ff   : > { %v878_v52 = vpop.f32.mrb[1].mxu0  ;;  %v877_v54 = vadd.f32 %v876_v50, %v755_v49 }
 0x400   : > { %v880_v53 = vpop.f32.mrb[2].mxu0  ;;  %v879_v57 = vadd.f32 %v878_v52, %v759_v51 }
 0x401   : > { %v881_v55 = vadd.f32 %v880_v53, %v755_v49  ;;  %v882_v56 = vpop.f32.mrb[3].mxu0 }
 0x402   : > { %v883_v58 = vadd.f32 %v882_v56, %v759_v51 }
 0x403   : > { %v885_v59 = vpack.c.bf16 %v881_v55, %v877_v54 }
 0x404   : > { %v886_v60 = vpack.c.bf16 %v883_v58, %v879_v57 }
 0x405   : > { %887 = vst [vmem:[#allocation2] sm:$0xff] %v885_v59 }
 0x406   : > { %888 = vst [vmem:[#allocation2 + $0x8] sm:$0xff] %v886_v60 }
 0x407 PF: > { %s3836_s13 = sld [smem:[#allocation36_spill]]  ;;  %v2355_v62 = vld [vmem:[#allocation9] sm:$0xff]   ;;  %v2927_v63 = vmov 0.0   ;;  %v2356_v0 = vld [vmem:[#allocation9 + $0x8] sm:$0xff]   ;;  %v2357_v5 = vld [vmem:[#allocation9 + $0x10] sm:$0xff]   ;;  %vm2928_vm0 = vmmov 0  }
 0x408   : > { %2016 = vmatprep.subr.bf16.mxu0 %v2927_v63  ;;  %2036 = vmatprep.subr.bf16.mxu1 %v2927_v63  ;;  %v2358_v6 = vld [vmem:[#allocation9 + $0x18] sm:$0xff]   ;;  %v2359_v7 = vld [vmem:[#allocation9 + $0x20] sm:$0xff]   ;;  %v2360_v8 = vld [vmem:[#allocation9 + $0x28] sm:$0xff]   ;;  %vm1064_vm1 = vcmask 261120   ;;  %s2929_s15 = smov 96   ;;  %s2930_s11 = smov 64  }
 0x409   : > { %2017 = vmatpush3.bf16.msra.mxu0 %v2355_v62  ;;  %2032 = vmatprep.mubr.msk.bf16.mxu0 %vm2928_vm0, %v2927_v63  ;;  %v2361_v9 = vld [vmem:[#allocation9 + $0x30] sm:$0xff]   ;;  %v2362_v10 = vld [vmem:[#allocation9 + $0x38] sm:$0xff]   ;;  %v1939_v23 = vld [vmem:[#allocation11] ss:$0 sm:$0xff]  ;;  %s2931_s25 = smov 32   ;;  %vm1257_vm2 = vcmask 130048  }
 0x40a   : > { %2018 = vmatprep.subr.bf16.mxu0 %v2927_v63  ;;  %2038 = vmatprep.mubr.msk.bf16.mxu1 %vm2928_vm0, %v2927_v63  ;;  %v1937_v17 = vld [vmem:[#allocation6] ss:$0 sm:$0xff]  ;;  %v1938_v19 = vld [vmem:[#allocation8] ss:$0 sm:$0xff]  ;;  %v1034_v40 = vld [vmem:[%s3514_s10] sm:$0xff]  ;;  %vm1491_vm3 = vcmask 523264  }
 0x40b   : > { %v1974_v39 = vld [vmem:[%s3521_s27] sm:$0xff]   ;;  %v1981_v56 = vld [vmem:[%s3521_s27 + $0x8] sm:$0xff]   ;;  %vm1493_vm4 = vcmask 785408   ;;  %s3837_s18 = sld [smem:[#allocation37_spill]]  ;;  %s1652_s4 = sshll.u32 %s3523_s23, 4  ;;  %s3623_s4 = int_to_ptr.vmem [resolvable:$true] %s1652_s4 }
 0x40c   : > { %v1032_v11 = vld [vmem:[#allocation2] sm:$0xff]  ;;  %v1975_v41 = vunpack.c.l.bf16 %v1974_v39  ;;  %v1976_v49 = vunpack.c.h.bf16 %v1974_v39  ;;  %v1979_v58 = vunpack.c.l.bf16 %v1981_v56  ;;  %s3839_s26 = sld [smem:[#allocation62_spill]]  ;;  %s1637_s27 = scalar_lea.sflag [#allocation5], %s3511_s7 }
 0x40d   : > { %s1936_s24 = sshll.u32 %s3836_s13, 3  ;;  %2019 = vmatpush3.bf16.msra.mxu0 %v2356_v0  ;;  %1048 = vrot.lane.b32.xlu1 %v1032_v11, %s2929_s15  ;;  %v1069_v12 = vsel %vm1064_vm1, %v1032_v11, 0  ;;  %s2761_s28 = scalar_lea.vmem %s3623_s4, 128 }
 0x40e   : > { %s890_s9 = scalar_lea.vmem %s3483_s22, %s1936_s24 [#allocation3]  ;;  %2020 = vmatprep.subr.bf16.mxu0 %v2927_v63  ;;  %2037 = vmatpush3.bf16.xpose.msra.mxu1 %v1069_v12  ;;  %s3838_s22 = sld [smem:[#allocation47_spill]] }
 0x40f   : > { %v3530_v61 = vld [vmem:[%s890_s9] sm:$0xff]  ;;  %2042 = vmatprep.subr.bf16.mxu1 %v2927_v63  ;;  %p2762_p1 = scmp.ne.s32.totalorder %s3623_s4, %s2761_s28 }
 0x410   : > { %894 = vadd.xlane.f32.xlu0 %v3530_v61 }
 0x411   : > { %2021 = vmatpush3.bf16.msra.mxu0 %v2357_v5  ;;  %s1968_s2 = sshll.u32 %s3837_s18, 1 }
 0x412   : > { %2022 = vmatprep.subr.bf16.mxu0 %v2927_v63  ;;  %s1648_s1 = sadd.s32 %s3836_s13, %s1968_s2  ;;  %s3840_s10 = smov %s3839_s26 }
 0x413   : > { %s1969_s3 = sshll.u32 %s1648_s1, 7  ;;  %s2932_s13 = smov [#allocation24]  }
 0x414   : > { %s3621_s14 = scalar_lea.hbm %s3839_s26, %s1969_s3  ;;  %p3841_p3 = scmp.ne.s32.totalorder %s3838_s22, 0 }
 0x415   : > { %2023 = vmatpush3.bf16.msra.mxu0 %v2358_v6  ;;  %s2765_s24 = sshll.u32 %s2932_s13, 4  ;;  %s2766_s24 = int_to_ptr.vmem [resolvable:$false] %s2765_s24 }
 0x416   : > { %2024 = vmatprep.subr.bf16.mxu0 %v2927_v63  ;;  %p2763_p4 = pnand %p2762_p1, %p3841_p3  ;;  %s2767_s9 = scalar_lea.vmem %s2766_s24, 256 }
 0x417   : > { %p2768_p7 = scmp.lt.s32.totalorder %s3623_s4, %s2766_s24  ;;  %p2769_p10 = scmp.lt.s32.totalorder %s2767_s9, %s2761_s28 }
 0x418   : > { %p2764_p11 = pneg %p2763_p4 }
 0x419   : > { %2025 = vmatpush3.bf16.msra.mxu0 %v2359_v7  ;;  %p2770_p5 = por %p2769_p10, %p2768_p7 }
 0x41a   : > { %2026 = vmatprep.subr.bf16.mxu0 %v2927_v63 }
 0x41b   : > { %p2771_p13 = pnand %p2770_p5, %p2764_p11 }
 0x41d   : > { %2027 = vmatpush3.bf16.msra.mxu0 %v2360_v8 }
 0x41e   : > { %2028 = vmatprep.subr.bf16.mxu0 %v2927_v63 }
 0x421   : > { %2029 = vmatpush3.bf16.msra.mxu0 %v2361_v9 }
 0x422   : > { %2030 = vmatprep.subr.bf16.mxu0 %v2927_v63 }
 0x425   : > { %2031 = vmatpush3.bf16.msra.mxu0 %v2362_v10 }
 0x426   : > { %2084 = vmatprep.subr.bf16.mxu0 %v2927_v63 }
 0x47f   : > { %v1049_v25 = vpop.permute.xlu1 %1048 }
 0x480   : > { %v1115_v31 = vsel %vm1064_vm1, %v1049_v25, 0 }
 0x49d   : > { %v895_v1 = vpop.xlane.xlu0 %894 }
 0x49e   : > { %v897_v2 = vmul.f32 0.0078125, %v895_v1 }
 0x4a0   : > { %v898_v3 = vsub.f32 %v3530_v61, %v897_v2 }
 0x4a2   : > { %v899_v4 = vmul.f32 %v898_v3, %v898_v3 }
 0x4a4   : > { %900 = vadd.xlane.f32.xlu0 %v899_v4  ;;  %v1980_v4 = vunpack.c.h.bf16 %v1981_v56  ;;  %v2363_v56 = vld [vmem:[#allocation15] sm:$0xff]  }
 0x4ba   : > { %1050 = vrot.lane.b32.xlu0 %v1032_v11, %s2930_s11 }
 0x531   : > { %v901_v13 = vpop.xlane.xlu0 %900 }
 0x532   : > { %v902_v14 = vmul.f32 0.0078125, %v901_v13 }
 0x534   : > { %v903_v15 = vadd.f32 1e-05, %v902_v14 }
 0x535   : > { %v1051_v32 = vpop.permute.xlu0 %1050 }
 0x536   : > { %2371 = vrsqrt.f32 %v903_v15  ;;  %v1161_v33 = vsel %vm1064_vm1, %v1051_v32, 0  ;;  %v1033_v15 = vld [vmem:[#allocation2 + $0x8] sm:$0xff] }
 0x540   : > { %v2372_v16 = vpop.eup %2371 }
 0x541   : > { %v905_v18 = vmul.f32 %v2372_v16, %v898_v3 }
 0x543   : > { %v912_v20 = vmul.f32 %v1937_v17, %v905_v18 }
 0x545   : > { %v919_v21 = vadd.f32 %v1938_v19, %v912_v20 }
 0x547   : > { %v936_v22 = vpack.c.bf16 %v919_v21, %v919_v21 }
 0x549   : > { %2033 = vmatmul.mubr.bf16.vlgmr.msra.gmra.mrb[0].mxu0 %v936_v22 }
 0x54a   : > { %2100 = vmatprep.mubr.msk.bf16.mxu0 %vm2928_vm0, %v2927_v63  ;;  %2085 = vmatpush3.bf16.msra.mxu0 %v2363_v56 }
 0x54b   : > { %2086 = vmatprep.subr.bf16.mxu0 %v2927_v63 }
 0x61c   : > { %v1026_v24 = vpop.f32.mrb[0].mxu0 }
 0x61d   : > { %v1027_v26 = vadd.f32 %v1939_v23, %v1026_v24  ;;  %v2034_v27 = vpop.f32.mrb[1].mxu0 }
 0x61e   : > { %v1029_v28 = vpop.f32.mrb[2].mxu0 }
 0x61f   : > { %v1039_v29 = vpack.c.bf16 %v1027_v26, %v1027_v26  ;;  %v2035_v30 = vpop.f32.mrb[3].mxu0 }
 0x621   : > { %1041 = vrot.lane.b32.xlu1 %v1039_v29, %s2929_s15  ;;  %2039 = vmatmul.mubr.msk.bf16.vlgmr.msra.gmra.mrb[0].mxu1 %vm1064_vm1, %v1039_v29 }
 0x622   : > { %2043 = vmatpush3.bf16.xpose.msra.mxu1 %v1115_v31  ;;  %2044 = vmatprep.mubr.msk.bf16.mxu1 %vm2928_vm0, %v2927_v63 }
 0x623   : > { %2048 = vmatprep.subr.bf16.mxu1 %v2927_v63 }
 0x625   : > { %1043 = vrot.lane.b32.xlu1 %v1039_v29, %s2930_s11 }
 0x629   : > { %1052 = vrot.lane.b32.xlu1 %v1032_v11, %s2931_s25 }
 0x62d   : > { %1045 = vrot.lane.b32.xlu1 %v1039_v29, %s2931_s25 }
 0x693   : > { %v1042_v34 = vpop.permute.xlu1 %1041 }
 0x694   : > { %2045 = vmatmul.mubr.msk.bf16.vlgmr.msra.gmra.mrb[4].mxu1 %vm1064_vm1, %v1042_v34 }
 0x695   : > { %2049 = vmatpush3.bf16.xpose.msra.mxu1 %v1161_v33  ;;  %2050 = vmatprep.mubr.msk.bf16.mxu1 %vm2928_vm0, %v2927_v63 }
 0x696   : > { %2054 = vmatprep.subr.bf16.mxu1 %v2927_v63 }
 0x697   : > { %v1044_v35 = vpop.permute.xlu1 %1043 }
 0x69b   : > { %v1053_v36 = vpop.permute.xlu1 %1052 }
 0x69c   : > { %v1207_v37 = vsel %vm1064_vm1, %v1053_v36, 0  ;;  %2051 = vmatmul.mubr.msk.bf16.vlgmr.msra.gmra.mrb[8].mxu1 %vm1064_vm1, %v1044_v35 }
 0x69d   : > { %2055 = vmatpush3.bf16.xpose.msra.mxu1 %v1207_v37  ;;  %2056 = vmatprep.mubr.msk.bf16.mxu1 %vm2928_vm0, %v2927_v63 }
 0x69e   : > { %2060 = vmatprep.subr.bf16.mxu1 %v2927_v63 }
 0x69f   : > { %v1046_v38 = vpop.permute.xlu1 %1045 }
 0x6a4   : > { %2057 = vmatmul.mubr.msk.bf16.vlgmr.msra.gmra.mrb[12].mxu1 %vm1064_vm1, %v1046_v38 }
 0x6a5   : > { %2062 = vmatprep.mubr.msk.bf16.mxu1 %vm2928_vm0, %v2927_v63  ;;  %2061 = vmatpush3.bf16.msra.mxu1 %v1033_v15 }
 0x6a6   : > { %2066 = vmatprep.subr.bf16.mxu1 %v2927_v63 }
 0x6f4   : > { %v1105_v42 = vpop.f32.mrb[0].mxu1 }
 0x6f5   : > { %v1106_v43 = vadd.f32 %v1105_v42, %v1034_v40  ;;  %v2040_v44 = vpop.f32.mrb[1].mxu1 }
 0x6f6   : > { %v1108_v45 = vpop.f32.mrb[2].mxu1 }
 0x6f7   : > { %v2041_v46 = vpop.f32.mrb[3].mxu1  ;;  %v1253_v47 = vadd.f32 %v1975_v41, %v1106_v43 }
 0x6f9   : > { %v1258_v48 = vsel %vm1257_vm2, %v1253_v47, -inf }
 0x6fa   : > { %1259 = vmax.xlane.f32.xlu1 %v1258_v48 }
 0x767   : > { %v1151_v50 = vpop.f32.mrb[4].mxu1 }
 0x768   : > { %v1152_v51 = vadd.f32 %v1151_v50, %v1034_v40  ;;  %v2046_v52 = vpop.f32.mrb[5].mxu1 }
 0x769   : > { %v1154_v53 = vpop.f32.mrb[6].mxu1 }
 0x76a   : > { %v2047_v54 = vpop.f32.mrb[7].mxu1  ;;  %v1254_v55 = vadd.f32 %v1976_v49, %v1152_v51 }
 0x76c   : > { %v1261_v57 = vsel %vm1257_vm2, %v1254_v55, -inf }
 0x76d   : > { %1262 = vmax.xlane.f32.xlu0 %v1261_v57  ;;  %v2364_v57 = vld [vmem:[#allocation15 + $0x8] sm:$0xff]  }
 0x76e   : > { %2087 = vmatpush3.bf16.msra.mxu0 %v2364_v57 }
 0x76f   : > { %v1197_v59 = vpop.f32.mrb[8].mxu1  ;;  %2088 = vmatprep.subr.bf16.mxu0 %v2927_v63 }
 0x770   : > { %v1198_v60 = vadd.f32 %v1197_v59, %v1034_v40  ;;  %v2052_v62 = vpop.f32.mrb[9].mxu1 }
 0x771   : > { %v1200_v0 = vpop.f32.mrb[10].mxu1  ;;  %v2365_v62 = vld [vmem:[#allocation15 + $0x10] sm:$0xff]  }
 0x772   : > { %v2053_v1 = vpop.f32.mrb[11].mxu1  ;;  %v1255_v2 = vadd.f32 %v1979_v58, %v1198_v60  ;;  %2089 = vmatpush3.bf16.msra.mxu0 %v2365_v62 }
 0x773   : > { %v2366_v1 = vld [vmem:[#allocation15 + $0x18] sm:$0xff]   ;;  %2090 = vmatprep.subr.bf16.mxu0 %v2927_v63 }
 0x774   : > { %v1264_v3 = vsel %vm1257_vm2, %v1255_v2, -inf }
 0x775   : > { %1265 = vmax.xlane.f32.xlu1 %v1264_v3 }
 0x776   : > { %2091 = vmatpush3.bf16.msra.mxu0 %v2366_v1 }
 0x777   : > { %v1243_v5 = vpop.f32.mrb[12].mxu1  ;;  %2092 = vmatprep.subr.bf16.mxu0 %v2927_v63 }
 0x778   : > { %v1244_v6 = vadd.f32 %v1243_v5, %v1034_v40  ;;  %v2058_v7 = vpop.f32.mrb[13].mxu1  ;;  %v2367_v5 = vld [vmem:[#allocation15 + $0x20] sm:$0xff]  }
 0x779   : > { %v1246_v8 = vpop.f32.mrb[14].mxu1  ;;  %v2368_v7 = vld [vmem:[#allocation15 + $0x28] sm:$0xff]  }
 0x77a   : > { %v2059_v9 = vpop.f32.mrb[15].mxu1  ;;  %v1256_v10 = vadd.f32 %v1980_v4, %v1244_v6  ;;  %2093 = vmatpush3.bf16.msra.mxu0 %v2367_v5  ;;  %v2369_v8 = vld [vmem:[#allocation15 + $0x30] sm:$0xff]  }
 0x77b   : > { %2094 = vmatprep.subr.bf16.mxu0 %v2927_v63  ;;  %v2370_v9 = vld [vmem:[#allocation15 + $0x38] sm:$0xff]  }
 0x77c   : > { %v1267_v11 = vsel %vm1257_vm2, %v1256_v10, -inf }
 0x77d   : > { %1268 = vmax.xlane.f32.xlu1 %v1267_v11 }
 0x77e   : > { %2095 = vmatpush3.bf16.msra.mxu0 %v2368_v7 }
 0x77f   : > { %2096 = vmatprep.subr.bf16.mxu0 %v2927_v63 }
 0x782   : > { %2097 = vmatpush3.bf16.msra.mxu0 %v2369_v8 }
 0x783   : > { %2098 = vmatprep.subr.bf16.mxu0 %v2927_v63 }
 0x786   : > { %2099 = vmatpush3.bf16.msra.mxu0 %v2370_v9 }
 0x787   : > { %v1260_v12 = vpop.xlane.xlu1 %1259 }
 0x788   : > { %v1270_v13 = vsub.f32 %v1253_v47, %v1260_v12 }
 0x78a   : > { %v1274_v14 = vmul.f32 1.442695, %v1270_v13 }
 0x78c   : > { %2373 = vpow2.f32 %v1274_v14 }
 0x796   : > { %v2374_v16 = vpop.eup %2373 }
 0x797   : > { %v1282_v17 = vsel %vm1257_vm2, %v2374_v16, 0.0 }
 0x798   : > { %1283 = vadd.xlane.f32.xlu0 %v1282_v17 }
 0x7fa   : > { %v1263_v18 = vpop.xlane.xlu0 %1262 }
 0x7fb   : > { %v1271_v19 = vsub.f32 %v1254_v55, %v1263_v18 }
 0x7fd   : > { %v1276_v20 = vmul.f32 1.442695, %v1271_v19 }
 0x7ff   : > { %2375 = vpow2.f32 %v1276_v20 }
 0x802   : > { %v1266_v21 = vpop.xlane.xlu1 %1265 }
 0x803   : > { %v1272_v22 = vsub.f32 %v1255_v2, %v1266_v21 }
 0x805   : > { %v1278_v23 = vmul.f32 1.442695, %v1272_v22 }
 0x807   : > { %2377 = vpow2.f32 %v1278_v23 }
 0x809   : > { %v2376_v24 = vpop.eup %2375 }
 0x80a   : > { %v1285_v25 = vsel %vm1257_vm2, %v2376_v24, 0.0  ;;  %v1269_v29 = vpop.xlane.xlu1 %1268 }
 0x80b   : > { %1286 = vadd.xlane.f32.xlu1 %v1285_v25  ;;  %v1273_v30 = vsub.f32 %v1256_v10, %v1269_v29 }
 0x80d   : > { %v1280_v31 = vmul.f32 1.442695, %v1273_v30 }
 0x811   : > { %v2378_v26 = vpop.eup %2377 }
 0x812   : > { %v1288_v27 = vsel %vm1257_vm2, %v2378_v26, 0.0 }
 0x813   : > { %1289 = vadd.xlane.f32.xlu0 %v1288_v27 }
 0x81c   : > { %1058 = vrot.lane.b32.xlu1 %v1033_v15, %s2930_s11 }
 0x825   : > { %v1284_v28 = vpop.xlane.xlu0 %1283 }
 0x826   : > { %2379 = vrcp.f32 %v1284_v28 }
 0x827   : > { %2381 = vpow2.f32 %v1280_v31 }
 0x829   : > { %1055 = vrot.lane.b32.xlu0 %v1033_v15, %s2929_s15 }
 0x830   : > { %v2380_v32 = vpop.eup %2379 }
 0x831   : > { %v1298_v33 = vmul.f32 %v2380_v32, %v2374_v16  ;;  %v2382_v35 = vpop.eup %2381 }
 0x832   : > { %v1291_v36 = vsel %vm1257_vm2, %v2382_v35, 0.0 }
 0x833   : > { %v1302_v34 = vpack.c.bf16 %v1298_v33, %v1298_v33 }
 0x835   : > { %2063 = vmatmul.mubr.msk.bf16.vlgmr.msra.gmra.mrb[16].mxu1 %vm1257_vm2, %v1302_v34  ;;  %v1965_v34 = vld [vmem:[#allocation18] ss:$0 sm:$0xff] }
 0x836   : > { %2068 = vmatprep.mubr.msk.bf16.mxu1 %vm2928_vm0, %v2927_v63 }
 0x840   : > { %1292 = vadd.xlane.f32.xlu1 %v1291_v36  ;;  %v1966_v36 = vld [vmem:[#allocation20] ss:$0 sm:$0xff] }
 0x851   : > { %1061 = vrot.lane.b32.xlu1 %v1033_v15, %s2931_s25 }
 0x898   : > { %v1287_v37 = vpop.xlane.xlu1 %1286 }
 0x899   : > { %2383 = vrcp.f32 %v1287_v37 }
 0x89c   : > { %v1059_v43 = vpop.permute.xlu1 %1058 }
 0x8a0   : > { %v1290_v38 = vpop.xlane.xlu0 %1289 }
 0x8a1   : > { %2385 = vrcp.f32 %v1290_v38 }
 0x8a3   : > { %v2384_v39 = vpop.eup %2383 }
 0x8a4   : > { %v1299_v40 = vmul.f32 %v2384_v39, %v2376_v24  ;;  %v1056_v41 = vpop.permute.xlu0 %1055 }
 0x8a5   : > { %2067 = vmatpush3.bf16.msra.mxu1 %v1056_v41 }
 0x8a6   : > { %v1303_v42 = vpack.c.bf16 %v1299_v40, %v1299_v40  ;;  %2072 = vmatprep.subr.bf16.mxu1 %v2927_v63 }
 0x8a8   : > { %2069 = vmatmul.mubr.msk.bf16.vlgmr.msra.gmra.mrb[20].mxu1 %vm1257_vm2, %v1303_v42 }
 0x8a9   : > { %2073 = vmatpush3.bf16.msra.mxu1 %v1059_v43  ;;  %2074 = vmatprep.mubr.msk.bf16.mxu1 %vm2928_vm0, %v2927_v63 }
 0x8aa   : > { %2078 = vmatprep.subr.bf16.mxu1 %v2927_v63 }
 0x8ab   : > { %v2386_v44 = vpop.eup %2385 }
 0x8ac   : > { %v1300_v45 = vmul.f32 %v2386_v44, %v2378_v26 }
 0x8ae   : > { %v1304_v46 = vpack.c.bf16 %v1300_v45, %v1300_v45 }
 0x8b0   : > { %2075 = vmatmul.mubr.msk.bf16.vlgmr.msra.gmra.mrb[24].mxu1 %vm1257_vm2, %v1304_v46 }
 0x8b1   : > { %2080 = vmatprep.mubr.msk.bf16.mxu1 %vm2928_vm0, %v2927_v63  ;;  %v1956_v63 = vld [vmem:[#allocation17] ss:$0 sm:$0xff] }
 0x8cd   : > { %v1293_v47 = vpop.xlane.xlu1 %1292 }
 0x8ce   : > { %2387 = vrcp.f32 %v1293_v47 }
 0x8d1   : > { %v1062_v48 = vpop.permute.xlu1 %1061 }
 0x8d2   : > { %2079 = vmatpush3.bf16.msra.mxu1 %v1062_v48 }
 0x8d8   : > { %v2388_v49 = vpop.eup %2387 }
 0x8d9   : > { %v1301_v50 = vmul.f32 %v2388_v49, %v2382_v35 }
 0x8db   : > { %v1305_v51 = vpack.c.bf16 %v1301_v50, %v1301_v50 }
 0x8dd   : > { %2081 = vmatmul.mubr.msk.bf16.vlgmr.msra.gmra.mrb[28].mxu1 %vm1257_vm2, %v1305_v51 }
 0x908   : > { %v1343_v52 = vpop.f32.mrb[16].mxu1 }
 0x909   : > { %v2064_v53 = vpop.f32.mrb[17].mxu1 }
 0x90a   : > { %v1346_v54 = vpop.f32.mrb[18].mxu1 }
 0x90b   : > { %v2065_v55 = vpop.f32.mrb[19].mxu1 }
 0x97b   : > { %v1386_v58 = vpop.f32.mrb[20].mxu1 }
 0x97c   : > { %1479 = vrot.lane.b32.xlu0 %v1386_v58, %s2931_s25  ;;  %v2070_v59 = vpop.f32.mrb[21].mxu1 }
 0x97d   : > { %v1389_v60 = vpop.f32.mrb[22].mxu1 }
 0x97e   : > { %v2071_v0 = vpop.f32.mrb[23].mxu1 }
 0x983   : > { %v1429_v2 = vpop.f32.mrb[24].mxu1 }
 0x984   : > { %1483 = vrot.lane.b32.xlu1 %v1429_v2, %s2930_s11  ;;  %v2076_v3 = vpop.f32.mrb[25].mxu1 }
 0x985   : > { %v1432_v4 = vpop.f32.mrb[26].mxu1 }
 0x986   : > { %v2077_v6 = vpop.f32.mrb[27].mxu1 }
 0x9b0   : > { %v1472_v10 = vpop.f32.mrb[28].mxu1 }
 0x9b1   : > { %1487 = vrot.lane.b32.xlu0 %v1472_v10, %s2929_s15  ;;  %v2082_v11 = vpop.f32.mrb[29].mxu1 }
 0x9b2   : > { %v1475_v12 = vpop.f32.mrb[30].mxu1 }
 0x9b3   : > { %v2083_v13 = vpop.f32.mrb[31].mxu1 }
 0x9ee   : > { %v1480_v14 = vpop.permute.xlu0 %1479 }
 0x9ef   : > { %v1490_v16 = vsel %vm1064_vm1, %v1343_v52, %v1480_v14 }
 0x9f6   : > { %v1484_v15 = vpop.permute.xlu1 %1483 }
 0x9f7   : > { %v1492_v17 = vsel %vm1491_vm3, %v1490_v16, %v1484_v15 }
 0xa23   : > { %v1488_v18 = vpop.permute.xlu0 %1487 }
 0xa24   : > { %v1494_v19 = vsel %vm1493_vm4, %v1492_v17, %v1488_v18 }
 0xa25   : > { %v1511_v20 = vpack.c.bf16 %v1494_v19, %v1494_v19 }
 0xa27   : > { %2101 = vmatmul.mubr.bf16.vlgmr.msra.gmra.mrb[4].mxu0 %v1511_v20 }
 0xafa   : > { %v1601_v21 = vpop.f32.mrb[4].mxu0 }
 0xafb   : > { %v1602_v22 = vadd.f32 %v1956_v63, %v1601_v21  ;;  %v2102_v23 = vpop.f32.mrb[5].mxu0 }
 0xafc   : > { %v1604_v24 = vpop.f32.mrb[6].mxu0 }
 0xafd   : > { %1609 = vadd.xlane.f32.xlu1 %v1602_v22  ;;  %v2103_v25 = vpop.f32.mrb[7].mxu0 }
 0xb8a   : > { %v1610_v26 = vpop.xlane.xlu1 %1609 }
 0xb8b   : > { %v1611_v27 = vmul.f32 0.0078125, %v1610_v26 }
 0xb8d   : > { %v1612_v28 = vsub.f32 %v1602_v22, %v1611_v27 }
 0xb8f   : > { %v1613_v29 = vmul.f32 %v1612_v28, %v1612_v28 }
 0xb91   : > { %1614 = vadd.xlane.f32.xlu0 %v1613_v29 }
 0xc1e   : > { %v1615_v30 = vpop.xlane.xlu0 %1614 }
 0xc1f   : > { %v1616_v31 = vmul.f32 0.0078125, %v1615_v30 }
 0xc21   : > { %v1617_v32 = vadd.f32 1e-05, %v1616_v31 }
 0xc23   : > { %2389 = vrsqrt.f32 %v1617_v32 }
 0xc2d   : > { %v2390_v33 = vpop.eup %2389 }
 0xc2e   : > { %v1619_v35 = vmul.f32 %v2390_v33, %v1612_v28 }
 0xc30   : > { %v1626_v37 = vmul.f32 %v1965_v34, %v1619_v35 }
 0xc32   : > { %v1633_v38 = vadd.f32 %v1966_v36, %v1626_v37 }
 0xc34   : > { %v1634_v39 = vadd.f32 %v1633_v38, %v3530_v61 }
 0xc36   : > { %1635 = vst [vmem:[%s3523_s23] sm:$0xff] %v1634_v39 }
 0xc37   : > { %2774 = shalt.err (!%p2771_p13)
}
 0xc38   : > { %s2775_s7 = scalar_lea.hbm %s3621_s14, 128  ;;  %s2779_s11 = scalar_lea.hbm %s3840_s10, 512 }
 0xc39   : > { %p2776_p6 = scmp.ne.s32.totalorder %s3621_s14, %s2775_s7  ;;  %p2780_p9 = scmp.lt.u32.totalorder %s3621_s14, %s3840_s10 }
 0xc3a   : > { %p2781_p0 = scmp.lt.u32.totalorder %s2779_s11, %s2775_s7  ;;  %p2783_p1 = scmp.lt.u32.totalorder %s2775_s7, %s3621_s14 }
 0xc3b   : > { %p2777_p12 = pnand %p2776_p6, %p3841_p3 }
 0xc3c   : > { %p2782_p8 = por %p2781_p0, %p2780_p9 }
 0xc3d   : > { %p2778_p2 = pneg %p2777_p12 }
 0xc3e   : > { %p2784_p4 = por %p2783_p1, %p2782_p8 }
 0xc40   : > { %p2785_p11 = pnand %p2784_p4, %p2778_p2 }
 0xc42   : > { %2788 = shalt.err (!%p2785_p11)
}
 0xc43   : > { %2150 = dma.vmem_to_hbm [thread:$0]  (%p3841_p3), %s3623_s4, 128, %s3621_s14, %s1637_s27  }
 0xc44 PF: > { %s3842_s2 = sld [smem:[#allocation38_spill]]  ;;  %s3843_s1 = sld [smem:[#allocation33_spill]] }
 0xc45   : > { %s3844_s3 = sld [smem:[#allocation48_spill]] }
 0xc4a   : > { %p2218_p7 = scmp.ge.s32.totalorder %s3842_s2, 2  ;;  %s1664_s21 = sand.u32 1, %s3843_s1  }
 0xc4b   : > { %p3845_p10 = scmp.ne.s32.totalorder %s3844_s3, 0  ;;  %s1665_s12 = scalar_lea.sflag [#allocation5], %s1664_s21 }
 0xc4d   : > { %p2194_p5 = pnand %p2218_p7, %p3845_p10 }
 0xc4f   : > { %2862 = dma.done.wait (!%p2194_p5), %s1665_s12, 128  }
 0xc50   : > { %2864 = vsyncadd (!%p2194_p5), %s1665_s12, 4294967168  ;;  %s37_s18 = sadd.s32 1, %s3842_s2   ;;  %s3846_s25 = sld [smem:[#allocation34_spill]] }
 0xc51   : > { %p34_p13 = scmp.ge.s32.totalorder %s37_s18, 6   ;;  %s3847_s26 = sld [smem:[#allocation35_spill]] }
 0xc52   : > { %s3848_s27 = sld [smem:[#allocation45_spill]]  ;;  %s3849_s22 = sld [smem:[#allocation44_spill]] }
 0xc53   : > { %s3850_s4 = sld [smem:[#allocation41_spill]]  ;;  %s3851_s13 = sld [smem:[#allocation43_spill]] }
 0xc54   : > { %s3852_s28 = smov %s2883_s29  ;;  %s3853_s29 = smov %s2887_s30 }
 0xc55   : > { %s3855_s14 = smov %s2899_s16  ;;  %s3856_s15 = smov %s2903_s17 }
 0xc56   :  { %36 = sbr.rel (!%p34_p13) target bundleno = 31 (0x1f), region = 186 }
 0xc58   : > { %s3854_s30 = smov %s3849_s22 }
 0xc59   : > { %s3857_s16 = smov %s3850_s4  ;;  %s3858_s17 = smov %s3851_s13 }
 0xc5d   :  { %1670 = vsyncpa [#allocation4], 1 }
 0xc5e   :  { %1672 = vsyncpa [#allocation4 + $0x1], 1 }
 0xc5f   :  { %1673 = vsyncpa [#allocation7], 1 }
 0xc60   :  { %1674 = vsyncpa [#allocation10], 1 }
 0xc61   :  { %1675 = vsyncpa [#allocation13], 1 }
 0xc62   :  { %1676 = vsyncpa [#allocation16], 1 }
 0xc63   :  { %1677 = vsyncpa [#allocation19], 1 }
 0xc64   :  { %1678 = vsyncpa [#allocation22], 1 }
 0xc65   :  { %1680 = vsyncpa [#allocation22 + $0x1], 1 }
 0xc66   :  { %1681 = vsyncpa [#allocation5], 1 }
 0xc67   :  { %1683 = vsyncpa [#allocation5 + $0x1], 1 }

// kernel: ofa_decoder_layer.4
= control target key start
LH: loop header
LB: loop body
LE: loop exit
PB: predicated region body
PF: predicated region fallthrough
CT: control target
= control target key end

     0   :  { %s3875_s0 = inlined_call_operand.hbm [shape: f32[2,16,128], index: 0, kind: input, shape index: {}]   ;;  %s3876_s1 = inlined_call_operand.hbm [shape: f32[2,24,128], index: 1, kind: input, shape index: {}]   ;;  %s3877_s2 = inlined_call_operand.hbm [shape: f32[1,128], index: 2, kind: input, shape index: {}]   ;;  %s3878_s3 = inlined_call_operand.hbm [shape: f32[1,128], index: 3, kind: input, shape index: {}]   ;;  %s3879_s4 = inlined_call_operand.hbm [shape: bf16[128,128], index: 4, kind: input, shape index: {}]   ;;  %s3880_s5 = inlined_call_operand.hbm [shape: f32[1,128], index: 5, kind: input, shape index: {}]   ;;  %s3881_s6 = inlined_call_operand.hbm [shape: bf16[128,256], index: 6, kind: input, shape index: {}]   ;;  %s3882_s7 = inlined_call_operand.hbm [shape: f32[1,256], index: 7, kind: input, shape index: {}]   ;;  %s3883_s8 = inlined_call_operand.hbm [shape: bf16[128,128], index: 8, kind: input, shape index: {}]   ;;  %s3884_s9 = inlined_call_operand.hbm [shape: f32[1,128], index: 9, kind: input, shape index: {}]   ;;  %s3885_s10 = inlined_call_operand.hbm [shape: f32[1,128], index: 10, kind: input, shape index: {}]   ;;  %s3886_s11 = inlined_call_operand.hbm [shape: f32[1,128], index: 11, kind: input, shape index: {}]   ;;  %s3887_s12 = inlined_call_operand.hbm [shape: f32[2,1,16,24], index: 12, kind: input, shape index: {}]   ;;  %s3888_s13 = inlined_call_operand.hbm [shape: f32[2,16,128], index: 13, kind: output, shape index: {}]  }
   0x1   :  { %3928 = sst [smem:[#allocation51_spill]] %s3875_s0 }
   0x2   :  { %3929 = sst [smem:[#allocation52_spill]] %s3876_s1 }
   0x3   :  { %3930 = sst [smem:[#allocation53_spill]] %s3877_s2 }
   0x4   :  { %3931 = sst [smem:[#allocation54_spill]] %s3878_s3 }
   0x5   :  { %3932 = sst [smem:[#allocation55_spill]] %s3879_s4 }
   0x6   :  { %3933 = sst [smem:[#allocation56_spill]] %s3880_s5 }
   0x7   :  { %3934 = sst [smem:[#allocation57_spill]] %s3881_s6 }
   0x8   :  { %3935 = sst [smem:[#allocation58_spill]] %s3882_s7 }
   0x9   :  { %3936 = sst [smem:[#allocation59_spill]] %s3883_s8 }
   0xa   :  { %3937 = sst [smem:[#allocation60_spill]] %s3884_s9 }
   0xb   :  { %3938 = sst [smem:[#allocation61_spill]] %s3885_s10 }
   0xc   :  { %3939 = sst [smem:[#allocation62_spill]] %s3886_s11 }
   0xd   :  { %3940 = sst [smem:[#allocation63_spill]] %s3888_s13 }
   0xe   :  { %18 = vsyncpa [#allocation4], 0 }
   0xf   :  { %20 = vsyncpa [#allocation4 + $0x1], 0 }
  0x10   :  { %21 = vsyncpa [#allocation7], 0 }
  0x11   :  { %23 = vsyncpa [#allocation7 + $0x1], 0 }
  0x12   :  { %24 = vsyncpa [#allocation10], 0 }
  0x13   :  { %25 = vsyncpa [#allocation13], 0 }
  0x14   :  { %26 = vsyncpa [#allocation16], 0 }
  0x15   :  { %27 = vsyncpa [#allocation19], 0 }
  0x16   :  { %28 = vsyncpa [#allocation22], 0 }
  0x17   :  { %29 = vsyncpa [#allocation5], 0 }
  0x18   :  { %31 = vsyncpa [#allocation5 + $0x1], 0  ;;  %s3114_s25 = smov 0   ;;  %s3116_s26 = smov 0  }
  0x19   :  { %s3118_s27 = smov 0   ;;  %s3120_s28 = smov 0  }
  0x1a   :  { %s3122_s29 = smov 0   ;;  %s3124_s30 = smov 0  }
  0x1b   :  { %s3126_s14 = smov 0   ;;  %s3128_s15 = smov 0  }
  0x1c   :  { %s3130_s16 = smov 0   ;;  %s3132_s17 = smov 0  }
  0x1d   :  { %s3134_s18 = smov 0  }
  0x1e LB: > { %3941 = sst [smem:[#allocation35_spill]] %s2982_s26  ;;  %s3170_s19 = sadd.s32 4294967295, %s3018_s18   ;;  %s3018_s18 = sphi %s3134_s18, %s37_s18   ;;  %s3014_s17 = sphi %s3132_s17, %s4037_s17   ;;  %s3010_s16 = sphi %s3130_s16, %s4032_s16   ;;  %s3006_s15 = sphi %s3128_s15, %s4036_s15   ;;  %s3002_s14 = sphi %s3126_s14, %s4031_s14   ;;  %s2998_s30 = sphi %s3124_s30, %s4030_s30   ;;  %s2994_s29 = sphi %s3122_s29, %s4029_s29   ;;  %s2990_s28 = sphi %s3120_s28, %s4028_s28   ;;  %s2986_s27 = sphi %s3118_s27, %s4035_s27   ;;  %s2982_s26 = sphi %s3116_s26, %s4034_s26   ;;  %s2978_s25 = sphi %s3114_s25, %s4026_s25  }
  0x1f   : > { %3942 = sst [smem:[#allocation36_spill]] %s2990_s28  ;;  %p1937_p0 = scmp.ge.s32.totalorder %s3018_s18, 1 }
  0x20   : > { %3943 = sst [smem:[#allocation37_spill]] %s2994_s29  ;;  %p3895_p1 = scmp.eq.s32.totalorder %s3170_s19, 0 }
  0x21   : > { %3944 = sst [smem:[#allocation38_spill]] %s2998_s30  ;;  %p374_p2 = scmp.lt.s32.totalorder %s3018_s18, 5 }
  0x22   : > { %3945 = sst [smem:[#allocation39_spill]] %s3002_s14  ;;  %s3020_s21 = smov [#allocation8]  }
  0x23   : > { %3946 = sst [smem:[#allocation40_spill]] %s3006_s15  ;;  %p3175_p3 = pnand %p1937_p0, %p374_p2 }
  0x24   : > { %3947 = sst [smem:[#allocation41_spill]] %s3010_s16  ;;  %s387_s22 = sshll.u32 %s3020_s21, 4  ;;  %s388_s22 = int_to_ptr.vmem [resolvable:$true] %s387_s22 }
  0x25   : > { %s3948_s20 = scalar_select %p3175_p3, 1, 0 }
  0x26   : > { %p2257_p4 = pneg %p3175_p3  ;;  %s3021_s23 = smov [#allocation9]  }
  0x27   : > { %3949 = sst [smem:[#allocation42_spill]] %s3948_s20  ;;  %s398_s24 = sshll.u32 %s3021_s23, 4  ;;  %s3187_s24 = int_to_ptr.vmem [resolvable:$true] %s398_s24 }
  0x28   : > { %p3183_p5 = pnand %p2257_p4, %p3895_p1  ;;  %s3022_s15 = smov [#allocation12]  }
  0x29   : > { %s422_s14 = sshll.u32 %s3022_s15, 4  ;;  %s3951_s2 = sld [smem:[#allocation53_spill]]  ;;  %s3189_s14 = int_to_ptr.vmem [resolvable:$true] %s422_s14 }
  0x2a   : > { %s3950_s13 = scalar_select %p3183_p5, 1, 0 }
  0x2b   : > { %p3199_p7 = pneg %p3183_p5 }
  0x2f   : > { %s2494_s21 = scalar_lea.hbm %s3951_s2, 16 }
  0x30   : > { %p2495_p6 = scmp.ne.s32.totalorder %s3951_s2, %s2494_s21  ;;  %p2501_p10 = scmp.lt.u32.totalorder %s2494_s21, %s3951_s2 }
  0x32   : > { %p2497_p8 = pnand %p3199_p7, %p2495_p6 }
  0x34   : > { %p2498_p9 = pneg %p2497_p8 }
  0x36   : > { %p2503_p11 = pnand %p2501_p10, %p2498_p9 }
  0x38   : > { %2506 = shalt.err (!%p2503_p11)
}
  0x39   : > { %s2507_s1 = scalar_lea.vmem %s388_s22, 16  ;;  %s2514_s10 = scalar_lea.vmem %s388_s22, 32 }
  0x3a   : > { %p2508_p12 = scmp.ne.s32.totalorder %s388_s22, %s2507_s1  ;;  %p2515_p2 = scmp.lt.s32.totalorder %s388_s22, %s388_s22 }
  0x3b   : > { %p2516_p4 = scmp.lt.s32.totalorder %s2514_s10, %s2507_s1 }
  0x3c   : > { %p2510_p13 = pnand %p2508_p12, %p3199_p7 }
  0x3d   : > { %p2517_p1 = por %p2516_p4, %p2515_p2 }
  0x3e   : > { %p2511_p0 = pneg %p2510_p13 }
  0x40   : > { %p2518_p3 = pnand %p2517_p1, %p2511_p0 }
  0x42   : > { %2521 = shalt.err (!%p2518_p3)
}
  0x43   : > { %2260 = dma.hbm_to_vmem [thread:$0]  (!%p3183_p5), %s3951_s2, 16, %s388_s22, [#allocation7]  }
  0x44   : > { %s3953_s3 = sld [smem:[#allocation54_spill]] }
  0x4a   : > { %s2522_s15 = scalar_lea.hbm %s3953_s3, 16 }
  0x4b   : > { %p2523_p6 = scmp.ne.s32.totalorder %s3953_s3, %s2522_s15  ;;  %p2529_p1 = scmp.lt.u32.totalorder %s2522_s15, %s3953_s3 }
  0x4d   : > { %p2525_p8 = pnand %p2523_p6, %p3199_p7 }
  0x4f   : > { %p2526_p9 = pneg %p2525_p8 }
  0x51   : > { %p2531_p3 = pnand %p2529_p1, %p2526_p9 }
  0x53   : > { %2534 = shalt.err (!%p2531_p3)
}
  0x54   : > { %s2535_s22 = scalar_lea.vmem %s3187_s24, 16  ;;  %s2542_s4 = scalar_lea.vmem %s3187_s24, 32 }
  0x55   : > { %p2536_p10 = scmp.ne.s32.totalorder %s3187_s24, %s2535_s22  ;;  %p2543_p13 = scmp.lt.s32.totalorder %s3187_s24, %s3187_s24 }
  0x56   : > { %p2544_p0 = scmp.lt.s32.totalorder %s2542_s4, %s2535_s22 }
  0x57   : > { %p2538_p11 = pnand %p2536_p10, %p3199_p7 }
  0x58   : > { %p2545_p2 = por %p2544_p0, %p2543_p13 }
  0x59   : > { %p2539_p12 = pneg %p2538_p11 }
  0x5b   : > { %p2546_p4 = pnand %p2545_p2, %p2539_p12 }
  0x5d   : > { %2549 = shalt.err (!%p2546_p4)
}
  0x5e   : > { %2263 = dma.hbm_to_vmem [thread:$0]  (!%p3183_p5), %s3953_s3, 16, %s3187_s24, [#allocation10]  }
  0x5f   : > { %s3954_s5 = sld [smem:[#allocation56_spill]] }
  0x65   : > { %s2550_s21 = scalar_lea.hbm %s3954_s5, 16 }
  0x66   : > { %p2551_p6 = scmp.ne.s32.totalorder %s3954_s5, %s2550_s21  ;;  %p2557_p1 = scmp.lt.u32.totalorder %s2550_s21, %s3954_s5 }
  0x68   : > { %p2553_p8 = pnand %p2551_p6, %p3199_p7 }
  0x6a   : > { %p2554_p9 = pneg %p2553_p8 }
  0x6c   : > { %p2559_p3 = pnand %p2557_p1, %p2554_p9 }
  0x6e   : > { %2562 = shalt.err (!%p2559_p3)
}
  0x6f   : > { %s2563_s24 = scalar_lea.vmem %s3189_s14, 16  ;;  %s2570_s4 = scalar_lea.vmem %s3189_s14, 32 }
  0x70   : > { %p2564_p10 = scmp.ne.s32.totalorder %s3189_s14, %s2563_s24  ;;  %p2571_p13 = scmp.lt.s32.totalorder %s3189_s14, %s3189_s14 }
  0x71   : > { %p2572_p0 = scmp.lt.s32.totalorder %s2570_s4, %s2563_s24 }
  0x72   : > { %p2566_p11 = pnand %p2564_p10, %p3199_p7 }
  0x73   : > { %p2573_p2 = por %p2572_p0, %p2571_p13 }
  0x74   : > { %p2567_p12 = pneg %p2566_p11 }
  0x76   : > { %p2574_p4 = pnand %p2573_p2, %p2567_p12 }
  0x78   : > { %2577 = shalt.err (!%p2574_p4)
}
  0x79   : > { %2269 = dma.hbm_to_vmem [thread:$0]  (!%p3183_p5), %s3954_s5, 16, %s3189_s14, [#allocation13]  }
  0x7a   : > { %s3023_s20 = smov [#allocation15]   ;;  %s3024_s21 = smov [#allocation18]  }
  0x7b   : > { %s446_s8 = sshll.u32 %s3023_s20, 4  ;;  %s470_s15 = sshll.u32 %s3024_s21, 4  ;;  %s447_s8 = int_to_ptr.vmem [resolvable:$true] %s446_s8  ;;  %s471_s15 = int_to_ptr.vmem [resolvable:$true] %s470_s15 }
  0x7c   : > { %s3955_s7 = sld [smem:[#allocation58_spill]] }
  0x82   : > { %s2578_s22 = scalar_lea.hbm %s3955_s7, 32 }
  0x83   : > { %p2579_p6 = scmp.ne.s32.totalorder %s3955_s7, %s2578_s22  ;;  %p2585_p1 = scmp.lt.u32.totalorder %s2578_s22, %s3955_s7 }
  0x85   : > { %p2581_p8 = pnand %p2579_p6, %p3199_p7 }
  0x87   : > { %p2582_p9 = pneg %p2581_p8 }
  0x89   : > { %p2587_p3 = pnand %p2585_p1, %p2582_p9 }
  0x8b   : > { %2590 = shalt.err (!%p2587_p3)
}
  0x8c   : > { %s2591_s14 = scalar_lea.vmem %s447_s8, 32  ;;  %p2599_p13 = scmp.lt.s32.totalorder %s447_s8, %s447_s8 }
  0x8d   : > { %p2592_p10 = scmp.ne.s32.totalorder %s447_s8, %s2591_s14  ;;  %p2600_p0 = scmp.lt.s32.totalorder %s2591_s14, %s2591_s14 }
  0x8f   : > { %p2594_p11 = pnand %p2592_p10, %p3199_p7  ;;  %p2601_p2 = por %p2600_p0, %p2599_p13 }
  0x91   : > { %p2595_p12 = pneg %p2594_p11 }
  0x93   : > { %p2602_p4 = pnand %p2601_p2, %p2595_p12 }
  0x95   : > { %2605 = shalt.err (!%p2602_p4)
}
  0x96   : > { %2275 = dma.hbm_to_vmem [thread:$0]  (!%p3183_p5), %s3955_s7, 32, %s447_s8, [#allocation16]  }
  0x97   : > { %s3956_s9 = sld [smem:[#allocation60_spill]] }
  0x9d   : > { %s2606_s1 = scalar_lea.hbm %s3956_s9, 16 }
  0x9e   : > { %p2607_p6 = scmp.ne.s32.totalorder %s3956_s9, %s2606_s1  ;;  %p2613_p1 = scmp.lt.u32.totalorder %s2606_s1, %s3956_s9 }
  0xa0   : > { %p2609_p8 = pnand %p2607_p6, %p3199_p7 }
  0xa2   : > { %p2610_p9 = pneg %p2609_p8 }
  0xa4   : > { %p2615_p3 = pnand %p2613_p1, %p2610_p9 }
  0xa6   : > { %2618 = shalt.err (!%p2615_p3)
}
  0xa7   : > { %s2619_s6 = scalar_lea.vmem %s471_s15, 16  ;;  %s2626_s8 = scalar_lea.vmem %s471_s15, 32 }
  0xa8   : > { %p2620_p10 = scmp.ne.s32.totalorder %s471_s15, %s2619_s6  ;;  %p2627_p13 = scmp.lt.s32.totalorder %s471_s15, %s471_s15 }
  0xa9   : > { %p2628_p0 = scmp.lt.s32.totalorder %s2626_s8, %s2619_s6 }
  0xaa   : > { %p2622_p11 = pnand %p2620_p10, %p3199_p7 }
  0xab   : > { %p2629_p2 = por %p2628_p0, %p2627_p13 }
  0xac   : > { %p2623_p12 = pneg %p2622_p11 }
  0xae   : > { %p2630_p4 = pnand %p2629_p2, %p2623_p12 }
  0xb0   : > { %2633 = shalt.err (!%p2630_p4)
}
  0xb1   : > { %2281 = dma.hbm_to_vmem [thread:$0]  (!%p3183_p5), %s3956_s9, 16, %s471_s15, [#allocation19]  }
  0xb2   : > { %s1936_s20 = sadd.s32 4294967294, %s3018_s18   ;;  %s46_s2 = sadd.s32 1, %s3010_s16 }
  0xb3   : > { %s49_s21 = sadd.s32 1, %s3014_s17  ;;  %p47_p6 = scmp.ge.s32.totalorder %s46_s2, 2 }
  0xb4   : > { %s58_s1 = sadd.s32 1, %s2998_s30  ;;  %p3899_p8 = scmp.ne.s32.totalorder %s2998_s30, %s2994_s29 }
  0xb5   : > { %p66_p9 = scmp.eq.s32.totalorder %s3018_s18, 0  ;;  %s4039_s2 = smov (%p47_p6, %s46_s2), 0 }
  0xb6   : > { %3957 = sst [smem:[#allocation43_spill]] %s4039_s2  ;;  %s4041_s21 = smov (!%p47_p6, %s49_s21), %s3014_s17 }
  0xb7   : > { %s54_s15 = ssub.s32 %s3010_s16, %s4039_s2  ;;  %p3314_p1 = por %p66_p9, %p3899_p8 }
  0xb8   : > { %p51_p3 = scmp.ge.s32.totalorder %s4041_s21, 2  ;;  %p3900_p10 = scmp.ne.s32.totalorder %s2994_s29, %s2990_s28 }
  0xb9   : > { %s84_s22 = sadd.s32 1, %s2986_s27  ;;  %p91_p11 = scmp.ne.s32.totalorder %s2986_s27, %s2982_s26 }
  0xba   : > { %s4043_s21 = smov (%p51_p3, %s4041_s21), 0  ;;  %p3960_p12 = scmp.eq.s32.totalorder %s3170_s19, 0 }
  0xbb   : > { %3959 = sst [smem:[#allocation44_spill]] %s4043_s21  ;;  %p3334_p0 = por %p91_p11, %p66_p9 }
  0xbc   : > { %p3330_p13 = por %p3960_p12, %p3900_p10  ;;  %s53_s6 = ssub.s32 %s3014_s17, %s4043_s21 }
  0xbd   : > { %p97_p2 = scmp.ne.s32.totalorder %s2982_s26, %s2978_s25  ;;  %s55_s8 = sor.u32 %s54_s15, %s53_s6 }
  0xbe   : > { %s3961_s24 = scalar_select %p3330_p13, 1, 0 }
  0xbf   : > { %p82_p4 = scmp.eq.s32.totalorder %s53_s6, 0  ;;  %p56_p6 = scmp.eq.s32.totalorder %s55_s8, 0 }
  0xc0   : > { %3962 = sst [smem:[#allocation45_spill]] %s3961_s24  ;;  %p3964_p3 = pmov %p3960_p12 }
  0xc1   : > { %s3349_s11 = scalar_select %p82_p4, %s2986_s27, %s84_s22  }
  0xc2   : > { %p3344_p8 = por %p97_p2, %p3964_p3  ;;  %p361_p9 = scmp.eq.s32.totalorder %s3170_s19, 3 }
  0xc3   : > { %3967 = sst [smem:[#allocation47_spill]] %s3349_s11  ;;  %p367_p11 = scmp.eq.s32.totalorder %s1936_s20, 3 }
  0xc4   : > { %s3965_s14 = scalar_select %p3344_p8, 1, 0 }
  0xc5   : > { %s3352_s3 = scalar_select %p56_p6, %s2998_s30, %s58_s1  }
  0xc6   : > { %3966 = sst [smem:[#allocation46_spill]] %s3965_s14  ;;  %p2312_p12 = scmp.lt.s32.totalorder %s3018_s18, 4 }
  0xc7   : > { %3968 = sst [smem:[#allocation48_spill]] %s3352_s3  ;;  %p3969_p10 = scmp.ne.s32.totalorder %s2998_s30, %s2994_s29 }
  0xc8   : > { %p3972_p2 = scmp.ne.s32.totalorder %s2994_s29, %s2990_s28  ;;  %s505_s1 = sand.u32 1, %s2998_s30  }
  0xc9   : > { %p3360_p13 = por %p361_p9, %p3969_p10  ;;  %s3372_s6 = sshll.u32 %s505_s1, 3 }
  0xca   : > { %p3367_p3 = por %p367_p11, %p3972_p2  ;;  %s1950_s8 = sshll.u32 %s3014_s17, 1 }
  0xcb   : > { %s3970_s15 = scalar_select %p3360_p13, 1, 0 }
  0xcc   : > { %s3973_s22 = scalar_select %p3367_p3, 1, 0 }
  0xcd   : > { %3971 = sst [smem:[#allocation49_spill]] %s3970_s15  ;;  %s512_s5 = sadd.s32 %s3010_s16, %s1950_s8 }
  0xce   : > { %3974 = sst [smem:[#allocation50_spill]] %s3973_s22  ;;  %s1951_s20 = sshll.u32 %s512_s5, 7 }
  0xcf   : > { %s507_s7 = scalar_lea.vmem [#allocation3], %s3372_s6  ;;  %s3975_s0 = sld [smem:[#allocation51_spill]] }
  0xd0   : > { %s516_s9 = sshll.u32 %s507_s7, 4  ;;  %p3388_p10 = pnand %p2312_p12, %p3314_p1  ;;  %s3382_s9 = int_to_ptr.vmem [resolvable:$true] %s516_s9 }
  0xd1   : > { %p3396_p4 = pnand %p2312_p12, %p3334_p0  ;;  %s3403_s25 = scalar_lea.hbm %s3887_s12, %s1951_s20 }
  0xd2   : > { %s3976_s1 = scalar_select %p3388_p10, 1, 0 }
  0xd3   : > { %s3977_s5 = scalar_select %p3396_p4, 1, 0 }
  0xd4   : > { %s3978_s8 = sand.u32 1, %s3018_s18   ;;  %p3912_p6 = pneg %p3388_p10 }
  0xd5   : > { %s3380_s2 = scalar_lea.hbm %s3975_s0, %s1951_s20  ;;  %s3407_s10 = scalar_lea.sflag [#allocation4], %s3978_s8 }
  0xd6   : > { %s2634_s16 = scalar_lea.hbm %s3380_s2, 128  ;;  %s2639_s30 = scalar_lea.hbm %s3975_s0, 512 }
  0xd7   : > { %p2635_p1 = scmp.ne.s32.totalorder %s3380_s2, %s2634_s16  ;;  %p2640_p0 = scmp.lt.u32.totalorder %s3380_s2, %s3975_s0 }
  0xd8   : > { %p2641_p12 = scmp.lt.u32.totalorder %s2639_s30, %s2634_s16  ;;  %p2643_p3 = scmp.lt.u32.totalorder %s2634_s16, %s3380_s2 }
  0xd9   : > { %p2637_p9 = pnand %p3912_p6, %p2635_p1 }
  0xda   : > { %p2642_p2 = por %p2641_p12, %p2640_p0 }
  0xdb   : > { %p2638_p11 = pneg %p2637_p9 }
  0xdc   : > { %p2644_p13 = por %p2643_p3, %p2642_p2 }
  0xde   : > { %p2645_p8 = pnand %p2644_p13, %p2638_p11 }
  0xe0   : > { %2648 = shalt.err (!%p2645_p8)
}
  0xe1   : > { %s2649_s20 = scalar_lea.vmem %s3382_s9, 128  ;;  %s3025_s3 = smov [#allocation3]  }
  0xe2   : > { %p2650_p1 = scmp.ne.s32.totalorder %s3382_s9, %s2649_s20  ;;  %s2654_s7 = sshll.u32 %s3025_s3, 4  ;;  %s2655_s7 = int_to_ptr.vmem [resolvable:$false] %s2654_s7 }
  0xe3   : > { %s2656_s11 = scalar_lea.vmem %s2655_s7, 256  ;;  %p2657_p5 = scmp.lt.s32.totalorder %s3382_s9, %s2655_s7 }
  0xe4   : > { %p2652_p9 = pnand %p2650_p1, %p3912_p6  ;;  %p2658_p0 = scmp.lt.s32.totalorder %s2656_s11, %s2649_s20 }
  0xe6   : > { %p2653_p4 = pneg %p2652_p9  ;;  %p2659_p12 = por %p2658_p0, %p2657_p5 }
  0xe8   : > { %p2660_p3 = pnand %p2659_p12, %p2653_p4 }
  0xea   : > { %2663 = shalt.err (!%p2660_p3)
}
  0xeb   : > { %2291 = dma.hbm_to_vmem [thread:$0]  (!%p3388_p10), %s3380_s2, 128, %s3382_s9, %s3407_s10  }
  0xec   : > { %s3026_s30 = smov [#allocation11]   ;;  %s3979_s8 = sld [smem:[#allocation55_spill]] }
  0xed   : > { %s408_s16 = sshll.u32 %s3026_s30, 4  ;;  %s409_s16 = int_to_ptr.vmem [resolvable:$true] %s408_s16 }
  0xf2   : > { %s2664_s4 = scalar_lea.hbm %s3979_s8, 1024 }
  0xf3   : > { %p2665_p5 = scmp.ne.s32.totalorder %s3979_s8, %s2664_s4  ;;  %p2671_p4 = scmp.lt.u32.totalorder %s2664_s4, %s3979_s8 }
  0xf5   : > { %p2667_p8 = pnand %p2665_p5, %p3199_p7 }
  0xf7   : > { %p2668_p13 = pneg %p2667_p8 }
  0xf9   : > { %p2673_p11 = pnand %p2671_p4, %p2668_p13 }
  0xfb   : > { %2676 = shalt.err (!%p2673_p11)
}
  0xfc   : > { %s2677_s9 = scalar_lea.vmem %s409_s16, 1024  ;;  %p2685_p0 = scmp.lt.s32.totalorder %s409_s16, %s409_s16 }
  0xfd   : > { %p2678_p2 = scmp.ne.s32.totalorder %s409_s16, %s2677_s9  ;;  %p2686_p12 = scmp.lt.s32.totalorder %s2677_s9, %s2677_s9 }
  0xff   : > { %p2680_p1 = pnand %p2678_p2, %p3199_p7  ;;  %p2687_p3 = por %p2686_p12, %p2685_p0 }
 0x101   : > { %p2681_p9 = pneg %p2680_p1 }
 0x103   : > { %p2688_p6 = pnand %p2687_p3, %p2681_p9 }
 0x105   : > { %2691 = shalt.err (!%p2688_p6)
}
 0x106   : > { %s3920_s2 = smov 64   ;;  %s3921_s30 = smov 4  }
 0x107   : > { %p3980_p5 = scmp.ne.s32.totalorder %s3950_s13, 0  ;;  %s3029_s4 = smov [#allocation14]  }
 0x108   : > { %s432_s3 = sshll.u32 %s3029_s4, 4  ;;  %s3981_s11 = sld [smem:[#allocation57_spill]]  ;;  %s433_s3 = int_to_ptr.vmem [resolvable:$true] %s432_s3 }
 0x109   : > { %2266 = dma.hbm_to_vmem [thread:$0]  (!%p3980_p5), %s3979_s8, 1024, %s409_s16, [#allocation10], %s3920_s2, %s3920_s2, %s3921_s30  }
 0x10e   : > { %s2692_s9 = scalar_lea.hbm %s3981_s11, 2048 }
 0x10f   : > { %p2693_p6 = scmp.ne.s32.totalorder %s3981_s11, %s2692_s9  ;;  %p2699_p4 = scmp.lt.u32.totalorder %s2692_s9, %s3981_s11 }
 0x111   : > { %p2695_p8 = pnand %p2693_p6, %p3199_p7 }
 0x113   : > { %p2696_p13 = pneg %p2695_p8 }
 0x115   : > { %p2701_p11 = pnand %p2699_p4, %p2696_p13 }
 0x117   : > { %2704 = shalt.err (!%p2701_p11)
}
 0x118   : > { %s2705_s16 = scalar_lea.vmem %s433_s3, 2048  ;;  %p2713_p0 = scmp.lt.s32.totalorder %s433_s3, %s433_s3 }
 0x119   : > { %p2706_p2 = scmp.ne.s32.totalorder %s433_s3, %s2705_s16  ;;  %p2714_p12 = scmp.lt.s32.totalorder %s2705_s16, %s2705_s16 }
 0x11b   : > { %p2708_p1 = pnand %p2706_p2, %p3199_p7  ;;  %p2715_p3 = por %p2714_p12, %p2713_p0 }
 0x11d   : > { %p2709_p9 = pneg %p2708_p1 }
 0x11f   : > { %p2716_p10 = pnand %p2715_p3, %p2709_p9 }
 0x121   : > { %2719 = shalt.err (!%p2716_p10)
}
 0x122   : > { %s3030_s0 = smov 128   ;;  %s3031_s28 = smov 8  }
 0x123   : > { %2272 = dma.hbm_to_vmem [thread:$0]  (!%p3980_p5), %s3981_s11, 2048, %s433_s3, [#allocation13], %s3030_s0, %s3030_s0, %s3031_s28  }
 0x124   : > { %s3032_s22 = smov [#allocation17]   ;;  %s3033_s4 = smov [#allocation20]  }
 0x125   : > { %s456_s21 = sshll.u32 %s3032_s22, 4  ;;  %s481_s7 = sshll.u32 %s3033_s4, 4  ;;  %s457_s21 = int_to_ptr.vmem [resolvable:$true] %s456_s21  ;;  %s482_s7 = int_to_ptr.vmem [resolvable:$true] %s481_s7 }
 0x126   : > { %s3982_s16 = sld [smem:[#allocation59_spill]] }
 0x12c   : > { %s3983_s2 = smov %s3982_s16  ;;  %s2720_s30 = scalar_lea.hbm %s3982_s16, 1024 }
 0x12d   : > { %p2721_p10 = scmp.ne.s32.totalorder %s3983_s2, %s2720_s30  ;;  %p2727_p13 = scmp.lt.u32.totalorder %s2720_s30, %s3983_s2 }
 0x12f   : > { %p2723_p6 = pnand %p2721_p10, %p3199_p7 }
 0x131   : > { %p2724_p8 = pneg %p2723_p6 }
 0x133   : > { %p2729_p4 = pnand %p2727_p13, %p2724_p8 }
 0x135   : > { %2732 = shalt.err (!%p2729_p4)
}
 0x136   : > { %s2733_s3 = scalar_lea.vmem %s457_s21, 1024  ;;  %p2741_p9 = scmp.lt.s32.totalorder %s457_s21, %s457_s21 }
 0x137   : > { %p2734_p11 = scmp.ne.s32.totalorder %s457_s21, %s2733_s3  ;;  %p2742_p0 = scmp.lt.s32.totalorder %s2733_s3, %s2733_s3 }
 0x139   : > { %p2736_p2 = pnand %p2734_p11, %p3199_p7  ;;  %p2743_p12 = por %p2742_p0, %p2741_p9 }
 0x13b   : > { %p2737_p1 = pneg %p2736_p2 }
 0x13d   : > { %p2744_p3 = pnand %p2743_p12, %p2737_p1 }
 0x13f   : > { %2747 = shalt.err (!%p2744_p3)
}
 0x140   : > { %s3984_s26 = smov 4   ;;  %s3985_s8 = smov 64  }
 0x141   : > { %2278 = dma.hbm_to_vmem [thread:$0]  (!%p3980_p5), %s3983_s2, 1024, %s457_s21, [#allocation16], %s3985_s8, %s3985_s8, %s3984_s26  }
 0x142   : > { %s3986_s15 = sld [smem:[#allocation61_spill]] }
 0x148   : > { %s3987_s22 = smov %s3986_s15  ;;  %s2748_s4 = scalar_lea.hbm %s3986_s15, 16 }
 0x149   : > { %p2749_p10 = scmp.ne.s32.totalorder %s3987_s22, %s2748_s4  ;;  %p2755_p13 = scmp.lt.u32.totalorder %s2748_s4, %s3987_s22 }
 0x14b   : > { %p2751_p6 = pnand %p2749_p10, %p3199_p7 }
 0x14d   : > { %p2752_p8 = pneg %p2751_p6 }
 0x14f   : > { %p2757_p4 = pnand %p2755_p13, %p2752_p8 }
 0x151   : > { %2760 = shalt.err (!%p2757_p4)
}
 0x152   : > { %s2761_s29 = scalar_lea.vmem %s482_s7, 16  ;;  %s2768_s21 = scalar_lea.vmem %s482_s7, 32 }
 0x153   : > { %p2762_p11 = scmp.ne.s32.totalorder %s482_s7, %s2761_s29  ;;  %p2769_p9 = scmp.lt.s32.totalorder %s482_s7, %s482_s7 }
 0x154   : > { %p2770_p0 = scmp.lt.s32.totalorder %s2768_s21, %s2761_s29 }
 0x155   : > { %p2764_p2 = pnand %p2762_p11, %p3199_p7 }
 0x156   : > { %p2771_p12 = por %p2770_p0, %p2769_p9 }
 0x157   : > { %p2765_p1 = pneg %p2764_p2 }
 0x159   : > { %p2772_p3 = pnand %p2771_p12, %p2765_p1 }
 0x15b   : > { %2775 = shalt.err (!%p2772_p3)
}
 0x15c   : > { %2284 = dma.hbm_to_vmem [thread:$0]  (!%p3980_p5), %s3987_s22, 16, %s482_s7, [#allocation19]  }
 0x15d   : > { %s3034_s24 = smov [#allocation21]   ;;  %s525_s14 = sand.u32 1, %s2986_s27  }
 0x15e   : > { %s492_s30 = sshll.u32 %s3034_s24, 4  ;;  %s2206_s15 = smul.u32 24, %s525_s14  ;;  %s493_s30 = int_to_ptr.vmem [resolvable:$true] %s492_s30 }
 0x15f   : > { %s3988_s9 = sld [smem:[#allocation62_spill]] }
 0x165   : > { %s2776_s16 = scalar_lea.hbm %s3988_s9, 16 }
 0x166   : > { %p2777_p10 = scmp.ne.s32.totalorder %s3988_s9, %s2776_s16  ;;  %p2783_p13 = scmp.lt.u32.totalorder %s2776_s16, %s3988_s9 }
 0x168   : > { %p2779_p6 = pnand %p2777_p10, %p3199_p7 }
 0x16a   : > { %p2780_p8 = pneg %p2779_p6 }
 0x16c   : > { %p2785_p4 = pnand %p2783_p13, %p2780_p8 }
 0x16e   : > { %2788 = shalt.err (!%p2785_p4)
}
 0x16f   : > { %s2789_s7 = scalar_lea.vmem %s493_s30, 16  ;;  %s2796_s8 = scalar_lea.vmem %s493_s30, 32 }
 0x170   : > { %p2790_p11 = scmp.ne.s32.totalorder %s493_s30, %s2789_s7  ;;  %p2797_p9 = scmp.lt.s32.totalorder %s493_s30, %s493_s30 }
 0x171   : > { %p2798_p0 = scmp.lt.s32.totalorder %s2796_s8, %s2789_s7 }
 0x172   : > { %p2792_p2 = pnand %p2790_p11, %p3199_p7 }
 0x173   : > { %p2799_p12 = por %p2798_p0, %p2797_p9 }
 0x174   : > { %p2793_p1 = pneg %p2792_p2 }
 0x176   : > { %p2800_p3 = pnand %p2799_p12, %p2793_p1 }
 0x178   : > { %2803 = shalt.err (!%p2800_p3)
}
 0x179   : > { %2287 = dma.hbm_to_vmem [thread:$0]  (!%p3980_p5), %s3988_s9, 16, %s493_s30, [#allocation22]  }
 0x17a   : > { %s2207_s23 = smul.u32 384, %s3014_s17  ;;  %s527_s4 = scalar_lea.vmem [#allocation6], %s2206_s15 }
 0x17b   : > { %s534_s20 = sshll.u32 %s527_s4, 4  ;;  %s548_s16 = scalar_lea.vmem [#allocation23], %s3372_s6  ;;  %s3544_s20 = int_to_ptr.vmem [resolvable:$true] %s534_s20 }
 0x17c   : > { %s3537_s3 = sshll.u32 %s548_s16, 4  ;;  %s3989_s26 = sld [smem:[#allocation52_spill]]  ;;  %s558_s3 = int_to_ptr.vmem [resolvable:$true] %s3537_s3 }
 0x17d   : > { %s3991_s13 = sand.u32 1, %s3018_s18   ;;  %p3992_p5 = scmp.ne.s32.totalorder %s3977_s5, 0 }
 0x17e   : > { %s3548_s24 = scalar_lea.sflag [#allocation7], %s3991_s13 }
 0x17f   : > { %p2806_p10 = pneg %p3992_p5 }
 0x182   : > { %s3990_s7 = smov %s3989_s26  ;;  %s3542_s8 = scalar_lea.hbm %s3989_s26, %s2207_s23 }
 0x183   : > { %s2804_s30 = scalar_lea.hbm %s3542_s8, 384  ;;  %s2809_s14 = scalar_lea.hbm %s3990_s7, 768 }
 0x184   : > { %p2805_p7 = scmp.ne.s32.totalorder %s3542_s8, %s2804_s30  ;;  %p2810_p13 = scmp.lt.u32.totalorder %s3542_s8, %s3990_s7 }
 0x185   : > { %p2811_p4 = scmp.lt.u32.totalorder %s2809_s14, %s2804_s30  ;;  %p2813_p2 = scmp.lt.u32.totalorder %s2804_s30, %s3542_s8 }
 0x186   : > { %p2807_p6 = pnand %p2806_p10, %p2805_p7 }
 0x187   : > { %p2812_p11 = por %p2811_p4, %p2810_p13 }
 0x188   : > { %p2808_p8 = pneg %p2807_p6 }
 0x189   : > { %p2814_p1 = por %p2813_p2, %p2812_p11 }
 0x18b   : > { %p2815_p9 = pnand %p2814_p1, %p2808_p8 }
 0x18d   : > { %2818 = shalt.err (!%p2815_p9)
}
 0x18e   : > { %s2819_s16 = scalar_lea.vmem %s3544_s20, 384  ;;  %s3035_s29 = smov [#allocation6]  }
 0x18f   : > { %p2820_p0 = scmp.ne.s32.totalorder %s3544_s20, %s2819_s16  ;;  %s2824_s21 = sshll.u32 %s3035_s29, 4  ;;  %s2825_s21 = int_to_ptr.vmem [resolvable:$false] %s2824_s21 }
 0x190   : > { %s2826_s26 = scalar_lea.vmem %s2825_s21, 768  ;;  %p2827_p7 = scmp.lt.s32.totalorder %s3544_s20, %s2825_s21 }
 0x191   : > { %p2822_p12 = pnand %p2820_p0, %p2806_p10  ;;  %p2828_p6 = scmp.lt.s32.totalorder %s2826_s26, %s2819_s16 }
 0x193   : > { %p2823_p3 = pneg %p2822_p12  ;;  %p2829_p13 = por %p2828_p6, %p2827_p7 }
 0x195   : > { %p2830_p4 = pnand %p2829_p13, %p2823_p3 }
 0x197   : > { %2833 = shalt.err (!%p2830_p4)
}
 0x198   : > { %2294 = dma.hbm_to_vmem [thread:$0]  (!%p3992_p5), %s3542_s8, 384, %s3544_s20, %s3548_s24, %s3030_s0, %s3030_s0, %s3031_s28  }
 0x199   : > { %s2834_s13 = scalar_lea.hbm %s3403_s25, 128  ;;  %p3993_p8 = scmp.ne.s32.totalorder %s3976_s1, 0 }
 0x19a   : > { %p2835_p10 = scmp.ne.s32.totalorder %s3403_s25, %s2834_s13  ;;  %s2839_s6 = scalar_lea.hbm %s3887_s12, 512 }
 0x19b   : > { %p3994_p11 = pneg %p3993_p8  ;;  %p2840_p9 = scmp.lt.u32.totalorder %s3403_s25, %s3887_s12 }
 0x19c   : > { %p2841_p0 = scmp.lt.u32.totalorder %s2839_s6, %s2834_s13  ;;  %p2843_p3 = scmp.lt.u32.totalorder %s2834_s13, %s3403_s25 }
 0x19d   : > { %p2837_p2 = pnand %p2835_p10, %p3994_p11 }
 0x19e   : > { %p2842_p12 = por %p2841_p0, %p2840_p9 }
 0x19f   : > { %p2838_p1 = pneg %p2837_p2 }
 0x1a0   : > { %p2844_p7 = por %p2843_p3, %p2842_p12 }
 0x1a2   : > { %p2845_p5 = pnand %p2844_p7, %p2838_p1 }
 0x1a4   : > { %2848 = shalt.err (!%p2845_p5)
}
 0x1a5   : > { %s2849_s0 = scalar_lea.vmem %s558_s3, 128  ;;  %p3995_p13 = pmov %p3994_p11 }
 0x1a6   : > { %p2850_p6 = scmp.ne.s32.totalorder %s558_s3, %s2849_s0  ;;  %s3036_s28 = smov [#allocation23]  }
 0x1a7   : > { %s2854_s20 = sshll.u32 %s3036_s28, 4  ;;  %s2855_s20 = int_to_ptr.vmem [resolvable:$false] %s2854_s20 }
 0x1a8   : > { %p2852_p4 = pnand %p2850_p6, %p3995_p13  ;;  %s2856_s8 = scalar_lea.vmem %s2855_s20, 256 }
 0x1a9   : > { %p2857_p11 = scmp.lt.s32.totalorder %s558_s3, %s2855_s20  ;;  %p2858_p2 = scmp.lt.s32.totalorder %s2856_s8, %s2849_s0 }
 0x1aa   : > { %p2853_p10 = pneg %p2852_p4 }
 0x1ab   : > { %p2859_p0 = por %p2858_p2, %p2857_p11 }
 0x1ad   : > { %p2860_p9 = pnand %p2859_p0, %p2853_p10 }
 0x1af   : > { %2863 = shalt.err (!%p2860_p9)
}
 0x1b0   : > { %2297 = dma.hbm_to_vmem [thread:$0]  (!%p3993_p8), %s3403_s25, 128, %s558_s3, %s3407_s10  }
 0x1b1   : > { %s3996_s24 = sld [smem:[#allocation42_spill]] }
 0x1b7   : > { %p3997_p1 = scmp.ne.s32.totalorder %s3996_s24, 0 }
 0x1b8   : > { %s3998_s23 = sld [smem:[#allocation37_spill]] (!%p3997_p1)  ;;  %s3999_s4 = sld [smem:[#allocation45_spill]] (!%p3997_p1) }
 0x1b9   : > { %566 = sbr.rel (%p3997_p1) target bundleno = 2821 (0xb05), region = 72  ;;  %s568_s16 = sand.u32 (!%p3997_p1), 1, %s3170_s19  }
 0x1ba   : > { %s569_s26 = scalar_lea.sflag (!%p3997_p1), [#allocation4], %s568_s16 }
 0x1be   : > { %s570_s29 = sand.u32 (!%p3997_p1), 1, %s3998_s23   ;;  %p4000_p12 = scmp.ne.s32.totalorder (!%p3997_p1), %s3999_s4, 0 }
 0x1bf   : > { %s3606_s21 = sshll.u32 (!%p3997_p1), %s570_s29, 3 }
 0x1c0   : > { %s572_s13 = scalar_lea.vmem [#allocation3], %s3606_s21 }
 0x1c1   : > { %2937 = dma.done.wait (%p4000_p12), %s569_s26, 128  }
 0x1c2   : > { %2939 = vsyncadd (%p4000_p12), %s569_s26, 4294967168  ;;  %s4001_s1 = sld [smem:[#allocation35_spill]]  ;;  %s4002_s25 = sld [smem:[#allocation46_spill]] }
 0x1c3   : > { %s578_s5 = scalar_lea.sflag [#allocation7], %s568_s16 }
 0x1c8   : > { %s579_s10 = sand.u32 1, %s4001_s1   ;;  %p4003_p8 = scmp.ne.s32.totalorder %s4002_s25, 0 }
 0x1c9   : > { %s2208_s3 = smul.u32 24, %s579_s10 }
 0x1cb   : > { %s3614_s30 = scalar_lea.vmem [#allocation6], %s2208_s3 }
 0x1cc   : > { %2941 = dma.done.wait (%p4003_p8), %s578_s5, 384  }
 0x1cd   : > { %2943 = vsyncadd (%p4003_p8), %s578_s5, 4294966912  ;;  %p4004_p3 = scmp.eq.s32.totalorder %s3170_s19, 0 }
 0x1cf   : > { %2945 = dma.done.wait (%p4004_p3), [#allocation7], 16   ;;  %p4005_p7 = pmov %p4004_p3 }
 0x1d0   : > { %p4006_p5 = pmov %p4004_p3 }
 0x1d1   : > { %2947 = vsyncadd (%p4005_p7), [#allocation7], 4294967280 }
 0x1d2   : > { %2949 = dma.done.wait (%p4006_p5), [#allocation10], 1040   ;;  %p4007_p6 = pmov %p4004_p3 }
 0x1d3   : > { %p4008_p13 = pmov %p4004_p3 }
 0x1d4   : > { %2951 = vsyncadd (%p4007_p6), [#allocation10], 4294966256 }
 0x1d5   : > { %2953 = dma.done.wait (%p4008_p13), [#allocation13], 2064   ;;  %p4009_p4 = pmov %p4004_p3 }
 0x1d6   : > { %p4010_p10 = pmov %p4004_p3 }
 0x1d7   : > { %2955 = vsyncadd (%p4009_p4), [#allocation13], 4294965232 }
 0x1d8   : > { %2957 = dma.done.wait (%p4010_p10), [#allocation16], 1056   ;;  %p4011_p11 = pmov %p4004_p3 }
 0x1d9   : > { %p4012_p2 = pmov %p4004_p3 }
 0x1da   : > { %2959 = vsyncadd (%p4011_p11), [#allocation16], 4294966240 }
 0x1db   : > { %2961 = dma.done.wait (%p4012_p2), [#allocation19], 32   ;;  %p4013_p0 = pmov %p4012_p2 }
 0x1dd   : > { %2963 = vsyncadd (%p4013_p0), [#allocation19], 4294967264  ;;  %p4014_p9 = pmov %p4013_p0 }
 0x1de   : > { %p4015_p1 = pmov %p4013_p0 }
 0x1df   : > { %2965 = dma.done.wait (%p4014_p9), [#allocation22], 16  }
 0x1e0   : > { %2967 = vsyncadd (%p4015_p1), [#allocation22], 4294967280  ;;  %s630_s6 = scalar_lea.vmem [#allocation23], %s3606_s21 }
 0x1e1   : > { %2969 = dma.done.wait (%p4000_p12), %s569_s26, 128  }
 0x1e2   : > { %2971 = vsyncadd (%p4000_p12), %s569_s26, 4294967168  ;;  %s682_s15 = scalar_lea.vmem [#allocation24], %s3606_s21  ;;  %s4016_s14 = sld [smem:[#allocation39_spill]] }
 0x1e8   : > { %p1970_p8 = scmp.ne.s32.totalorder %s4016_s14, 0 }
 0x1e9   : > { %v2432_v0 = vld [vmem:[#allocation14 + $0x4] ss:$8 sps:$4 sm:$0xff] (!%p1970_p8)   ;;  %v2434_v1 = vld [vmem:[#allocation14] ss:$8 sps:$4 sm:$0xff] (!%p1970_p8)   ;;  %v3037_v2 = vmov (!%p1970_p8), 0   ;;  %v711_v22 = vlaneseq (!%p1970_p8) }
 0x1ea   : > { %687 = sbr.rel (%p1970_p8) target bundleno = 743 (0x2e7), region = 128  ;;  %833 = vmatprep.mubr.bf16.mxu0 (!%p1970_p8), %v3037_v2  ;;  %843 = vmatprep.mubr.bf16.mxu1 (!%p1970_p8), %v3037_v2  ;;  %v2435_v3 = vld [vmem:[#allocation14 + $0x14] ss:$8 sps:$4 sm:$0xff] (!%p1970_p8)   ;;  %v2437_v4 = vld [vmem:[#allocation14 + $0x10] ss:$8 sps:$4 sm:$0xff] (!%p1970_p8)  }
 0x1eb   : > { %801 = vmatprep.subr.bf16.mxu0 (!%p1970_p8), %v2432_v0  ;;  %2190 = vmatprep.subr.bf16.mxu1 (!%p1970_p8), %v2432_v0  ;;  %v2438_v5 = vld [vmem:[#allocation14 + $0x24] ss:$8 sps:$4 sm:$0xff] (!%p1970_p8)   ;;  %v2440_v6 = vld [vmem:[#allocation14 + $0x20] ss:$8 sps:$4 sm:$0xff] (!%p1970_p8)   ;;  %v2441_v7 = vld [vmem:[#allocation14 + $0x34] ss:$8 sps:$4 sm:$0xff] (!%p1970_p8)  }
 0x1ec   : > { %802 = vmatpush1.bf16.msra.mxu0 (!%p1970_p8), %v2434_v1  ;;  %2198 = vmatpush1.bf16.msra.mxu1 (!%p1970_p8), %v2434_v1  ;;  %v2443_v8 = vld [vmem:[#allocation14 + $0x30] ss:$8 sps:$4 sm:$0xff] (!%p1970_p8)   ;;  %v2444_v9 = vld [vmem:[#allocation14 + $0x44] ss:$8 sps:$4 sm:$0xff] (!%p1970_p8)   ;;  %v2446_v10 = vld [vmem:[#allocation14 + $0x40] ss:$8 sps:$4 sm:$0xff] (!%p1970_p8)  }
 0x1ed   : > { %803 = vmatprep.subr.bf16.mxu0 (!%p1970_p8), %v2435_v3  ;;  %2191 = vmatprep.subr.bf16.mxu1 (!%p1970_p8), %v2435_v3  ;;  %v2447_v11 = vld [vmem:[#allocation14 + $0x54] ss:$8 sps:$4 sm:$0xff] (!%p1970_p8)   ;;  %v2449_v12 = vld [vmem:[#allocation14 + $0x50] ss:$8 sps:$4 sm:$0xff] (!%p1970_p8)   ;;  %v2450_v13 = vld [vmem:[#allocation14 + $0x64] ss:$8 sps:$4 sm:$0xff] (!%p1970_p8)  }
 0x1ee   : > { %v2452_v14 = vld [vmem:[#allocation14 + $0x60] ss:$8 sps:$4 sm:$0xff] (!%p1970_p8)   ;;  %v2453_v15 = vld [vmem:[#allocation14 + $0x74] ss:$8 sps:$4 sm:$0xff] (!%p1970_p8)   ;;  %v2455_v16 = vld [vmem:[#allocation14 + $0x70] ss:$8 sps:$4 sm:$0xff] (!%p1970_p8)  }
 0x1ef   : > { %v688_v17 = vld [vmem:[%s3614_s30] sm:$0xff] (!%p1970_p8)  ;;  %v689_v18 = vld [vmem:[%s3614_s30 + $0x8] sm:$0xff] (!%p1970_p8)  ;;  %v690_v19 = vld [vmem:[%s3614_s30 + $0x10] sm:$0xff] (!%p1970_p8)  ;;  %v712_v23 = vshrl.u32 (!%p1970_p8), %v711_v22, 7 }
 0x1f0   : > { %804 = vmatpush1.bf16.msra.mxu0 (!%p1970_p8), %v2437_v4  ;;  %2199 = vmatpush1.bf16.msra.mxu1 (!%p1970_p8), %v2437_v4  ;;  %v707_v20 = vpack.c.bf16 (!%p1970_p8), %v689_v18, %v688_v17  ;;  %v708_v21 = vpack.c.bf16 (!%p1970_p8), %v690_v19, %v690_v19  ;;  %v709_v25 = vld [vmem:[#allocation15] sm:$0x3] (!%p1970_p8) }
 0x1f1   : > { %805 = vmatprep.subr.bf16.mxu0 %v2438_v5  ;;  %2192 = vmatprep.subr.bf16.mxu1 %v2438_v5  ;;  %v713_v24 = vsub.s32 0, %v712_v23  ;;  %v717_v26 = vsub.s32 1, %v712_v23 }
 0x1f3   : > { %v714_v27 = vrot.slane %v709_v25, %v713_v24  ;;  %v718_v28 = vrot.slane %v709_v25, %v717_v26 }
 0x1f4   : > { %806 = vmatpush1.bf16.msra.mxu0 %v2440_v6  ;;  %2200 = vmatpush1.bf16.msra.mxu1 %v2440_v6 }
 0x1f5   : > { %807 = vmatprep.subr.bf16.mxu0 %v2441_v7  ;;  %2193 = vmatprep.subr.bf16.mxu1 %v2441_v7 }
 0x1f8   : > { %808 = vmatpush1.bf16.msra.mxu0 %v2443_v8  ;;  %2201 = vmatpush1.bf16.msra.mxu1 %v2443_v8 }
 0x1f9   : > { %809 = vmatprep.subr.bf16.mxu0 %v2444_v9  ;;  %2194 = vmatprep.subr.bf16.mxu1 %v2444_v9 }
 0x1fc   : > { %810 = vmatpush1.bf16.msra.mxu0 %v2446_v10  ;;  %2202 = vmatpush1.bf16.msra.mxu1 %v2446_v10 }
 0x1fd   : > { %811 = vmatprep.subr.bf16.mxu0 %v2447_v11  ;;  %2195 = vmatprep.subr.bf16.mxu1 %v2447_v11 }
 0x200   : > { %812 = vmatpush1.bf16.msra.mxu0 %v2449_v12  ;;  %2203 = vmatpush1.bf16.msra.mxu1 %v2449_v12 }
 0x201   : > { %813 = vmatprep.subr.bf16.mxu0 %v2450_v13  ;;  %2196 = vmatprep.subr.bf16.mxu1 %v2450_v13 }
 0x204   : > { %814 = vmatpush1.bf16.msra.mxu0 %v2452_v14  ;;  %2204 = vmatpush1.bf16.msra.mxu1 %v2452_v14 }
 0x205   : > { %815 = vmatprep.subr.bf16.mxu0 %v2453_v15  ;;  %2197 = vmatprep.subr.bf16.mxu1 %v2453_v15 }
 0x208   : > { %816 = vmatpush1.bf16.msra.mxu0 %v2455_v16  ;;  %2205 = vmatpush1.bf16.msra.mxu1 %v2455_v16 }
 0x20b   : > { %834 = vmatmul.mubr.bf16.vlgmr.msra.gmra.mrb[0].mxu0 %v707_v20  ;;  %844 = vmatmul.mubr.bf16.vlgmr.msra.gmra.mrb[0].mxu1 %v708_v21 }
 0x2de   : > { %v835_v29 = vpop.f32.mrb[0].mxu0  ;;  %v845_v30 = vpop.f32.mrb[0].mxu1 }
 0x2df   : > { %v836_v31 = vadd.f32 %v835_v29, %v714_v27  ;;  %v846_v32 = vadd.f32 %v845_v30, %v714_v27  ;;  %v837_v33 = vpop.f32.mrb[1].mxu0  ;;  %v847_v34 = vpop.f32.mrb[1].mxu1 }
 0x2e0   : > { %v838_v35 = vadd.f32 %v837_v33, %v718_v28  ;;  %v848_v36 = vadd.f32 %v847_v34, %v718_v28  ;;  %v839_v37 = vpop.f32.mrb[2].mxu0  ;;  %v849_v38 = vpop.f32.mrb[2].mxu1 }
 0x2e1   : > { %v840_v39 = vadd.f32 %v839_v37, %v714_v27  ;;  %v841_v40 = vpop.f32.mrb[3].mxu0  ;;  %v850_v41 = vpop.f32.mrb[3].mxu1 }
 0x2e2   : > { %v2041_v42 = vpack.c.bf16 %v838_v35, %v836_v31  ;;  %v2043_v43 = vpack.c.bf16 %v848_v36, %v846_v32  ;;  %v842_v44 = vadd.f32 %v841_v40, %v718_v28 }
 0x2e4   : > { %872 = vst [vmem:[#allocation2] sm:$0xff] %v2041_v42  ;;  %874 = vst [vmem:[#allocation2 + $0x10] sm:$0xff] %v2043_v43  ;;  %v2042_v45 = vpack.c.bf16 %v842_v44, %v840_v39 }
 0x2e6   : > { %873 = vst [vmem:[#allocation2 + $0x8] sm:$0xff] %v2042_v45 }
 0x2e7 PF: > { %v3656_v46 = vld [vmem:[%s572_s13] sm:$0xff]  ;;  %v3038_v48 = vmov 0.0   ;;  %v2458_v54 = vld [vmem:[#allocation11 + $0x10] sm:$0xff]   ;;  %vm3039_vm0 = vmmov 0   ;;  %vm1066_vm1 = vcmask 261120   ;;  %s3040_s19 = smov 96  }
 0x2e8   : > { %878 = vadd.xlane.f32.xlu0 %v3656_v46  ;;  %v2456_v47 = vld [vmem:[#allocation11] sm:$0xff]   ;;  %2086 = vmatprep.subr.bf16.mxu0 %v3038_v48  ;;  %v2457_v49 = vld [vmem:[#allocation11 + $0x8] sm:$0xff]   ;;  %v2459_v55 = vld [vmem:[#allocation11 + $0x18] sm:$0xff]   ;;  %s3041_s0 = smov 64   ;;  %s3042_s28 = smov 32   ;;  %vm1336_vm2 = vcmask 1043456  }
 0x2e9   : > { %2106 = vmatprep.subr.bf16.mxu1 %v3038_v48  ;;  %2087 = vmatpush3.bf16.msra.mxu0 %v2456_v47  ;;  %v2460_v56 = vld [vmem:[#allocation11 + $0x20] sm:$0xff]   ;;  %v2461_v57 = vld [vmem:[#allocation11 + $0x28] sm:$0xff]   ;;  %v2462_v58 = vld [vmem:[#allocation11 + $0x30] sm:$0xff]   ;;  %vm1278_vm3 = vcmask 195584   ;;  %vm1549_vm4 = vcmask 523264   ;;  %vm1551_vm5 = vcmask 785408  }
 0x2ea   : > { %2088 = vmatprep.subr.bf16.mxu0 %v3038_v48  ;;  %2102 = vmatprep.mubr.msk.bf16.mxu0 %vm3039_vm0, %v3038_v48  ;;  %v2463_v59 = vld [vmem:[#allocation11 + $0x38] sm:$0xff]   ;;  %v1992_v18 = vld [vmem:[#allocation12] ss:$0 sm:$0xff]  ;;  %s4017_s20 = sld [smem:[#allocation40_spill]]  ;;  %s4018_s8 = sld [smem:[#allocation39_spill]] }
 0x2eb   : > { %2110 = vmatprep.mubr.msk.bf16.mxu1 %vm3039_vm0, %v3038_v48  ;;  %v3674_v60 = vld [vmem:[#allocation2] sm:$0xff]  ;;  %v3678_v62 = vld [vmem:[#allocation2 + $0x10] sm:$0xff]  ;;  %v1990_v7 = vld [vmem:[#allocation8] ss:$0 sm:$0xff]  ;;  %s4020_s4 = sld [smem:[#allocation49_spill]]  ;;  %s1710_s13 = sshll.u32 %s682_s15, 4  ;;  %s3811_s13 = int_to_ptr.vmem [resolvable:$true] %s1710_s13 }
 0x2ec   : > { %1031 = vrot.lane.b32.xlu1 %v3674_v60, %s3040_s19  ;;  %v2002_v1 = vcombine.low %v3678_v62, %v3678_v62  ;;  %v1991_v9 = vld [vmem:[#allocation9] ss:$0 sm:$0xff]  ;;  %s4021_s10 = sld [smem:[#allocation63_spill]]  ;;  %s1695_s5 = scalar_lea.sflag [#allocation5], %s570_s29 }
 0x2ed   : > { %2089 = vmatpush3.bf16.msra.mxu0 %v2457_v49  ;;  %v3676_v61 = vld [vmem:[#allocation2 + $0x8] sm:$0xff]  ;;  %s2864_s30 = scalar_lea.vmem %s3811_s13, 128 }
 0x2ee   : > { %2090 = vmatprep.subr.bf16.mxu0 %v3038_v48  ;;  %v2001_v63 = vcombine.low %v3674_v60, %v3676_v61  ;;  %v1074_v2 = vsel %vm1066_vm1, %v2002_v1, 0  ;;  %p2865_p12 = scmp.ne.s32.totalorder %s3811_s13, %s2864_s30 }
 0x2f0   : > { %v1071_v0 = vsel %vm1066_vm1, %v2001_v63, 0  ;;  %1033 = vrot.lane.b32.xlu1 %v3676_v61, %s3040_s19  ;;  %s2037_s23 = sshll.u32 %s4017_s20, 1 }
 0x2f1   : > { %2091 = vmatpush3.bf16.msra.mxu0 %v2458_v54  ;;  %2107 = vmatpush3.bf16.xpose.msra.mxu1 %v1071_v0  ;;  %s1706_s16 = sadd.s32 %s4018_s8, %s2037_s23  ;;  %p4022_p3 = scmp.ne.s32.totalorder %s4020_s4, 0 }
 0x2f2   : > { %2092 = vmatprep.subr.bf16.mxu0 %v3038_v48  ;;  %2108 = vmatprep.subr.bf16.mxu1 %v3038_v48  ;;  %s2038_s26 = sshll.u32 %s1706_s16, 7 }
 0x2f3   : > { %s3809_s3 = scalar_lea.hbm %s4021_s10, %s2038_s26  ;;  %p2866_p7 = pnand %p2865_p12, %p4022_p3 }
 0x2f4   : > { %1037 = vrot.lane.b32.xlu1 %v3674_v60, %s3041_s0 }
 0x2f5   : > { %2093 = vmatpush3.bf16.msra.mxu0 %v2459_v55  ;;  %v1019_v55 = vld [vmem:[%s630_s6] sm:$0xff]  ;;  %p2867_p5 = pneg %p2866_p7  ;;  %s3043_s6 = smov [#allocation24]  }
 0x2f6   : > { %2094 = vmatprep.subr.bf16.mxu0 %v3038_v48  ;;  %s2868_s14 = sshll.u32 %s3043_s6, 4  ;;  %s2869_s14 = int_to_ptr.vmem [resolvable:$false] %s2868_s14 }
 0x2f7   : > { %p2871_p6 = scmp.lt.s32.totalorder %s3811_s13, %s2869_s14 }
 0x2f8   : > { %1039 = vrot.lane.b32.xlu1 %v3676_v61, %s3041_s0 }
 0x2f9   : > { %2095 = vmatpush3.bf16.msra.mxu0 %v2460_v56  ;;  %2109 = vmatpush3.bf16.xpose.msra.mxu1 %v1074_v2 }
 0x2fa   : > { %2096 = vmatprep.subr.bf16.mxu0 %v3038_v48  ;;  %2114 = vmatprep.subr.bf16.mxu1 %v3038_v48 }
 0x2fd   : > { %2097 = vmatpush3.bf16.msra.mxu0 %v2461_v57 }
 0x2fe   : > { %2098 = vmatprep.subr.bf16.mxu0 %v3038_v48 }
 0x301   : > { %2099 = vmatpush3.bf16.msra.mxu0 %v2462_v58 }
 0x302   : > { %2100 = vmatprep.subr.bf16.mxu0 %v3038_v48 }
 0x305   : > { %2101 = vmatpush3.bf16.msra.mxu0 %v2463_v59 }
 0x306   : > { %2138 = vmatprep.subr.bf16.mxu0 %v3038_v48 }
 0x35e   : > { %v1032_v13 = vpop.permute.xlu1 %1031 }
 0x35f   : > { %v1052_v14 = vrot.slane %v1032_v13, 4 }
 0x362   : > { %v1034_v15 = vpop.permute.xlu1 %1033 }
 0x363   : > { %v1053_v16 = vrot.slane %v1034_v15, 4  ;;  %v2004_v20 = vcombine.low %v1032_v13, %v1034_v15 }
 0x365   : > { %v2016_v17 = vcombine.low %v1052_v14, %v1053_v16  ;;  %v1125_v26 = vsel %vm1066_vm1, %v2004_v20, 0 }
 0x366   : > { %v3718_v30 = vpop.permute.xlu1 %1037 }
 0x36a   : > { %v3720_v31 = vpop.permute.xlu1 %1039 }
 0x36b   : > { %v2007_v32 = vcombine.low %v3718_v30, %v3720_v31 }
 0x36d   : > { %v1179_v34 = vsel %vm1066_vm1, %v2007_v32, 0 }
 0x375   : > { %v879_v50 = vpop.xlane.xlu0 %878 }
 0x376   : > { %v881_v51 = vmul.f32 0.0078125, %v879_v50 }
 0x378   : > { %v882_v52 = vsub.f32 %v3656_v46, %v881_v51 }
 0x37a   : > { %v883_v53 = vmul.f32 %v882_v52, %v882_v52 }
 0x37c   : > { %884 = vadd.xlane.f32.xlu0 %v883_v53 }
 0x392   : > { %1035 = vrot.lane.b32.xlu0 %v3678_v62, %s3040_s19 }
 0x409   : > { %v885_v3 = vpop.xlane.xlu0 %884 }
 0x40a   : > { %v886_v4 = vmul.f32 0.0078125, %v885_v3 }
 0x40c   : > { %v887_v5 = vadd.f32 1e-05, %v886_v4 }
 0x40d   : > { %v1036_v27 = vpop.permute.xlu0 %1035 }
 0x40e   : > { %2474 = vrsqrt.f32 %v887_v5  ;;  %v2005_v28 = vcombine.low %v1036_v27, %v1036_v27  ;;  %v1054_v51 = vrot.slane %v1036_v27, 4  ;;  %v1051_v27 = vrot.slane %v3678_v62, 4 }
 0x410   : > { %v1128_v29 = vsel %vm1066_vm1, %v2005_v28, 0  ;;  %v2017_v53 = vcombine.low %v1054_v51, %v1054_v51  ;;  %v2014_v28 = vcombine.low %v1051_v27, %v1051_v27  ;;  %v1055_v51 = vrot.slane %v3718_v30, 4  ;;  %v2473_v27 = vld [vmem:[#allocation17 + $0x38] sm:$0xff]  }
 0x412   : > { %v1390_v54 = vsel %vm1336_vm2, %v2017_v53, 0 }
 0x418   : > { %v2475_v6 = vpop.eup %2474 }
 0x419   : > { %v889_v8 = vmul.f32 %v2475_v6, %v882_v52 }
 0x41b   : > { %v896_v10 = vmul.f32 %v1990_v7, %v889_v8 }
 0x41d   : > { %v903_v11 = vadd.f32 %v1991_v9, %v896_v10 }
 0x41f   : > { %v920_v12 = vpack.c.bf16 %v903_v11, %v903_v11 }
 0x421   : > { %2103 = vmatmul.mubr.bf16.vlgmr.msra.gmra.mrb[0].mxu0 %v920_v12 }
 0x422   : > { %2142 = vmatprep.mubr.msk.bf16.mxu0 %vm3039_vm0, %v3038_v48 }
 0x4f4   : > { %v1010_v19 = vpop.f32.mrb[0].mxu0 }
 0x4f5   : > { %v1011_v21 = vadd.f32 %v1992_v18, %v1010_v19  ;;  %v2104_v22 = vpop.f32.mrb[1].mxu0 }
 0x4f6   : > { %v1013_v23 = vpop.f32.mrb[2].mxu0 }
 0x4f7   : > { %v1020_v24 = vpack.c.bf16 %v1011_v21, %v1011_v21  ;;  %v2105_v25 = vpop.f32.mrb[3].mxu0 }
 0x4f8   : > { %v1050_v25 = vrot.slane %v3676_v61, 4 }
 0x4f9   : > { %1024 = vrot.lane.b32.xlu0 %v1020_v24, %s3041_s0  ;;  %1022 = vrot.lane.b32.xlu1 %v1020_v24, %s3040_s19 }
 0x4fa   : > { %2111 = vmatmul.mubr.msk.bf16.vlgmr.msra.gmra.mrb[0].mxu1 %vm1066_vm1, %v1020_v24 }
 0x4fb   : > { %2115 = vmatpush3.bf16.xpose.msra.mxu1 %v1125_v26  ;;  %2118 = vmatprep.mubr.msk.bf16.mxu1 %vm3039_vm0, %v3038_v48 }
 0x4fc   : > { %2116 = vmatprep.subr.bf16.mxu1 %v3038_v48 }
 0x4fd   : > { %1026 = vrot.lane.b32.xlu0 %v1020_v24, %s3042_s28  ;;  %1041 = vrot.lane.b32.xlu1 %v3678_v62, %s3041_s0  ;;  %v1049_v24 = vrot.slane %v3674_v60, 4 }
 0x4ff   : > { %v2013_v26 = vcombine.low %v1049_v24, %v1050_v25 }
 0x501   : > { %1043 = vrot.lane.b32.xlu1 %v3674_v60, %s3042_s28  ;;  %2139 = vmatpush3.bf16.msra.mxu0 %v2013_v26 }
 0x502   : > { %2140 = vmatprep.subr.bf16.mxu0 %v3038_v48 }
 0x503   : > { %2117 = vmatpush3.bf16.xpose.msra.mxu1 %v1128_v29  ;;  %v1338_v29 = vsel %vm1336_vm2, %v2014_v28, 0 }
 0x504   : > { %2122 = vmatprep.subr.bf16.mxu1 %v3038_v48 }
 0x505   : > { %1045 = vrot.lane.b32.xlu1 %v3676_v61, %s3042_s28  ;;  %2141 = vmatpush3.bf16.msra.mxu0 %v1338_v29 }
 0x506   : > { %2154 = vmatprep.subr.bf16.mxu0 %v3038_v48 }
 0x509   : > { %1047 = vrot.lane.b32.xlu1 %v3678_v62, %s3042_s28 }
 0x56b   : > { %v1023_v33 = vpop.permute.xlu1 %1022  ;;  %v1025_v45 = vpop.permute.xlu0 %1024 }
 0x56c   : > { %2119 = vmatmul.mubr.msk.bf16.vlgmr.msra.gmra.mrb[4].mxu1 %vm1066_vm1, %v1023_v33 }
 0x56d   : > { %2123 = vmatpush3.bf16.xpose.msra.mxu1 %v1179_v34  ;;  %2126 = vmatprep.mubr.msk.bf16.mxu1 %vm3039_vm0, %v3038_v48 }
 0x56e   : > { %2124 = vmatprep.subr.bf16.mxu1 %v3038_v48 }
 0x56f   : > { %v3729_v35 = vpop.permute.xlu1 %1041  ;;  %v1027_v52 = vpop.permute.xlu0 %1026 }
 0x570   : > { %v2008_v36 = vcombine.low %v3729_v35, %v3729_v35  ;;  %v1057_v53 = vrot.slane %v3729_v35, 4 }
 0x572   : > { %v1182_v37 = vsel %vm1066_vm1, %v2008_v36, 0 }
 0x573   : > { %v1044_v38 = vpop.permute.xlu1 %1043 }
 0x574   : > { %v1058_v40 = vrot.slane %v1044_v38, 4 }
 0x575   : > { %2125 = vmatpush3.bf16.xpose.msra.mxu1 %v1182_v37 }
 0x576   : > { %2130 = vmatprep.subr.bf16.mxu1 %v3038_v48 }
 0x577   : > { %v1046_v39 = vpop.permute.xlu1 %1045 }
 0x578   : > { %v1059_v41 = vrot.slane %v1046_v39, 4  ;;  %v2010_v42 = vcombine.low %v1044_v38, %v1046_v39 }
 0x57a   : > { %v3735_v43 = vcombine.low %v1058_v40, %v1059_v41  ;;  %v1233_v44 = vsel %vm1066_vm1, %v2010_v42, 0 }
 0x57b   : > { %v3738_v47 = vpop.permute.xlu1 %1047 }
 0x57c   : > { %2127 = vmatmul.mubr.msk.bf16.vlgmr.msra.gmra.mrb[8].mxu1 %vm1066_vm1, %v1025_v45  ;;  %v2011_v49 = vcombine.low %v3738_v47, %v3738_v47  ;;  %v1060_v35 = vrot.slane %v3738_v47, 4 }
 0x57d   : > { %2131 = vmatpush3.bf16.xpose.msra.mxu1 %v1233_v44  ;;  %2134 = vmatprep.mubr.msk.bf16.mxu1 %vm3039_vm0, %v3038_v48 }
 0x57e   : > { %2132 = vmatprep.subr.bf16.mxu1 %v3038_v48  ;;  %v1236_v50 = vsel %vm1066_vm1, %v2011_v49, 0 }
 0x585   : > { %2133 = vmatpush3.bf16.xpose.msra.mxu1 %v1236_v50 }
 0x586   : > { %2146 = vmatprep.subr.bf16.mxu1 %v3038_v48 }
 0x58c   : > { %2135 = vmatmul.mubr.msk.bf16.vlgmr.msra.gmra.mrb[12].mxu1 %vm1066_vm1, %v1027_v52  ;;  %v1056_v52 = vrot.slane %v3720_v31, 4 }
 0x58d   : > { %2147 = vmatpush3.bf16.msra.mxu1 %v2016_v17  ;;  %2150 = vmatprep.mubr.msk.bf16.mxu1 %vm3039_vm0, %v3038_v48 }
 0x58e   : > { %2148 = vmatprep.subr.bf16.mxu1 %v3038_v48 }
 0x591   : > { %2149 = vmatpush3.bf16.msra.mxu1 %v1390_v54 }
 0x592   : > { %2162 = vmatprep.subr.bf16.mxu1 %v3038_v48 }
 0x5cd   : > { %v1110_v56 = vpop.f32.mrb[0].mxu1 }
 0x5ce   : > { %v1111_v57 = vadd.f32 %v1110_v56, %v1019_v55  ;;  %v2112_v58 = vpop.f32.mrb[1].mxu1  ;;  %v2019_v56 = vcombine.low %v1055_v51, %v1056_v52 }
 0x5cf   : > { %v1113_v59 = vpop.f32.mrb[2].mxu1 }
 0x5d0   : > { %v2113_v63 = vpop.f32.mrb[3].mxu1  ;;  %v1279_v0 = vsel %vm1278_vm3, %v1111_v57, -inf }
 0x5d1   : > { %1280 = vmax.xlane.f32.xlu1 %v1279_v0  ;;  %v2023_v0 = vcombine.low %v1060_v35, %v1060_v35 }
 0x63f   : > { %v1164_v1 = vpop.f32.mrb[4].mxu1 }
 0x640   : > { %v1165_v2 = vadd.f32 %v1164_v1, %v1019_v55  ;;  %v2120_v3 = vpop.f32.mrb[5].mxu1 }
 0x641   : > { %v1167_v4 = vpop.f32.mrb[6].mxu1 }
 0x642   : > { %v2121_v5 = vpop.f32.mrb[7].mxu1  ;;  %v1282_v6 = vsel %vm1278_vm3, %v1165_v2, -inf }
 0x643   : > { %1283 = vmax.xlane.f32.xlu0 %v1282_v6 }
 0x64f   : > { %v1218_v7 = vpop.f32.mrb[8].mxu1 }
 0x650   : > { %v1219_v8 = vadd.f32 %v1218_v7, %v1019_v55  ;;  %v2128_v9 = vpop.f32.mrb[9].mxu1 }
 0x651   : > { %v1221_v10 = vpop.f32.mrb[10].mxu1 }
 0x652   : > { %v2129_v11 = vpop.f32.mrb[11].mxu1  ;;  %v1285_v12 = vsel %vm1278_vm3, %v1219_v8, -inf }
 0x653   : > { %1286 = vmax.xlane.f32.xlu0 %v1285_v12  ;;  %v2466_v12 = vld [vmem:[#allocation17] sm:$0xff]  }
 0x65e   : > { %v1281_v13 = vpop.xlane.xlu1 %1280 }
 0x65f   : > { %v1291_v14 = vsub.f32 %v1111_v57, %v1281_v13  ;;  %v1272_v15 = vpop.f32.mrb[12].mxu1  ;;  %v2020_v57 = vcombine.low %v1057_v53, %v1057_v53  ;;  %v2467_v13 = vld [vmem:[#allocation17 + $0x8] sm:$0xff]  }
 0x660   : > { %v1273_v16 = vadd.f32 %v1272_v15, %v1019_v55  ;;  %v2136_v17 = vpop.f32.mrb[13].mxu1 }
 0x661   : > { %v1295_v18 = vmul.f32 1.442695, %v1291_v14  ;;  %v1275_v19 = vpop.f32.mrb[14].mxu1  ;;  %v1442_v58 = vsel %vm1336_vm2, %v2020_v57, 0  ;;  %v2468_v14 = vld [vmem:[#allocation17 + $0x10] sm:$0xff]  }
 0x662   : > { %v2137_v20 = vpop.f32.mrb[15].mxu1  ;;  %v1288_v21 = vsel %vm1278_vm3, %v1273_v16, -inf  ;;  %v2469_v19 = vld [vmem:[#allocation17 + $0x18] sm:$0xff]  }
 0x663   : > { %2476 = vpow2.f32 %v1295_v18  ;;  %1289 = vmax.xlane.f32.xlu1 %v1288_v21  ;;  %v2470_v20 = vld [vmem:[#allocation17 + $0x20] sm:$0xff]   ;;  %v2471_v21 = vld [vmem:[#allocation17 + $0x28] sm:$0xff]  }
 0x66d   : > { %v2477_v22 = vpop.eup %2476 }
 0x66e   : > { %v1303_v23 = vsel %vm1278_vm3, %v2477_v22, 0.0 }
 0x66f   : > { %1304 = vadd.xlane.f32.xlu0 %v1303_v23 }
 0x6d0   : > { %v1284_v32 = vpop.xlane.xlu0 %1283 }
 0x6d1   : > { %v1292_v33 = vsub.f32 %v1165_v2, %v1284_v32  ;;  %v1494_v2 = vsel %vm1336_vm2, %v2023_v0, 0 }
 0x6d3   : > { %v1297_v34 = vmul.f32 1.442695, %v1292_v33 }
 0x6d5   : > { %2478 = vpow2.f32 %v1297_v34 }
 0x6df   : > { %v2479_v36 = vpop.eup %2478 }
 0x6e0   : > { %v1287_v60 = vpop.xlane.xlu0 %1286  ;;  %v1306_v61 = vsel %vm1278_vm3, %v2479_v36, 0.0 }
 0x6e1   : > { %v1293_v37 = vsub.f32 %v1219_v8, %v1287_v60  ;;  %1307 = vadd.xlane.f32.xlu1 %v1306_v61 }
 0x6e3   : > { %v1299_v62 = vmul.f32 1.442695, %v1293_v37 }
 0x6e5   : > { %2480 = vpow2.f32 %v1299_v62 }
 0x6ef   : > { %v2481_v38 = vpop.eup %2480 }
 0x6f0   : > { %v1290_v39 = vpop.xlane.xlu1 %1289  ;;  %v1309_v40 = vsel %vm1278_vm3, %v2481_v38, 0.0 }
 0x6f1   : > { %v1294_v41 = vsub.f32 %v1273_v16, %v1290_v39  ;;  %1310 = vadd.xlane.f32.xlu0 %v1309_v40 }
 0x6f3   : > { %v1301_v42 = vmul.f32 1.442695, %v1294_v41 }
 0x6f5   : > { %2482 = vpow2.f32 %v1301_v42 }
 0x6fc   : > { %v1305_v44 = vpop.xlane.xlu0 %1304 }
 0x6fd   : > { %2484 = vrcp.f32 %v1305_v44 }
 0x6ff   : > { %v2483_v45 = vpop.eup %2482 }
 0x700   : > { %v1312_v49 = vsel %vm1278_vm3, %v2483_v45, 0.0 }
 0x701   : > { %1313 = vadd.xlane.f32.xlu1 %v1312_v49 }
 0x707   : > { %v2485_v50 = vpop.eup %2484 }
 0x708   : > { %v1319_v54 = vmul.f32 %v2485_v50, %v2477_v22  ;;  %v2472_v22 = vld [vmem:[#allocation17 + $0x30] sm:$0xff]  }
 0x70a   : > { %v1323_v55 = vpack.c.bf16 %v1319_v54, %v1319_v54 }
 0x70c   : > { %2143 = vmatmul.mubr.msk.bf16.vlgmr.msra.gmra.mrb[4].mxu0 %vm1278_vm3, %v1323_v55 }
 0x70d   : > { %2155 = vmatpush3.bf16.msra.mxu0 %v2019_v56  ;;  %2158 = vmatprep.mubr.msk.bf16.mxu0 %vm3039_vm0, %v3038_v48  ;;  %v2034_v56 = vld [vmem:[#allocation20] ss:$0 sm:$0xff] }
 0x70e   : > { %2156 = vmatprep.subr.bf16.mxu0 %v3038_v48 }
 0x711   : > { %2157 = vmatpush3.bf16.msra.mxu0 %v1442_v58  ;;  %v2035_v58 = vld [vmem:[#allocation21] ss:$0 sm:$0xff] }
 0x712   : > { %2170 = vmatprep.subr.bf16.mxu0 %v3038_v48 }
 0x76e   : > { %v1308_v30 = vpop.xlane.xlu1 %1307 }
 0x76f   : > { %2486 = vrcp.f32 %v1308_v30 }
 0x779   : > { %v2487_v31 = vpop.eup %2486 }
 0x77a   : > { %v1320_v59 = vmul.f32 %v2487_v31, %v2479_v36 }
 0x77c   : > { %v1324_v63 = vpack.c.bf16 %v1320_v59, %v1320_v59 }
 0x77e   : > { %v1311_v1 = vpop.xlane.xlu0 %1310  ;;  %2151 = vmatmul.mubr.msk.bf16.vlgmr.msra.gmra.mrb[16].mxu1 %vm1278_vm3, %v1324_v63 }
 0x77f   : > { %2488 = vrcp.f32 %v1311_v1  ;;  %2163 = vmatpush3.bf16.msra.mxu1 %v3735_v43  ;;  %2166 = vmatprep.mubr.msk.bf16.mxu1 %vm3039_vm0, %v3038_v48 }
 0x780   : > { %2164 = vmatprep.subr.bf16.mxu1 %v3038_v48 }
 0x783   : > { %2165 = vmatpush3.bf16.msra.mxu1 %v1494_v2 }
 0x789   : > { %v2489_v3 = vpop.eup %2488 }
 0x78a   : > { %v1321_v4 = vmul.f32 %v2489_v3, %v2481_v38 }
 0x78c   : > { %v1325_v47 = vpack.c.bf16 %v1321_v4, %v1321_v4 }
 0x78e   : > { %v1314_v5 = vpop.xlane.xlu1 %1313  ;;  %2159 = vmatmul.mubr.msk.bf16.vlgmr.msra.gmra.mrb[8].mxu0 %vm1278_vm3, %v1325_v47 }
 0x78f   : > { %2490 = vrcp.f32 %v1314_v5  ;;  %2186 = vmatprep.mubr.msk.bf16.mxu0 %vm3039_vm0, %v3038_v48  ;;  %2171 = vmatpush3.bf16.msra.mxu0 %v2466_v12 }
 0x790   : > { %2172 = vmatprep.subr.bf16.mxu0 %v3038_v48 }
 0x793   : > { %2173 = vmatpush3.bf16.msra.mxu0 %v2467_v13 }
 0x794   : > { %2174 = vmatprep.subr.bf16.mxu0 %v3038_v48 }
 0x797   : > { %2175 = vmatpush3.bf16.msra.mxu0 %v2468_v14 }
 0x798   : > { %2176 = vmatprep.subr.bf16.mxu0 %v3038_v48 }
 0x799   : > { %v2491_v6 = vpop.eup %2490 }
 0x79a   : > { %v1322_v43 = vmul.f32 %v2491_v6, %v2483_v45 }
 0x79b   : > { %2177 = vmatpush3.bf16.msra.mxu0 %v2469_v19 }
 0x79c   : > { %v1326_v7 = vpack.c.bf16 %v1322_v43, %v1322_v43  ;;  %2178 = vmatprep.subr.bf16.mxu0 %v3038_v48 }
 0x79e   : > { %2167 = vmatmul.mubr.msk.bf16.vlgmr.msra.gmra.mrb[20].mxu1 %vm1278_vm3, %v1326_v7 }
 0x79f   : > { %2179 = vmatpush3.bf16.msra.mxu0 %v2470_v20 }
 0x7a0   : > { %2180 = vmatprep.subr.bf16.mxu0 %v3038_v48 }
 0x7a3   : > { %2181 = vmatpush3.bf16.msra.mxu0 %v2471_v21 }
 0x7a4   : > { %2182 = vmatprep.subr.bf16.mxu0 %v3038_v48 }
 0x7a7   : > { %2183 = vmatpush3.bf16.msra.mxu0 %v2472_v22 }
 0x7a8   : > { %2184 = vmatprep.subr.bf16.mxu0 %v3038_v48  ;;  %v2025_v48 = vld [vmem:[#allocation18] ss:$0 sm:$0xff] }
 0x7ab   : > { %2185 = vmatpush3.bf16.msra.mxu0 %v2473_v27 }
 0x7df   : > { %v1374_v8 = vpop.f32.mrb[4].mxu0 }
 0x7e0   : > { %v2144_v9 = vpop.f32.mrb[5].mxu0 }
 0x7e1   : > { %v1377_v10 = vpop.f32.mrb[6].mxu0 }
 0x7e2   : > { %v2145_v11 = vpop.f32.mrb[7].mxu0 }
 0x851   : > { %v1426_v15 = vpop.f32.mrb[16].mxu1 }
 0x852   : > { %v2152_v16 = vpop.f32.mrb[17].mxu1  ;;  %1537 = vrot.lane.b32.xlu0 %v1426_v15, %s3042_s28 }
 0x853   : > { %v1429_v17 = vpop.f32.mrb[18].mxu1 }
 0x854   : > { %v2153_v18 = vpop.f32.mrb[19].mxu1 }
 0x861   : > { %v1478_v23 = vpop.f32.mrb[8].mxu0 }
 0x862   : > { %1541 = vrot.lane.b32.xlu1 %v1478_v23, %s3041_s0  ;;  %v2160_v24 = vpop.f32.mrb[9].mxu0 }
 0x863   : > { %v1481_v25 = vpop.f32.mrb[10].mxu0 }
 0x864   : > { %v2161_v26 = vpop.f32.mrb[11].mxu0 }
 0x871   : > { %v1530_v28 = vpop.f32.mrb[20].mxu1 }
 0x872   : > { %v2168_v29 = vpop.f32.mrb[21].mxu1  ;;  %1545 = vrot.lane.b32.xlu1 %v1530_v28, %s3040_s19  ;;  %s2870_s19 = scalar_lea.vmem %s2869_s14, 256 }
 0x873   : > { %v1533_v32 = vpop.f32.mrb[22].mxu1  ;;  %p2872_p13 = scmp.lt.s32.totalorder %s2870_s19, %s2864_s30 }
 0x874   : > { %v2169_v33 = vpop.f32.mrb[23].mxu1 }
 0x875   : > { %p2873_p4 = por %p2872_p13, %p2871_p6 }
 0x877   : > { %p2874_p10 = pnand %p2873_p4, %p2867_p5 }
 0x8c4   : > { %v1538_v34 = vpop.permute.xlu0 %1537 }
 0x8c5   : > { %v1548_v60 = vsel %vm1066_vm1, %v1374_v8, %v1538_v34 }
 0x8d4   : > { %v1542_v36 = vpop.permute.xlu1 %1541 }
 0x8d5   : > { %v1550_v61 = vsel %vm1549_vm4, %v1548_v60, %v1542_v36 }
 0x8e4   : > { %v1546_v37 = vpop.permute.xlu1 %1545 }
 0x8e5   : > { %v1552_v62 = vsel %vm1551_vm5, %v1550_v61, %v1546_v37 }
 0x8e6   : > { %v1569_v38 = vpack.c.bf16 %v1552_v62, %v1552_v62 }
 0x8e8   : > { %2187 = vmatmul.mubr.bf16.vlgmr.msra.gmra.mrb[12].mxu0 %v1569_v38 }
 0x9bb   : > { %v1659_v39 = vpop.f32.mrb[12].mxu0 }
 0x9bc   : > { %v1660_v40 = vadd.f32 %v2025_v48, %v1659_v39  ;;  %v2188_v41 = vpop.f32.mrb[13].mxu0 }
 0x9bd   : > { %v1662_v42 = vpop.f32.mrb[14].mxu0 }
 0x9be   : > { %1667 = vadd.xlane.f32.xlu0 %v1660_v40  ;;  %v2189_v44 = vpop.f32.mrb[15].mxu0 }
 0xa4b   : > { %v1668_v45 = vpop.xlane.xlu0 %1667 }
 0xa4c   : > { %v1669_v49 = vmul.f32 0.0078125, %v1668_v45 }
 0xa4e   : > { %v1670_v50 = vsub.f32 %v1660_v40, %v1669_v49 }
 0xa50   : > { %v1671_v51 = vmul.f32 %v1670_v50, %v1670_v50 }
 0xa52   : > { %1672 = vadd.xlane.f32.xlu1 %v1671_v51 }
 0xadf   : > { %v1673_v52 = vpop.xlane.xlu1 %1672 }
 0xae0   : > { %v1674_v53 = vmul.f32 0.0078125, %v1673_v52 }
 0xae2   : > { %v1675_v54 = vadd.f32 1e-05, %v1674_v53 }
 0xae4   : > { %2492 = vrsqrt.f32 %v1675_v54 }
 0xaee   : > { %v2493_v55 = vpop.eup %2492 }
 0xaef   : > { %v1677_v57 = vmul.f32 %v2493_v55, %v1670_v50 }
 0xaf1   : > { %v1684_v30 = vmul.f32 %v2034_v56, %v1677_v57 }
 0xaf3   : > { %v1691_v31 = vadd.f32 %v2035_v58, %v1684_v30 }
 0xaf5   : > { %v1692_v35 = vadd.f32 %v1691_v31, %v3656_v46 }
 0xaf7   : > { %1693 = vst [vmem:[%s682_s15] sm:$0xff] %v1692_v35 }
 0xaf8   : > { %2877 = shalt.err (!%p2874_p10)
}
 0xaf9   : > { %s2878_s29 = scalar_lea.hbm %s3809_s3, 128  ;;  %s2882_s0 = scalar_lea.hbm %s4021_s10, 512 }
 0xafa   : > { %p2879_p11 = scmp.ne.s32.totalorder %s3809_s3, %s2878_s29  ;;  %p2883_p9 = scmp.lt.u32.totalorder %s3809_s3, %s4021_s10 }
 0xafb   : > { %p2884_p1 = scmp.lt.u32.totalorder %s2882_s0, %s2878_s29  ;;  %p2886_p12 = scmp.lt.u32.totalorder %s2878_s29, %s3809_s3 }
 0xafc   : > { %p2880_p2 = pnand %p2879_p11, %p4022_p3 }
 0xafd   : > { %p2885_p8 = por %p2884_p1, %p2883_p9 }
 0xafe   : > { %p2881_p0 = pneg %p2880_p2 }
 0xaff   : > { %p2887_p7 = por %p2886_p12, %p2885_p8 }
 0xb01   : > { %p2888_p5 = pnand %p2887_p7, %p2881_p0 }
 0xb03   : > { %2891 = shalt.err (!%p2888_p5)
}
 0xb04   : > { %2255 = dma.vmem_to_hbm [thread:$0]  (%p4022_p3), %s3811_s13, 128, %s3809_s3, %s1695_s5  }
 0xb05 PF: > { %s4023_s8 = sld [smem:[#allocation36_spill]]  ;;  %s4024_s24 = sld [smem:[#allocation50_spill]] }
 0xb06   : > { %p2323_p6 = scmp.ge.s32.totalorder %s3018_s18, 2 }
 0xb0b   : > { %s1722_s23 = sand.u32 1, %s4023_s8   ;;  %p4025_p13 = scmp.ne.s32.totalorder %s4024_s24, 0 }
 0xb0c   : > { %s1723_s16 = scalar_lea.sflag [#allocation5], %s1722_s23 }
 0xb0d   : > { %p2299_p4 = pnand %p2323_p6, %p4025_p13 }
 0xb0f   : > { %2973 = dma.done.wait (!%p2299_p4), %s1723_s16, 128  }
 0xb10   : > { %2975 = vsyncadd (!%p2299_p4), %s1723_s16, 4294967168  ;;  %s37_s18 = sadd.s32 1, %s3018_s18   ;;  %s4026_s25 = sld [smem:[#allocation35_spill]] }
 0xb11   : > { %p34_p10 = scmp.ge.s32.totalorder %s37_s18, 6   ;;  %s4027_s4 = sld [smem:[#allocation47_spill]] }
 0xb12   : > { %s4028_s28 = sld [smem:[#allocation37_spill]]  ;;  %s4029_s29 = sld [smem:[#allocation38_spill]] }
 0xb13   : > { %s4030_s30 = sld [smem:[#allocation48_spill]]  ;;  %s4031_s14 = sld [smem:[#allocation41_spill]] }
 0xb14   : > { %s4032_s16 = sld [smem:[#allocation43_spill]]  ;;  %s4033_s13 = sld [smem:[#allocation44_spill]] }
 0xb15   : > { %s4034_s26 = smov %s2986_s27  ;;  %s4036_s15 = smov %s3014_s17 }
 0xb16   :  { %36 = sbr.rel (!%p34_p10) target bundleno = 30 (0x1e), region = 185 }
 0xb17   : > { %s4035_s27 = smov %s4027_s4 }
 0xb1a   : > { %s4037_s17 = smov %s4033_s13 }
 0xb1d   :  { %1728 = vsyncpa [#allocation4], 1 }
 0xb1e   :  { %1730 = vsyncpa [#allocation4 + $0x1], 1 }
 0xb1f   :  { %1731 = vsyncpa [#allocation7], 1 }
 0xb20   :  { %1733 = vsyncpa [#allocation7 + $0x1], 1 }
 0xb21   :  { %1734 = vsyncpa [#allocation10], 1 }
 0xb22   :  { %1735 = vsyncpa [#allocation13], 1 }
 0xb23   :  { %1736 = vsyncpa [#allocation16], 1 }
 0xb24   :  { %1737 = vsyncpa [#allocation19], 1 }
 0xb25   :  { %1738 = vsyncpa [#allocation22], 1 }
 0xb26   :  { %1739 = vsyncpa [#allocation5], 1 }
 0xb27   :  { %1741 = vsyncpa [#allocation5 + $0x1], 1 }

// kernel: ofa_decoder_layer.5
= control target key start
LH: loop header
LB: loop body
LE: loop exit
PB: predicated region body
PF: predicated region fallthrough
CT: control target
= control target key end

     0   :  { %s2751_s0 = inlined_call_operand.hbm [shape: f32[32,128], index: 0, kind: input, shape index: {}]   ;;  %s2752_s1 = inlined_call_operand.hbm [shape: f32[1,128], index: 1, kind: input, shape index: {}]   ;;  %s2753_s2 = inlined_call_operand.hbm [shape: f32[1,128], index: 2, kind: input, shape index: {}]   ;;  %s2754_s3 = inlined_call_operand.hbm [shape: bf16[128,512], index: 3, kind: input, shape index: {}]   ;;  %s2755_s4 = inlined_call_operand.hbm [shape: f32[1,512], index: 4, kind: input, shape index: {}]   ;;  %s2756_s5 = inlined_call_operand.hbm [shape: f32[1,512], index: 5, kind: input, shape index: {}]   ;;  %s2757_s6 = inlined_call_operand.hbm [shape: f32[1,128], index: 6, kind: input, shape index: {}]   ;;  %s2758_s7 = inlined_call_operand.hbm [shape: f32[1,128], index: 7, kind: input, shape index: {}]   ;;  %s2759_s8 = inlined_call_operand.hbm [shape: bf16[512,128], index: 8, kind: input, shape index: {}]   ;;  %s2760_s9 = inlined_call_operand.hbm [shape: f32[32,128], index: 9, kind: output, shape index: {}]  }
   0x1   :  { %2780 = sst [smem:[#allocation34_spill]] %s2751_s0 }
   0x2   :  { %2781 = sst [smem:[#allocation35_spill]] %s2752_s1 }
   0x3   :  { %2782 = sst [smem:[#allocation36_spill]] %s2754_s3 }
   0x4   :  { %2783 = sst [smem:[#allocation37_spill]] %s2757_s6 }
   0x5   :  { %2784 = sst [smem:[#allocation38_spill]] %s2760_s9 }
   0x6   :  { %14 = vsyncpa [#allocation6], 0 }
   0x7   :  { %15 = vsyncpa [#allocation9], 0 }
   0x8   :  { %16 = vsyncpa [#allocation12], 0 }
   0x9   :  { %18 = vsyncpa [#allocation12 + $0x1], 0 }
   0xa   :  { %19 = vsyncpa [#allocation15], 0 }
   0xb   :  { %21 = vsyncpa [#allocation15 + $0x1], 0 }
   0xc   :  { %22 = vsyncpa [#allocation18], 0 }
   0xd   :  { %23 = vsyncpa [#allocation7], 0  ;;  %s2201_s30 = smov 0   ;;  %s2203_s10 = smov 0  }
   0xe   :  { %s2205_s11 = smov 0   ;;  %s2207_s12 = smov 0  }
   0xf   :  { %s2209_s13 = smov 0   ;;  %s2211_s14 = smov 0  }
  0x10 LB: > { %2785 = sst [smem:[#allocation29_spill]] %s2121_s12  ;;  %s2230_s15 = sadd.s32 4294967295, %s2129_s14   ;;  %s2129_s14 = sphi %s2211_s14, %s29_s14   ;;  %s2125_s13 = sphi %s2209_s13, %s2830_s13   ;;  %s2121_s12 = sphi %s2207_s12, %s2829_s12   ;;  %s2117_s11 = sphi %s2205_s11, %s2828_s11   ;;  %s2113_s10 = sphi %s2203_s10, %s2827_s10   ;;  %s2109_s30 = sphi %s2201_s30, %s2826_s30  }
  0x11   : > { %2786 = sst [smem:[#allocation30_spill]] %s2129_s14  ;;  %p129_p0 = scmp.ne.s32.totalorder %s2113_s10, %s2109_s30 }
  0x12   : > { %p2761_p1 = scmp.eq.s32.totalorder %s2230_s15, 0  ;;  %p1450_p2 = scmp.ge.s32.totalorder %s2129_s14, 1 }
  0x13   : > { %p286_p3 = scmp.lt.s32.totalorder %s2129_s14, 3  ;;  %s2131_s18 = smov [#allocation5]  }
  0x14   : > { %p2238_p4 = por %p2761_p1, %p129_p0  ;;  %s301_s19 = sshll.u32 %s2131_s18, 4  ;;  %s2246_s19 = int_to_ptr.vmem [resolvable:$true] %s301_s19 }
  0x15   : > { %p2242_p5 = pnand %p1450_p2, %p286_p3  ;;  %s2132_s21 = smov [#allocation8]  }
  0x16   : > { %s2787_s16 = scalar_select %p2238_p4, 1, 0 }
  0x17   : > { %s2789_s17 = scalar_select %p2242_p5, 1, 0 }
  0x18   : > { %2788 = sst [smem:[#allocation31_spill]] %s2787_s16  ;;  %p1585_p6 = pneg %p2242_p5 }
  0x19   : > { %s315_s22 = sshll.u32 %s2132_s21, 4  ;;  %s2133_s23 = smov [#allocation16]   ;;  %s2256_s22 = int_to_ptr.vmem [resolvable:$true] %s315_s22 }
  0x1a   : > { %p2252_p7 = pnand %p1585_p6, %p2761_p1  ;;  %s2258_s24 = sshll.u32 %s2133_s23, 4  ;;  %s338_s24 = int_to_ptr.vmem [resolvable:$true] %s2258_s24 }
  0x1b   : > { %s2791_s0 = sld [smem:[#allocation34_spill]] }
  0x1c   : > { %s2790_s20 = scalar_select %p2252_p7, 1, 0 }
  0x1d   : > { %p2268_p9 = pneg %p2252_p7 }
  0x1f   : > { %s2792_s30 = scalar_select %p2268_p9, 1, 0 }
  0x21   : > { %s1765_s27 = scalar_lea.hbm %s2791_s0, 512 }
  0x22   : > { %p1766_p8 = scmp.ne.s32.totalorder %s2791_s0, %s1765_s27  ;;  %p1772_p12 = scmp.lt.u32.totalorder %s1765_s27, %s2791_s0 }
  0x24   : > { %p1768_p10 = pnand %p2268_p9, %p1766_p8 }
  0x26   : > { %p1769_p11 = pneg %p1768_p10 }
  0x28   : > { %p1774_p13 = pnand %p1772_p12, %p1769_p11 }
  0x2a   : > { %1777 = shalt.err (!%p1774_p13)
}
  0x2b   : > { %s1778_s23 = scalar_lea.vmem %s2246_s19, 512  ;;  %p1786_p6 = scmp.lt.s32.totalorder %s2246_s19, %s2246_s19 }
  0x2c   : > { %p1779_p0 = scmp.ne.s32.totalorder %s2246_s19, %s1778_s23  ;;  %p1787_p1 = scmp.lt.s32.totalorder %s1778_s23, %s1778_s23 }
  0x2e   : > { %p1781_p2 = pnand %p1779_p0, %p2268_p9  ;;  %p1788_p8 = por %p1787_p1, %p1786_p6 }
  0x30   : > { %p1782_p3 = pneg %p1781_p2 }
  0x32   : > { %p1789_p10 = pnand %p1788_p8, %p1782_p3 }
  0x34   : > { %1792 = shalt.err (!%p1789_p10)
}
  0x35   : > { %s2767_s25 = smov 128   ;;  %s2769_s26 = smov 8  }
  0x36   : > { %1588 = dma.hbm_to_vmem [thread:$0]  (!%p2252_p7), %s2791_s0, 512, %s2246_s19, [#allocation6], %s2767_s25, %s2767_s25, %s2769_s26  }
  0x37   : > { %s2793_s1 = sld [smem:[#allocation35_spill]] }
  0x3d   : > { %s1793_s21 = scalar_lea.hbm %s2793_s1, 16 }
  0x3e   : > { %p1794_p1 = scmp.ne.s32.totalorder %s2793_s1, %s1793_s21  ;;  %p1800_p13 = scmp.lt.u32.totalorder %s1793_s21, %s2793_s1 }
  0x40   : > { %p1796_p11 = pnand %p1794_p1, %p2268_p9 }
  0x42   : > { %p1797_p12 = pneg %p1796_p11 }
  0x44   : > { %p1802_p0 = pnand %p1800_p13, %p1797_p12 }
  0x46   : > { %1805 = shalt.err (!%p1802_p0)
}
  0x47   : > { %s1806_s19 = scalar_lea.vmem %s2256_s22, 16  ;;  %s1813_s9 = scalar_lea.vmem %s2256_s22, 32 }
  0x48   : > { %p1807_p2 = scmp.ne.s32.totalorder %s2256_s22, %s1806_s19  ;;  %p1814_p8 = scmp.lt.s32.totalorder %s2256_s22, %s2256_s22 }
  0x49   : > { %p1815_p10 = scmp.lt.s32.totalorder %s1813_s9, %s1806_s19 }
  0x4a   : > { %p1809_p3 = pnand %p1807_p2, %p2268_p9 }
  0x4b   : > { %p1816_p1 = por %p1815_p10, %p1814_p8 }
  0x4c   : > { %p1810_p6 = pneg %p1809_p3 }
  0x4e   : > { %p1817_p11 = pnand %p1816_p1, %p1810_p6 }
  0x50   : > { %1820 = shalt.err (!%p1817_p11)
}
  0x51   : > { %1591 = dma.hbm_to_vmem [thread:$0]  (!%p2252_p7), %s2793_s1, 16, %s2256_s22, [#allocation9]  }
  0x52   : > { %s2794_s6 = sld [smem:[#allocation37_spill]] }
  0x58   : > { %s1821_s29 = scalar_lea.hbm %s2794_s6, 16 }
  0x59   : > { %p1822_p12 = scmp.ne.s32.totalorder %s2794_s6, %s1821_s29  ;;  %p1828_p2 = scmp.lt.u32.totalorder %s1821_s29, %s2794_s6 }
  0x5b   : > { %p1824_p13 = pnand %p1822_p12, %p2268_p9 }
  0x5d   : > { %p1825_p0 = pneg %p1824_p13 }
  0x5f   : > { %p1830_p3 = pnand %p1828_p2, %p1825_p0 }
  0x61   : > { %1833 = shalt.err (!%p1830_p3)
}
  0x62   : > { %s1834_s9 = scalar_lea.vmem %s338_s24, 16  ;;  %s1841_s22 = scalar_lea.vmem %s338_s24, 32 }
  0x63   : > { %p1835_p6 = scmp.ne.s32.totalorder %s338_s24, %s1834_s9  ;;  %p1842_p1 = scmp.lt.s32.totalorder %s338_s24, %s338_s24 }
  0x64   : > { %p1843_p11 = scmp.lt.s32.totalorder %s1841_s22, %s1834_s9 }
  0x65   : > { %p1837_p8 = pnand %p1835_p6, %p2268_p9 }
  0x66   : > { %p1844_p4 = por %p1843_p11, %p1842_p1 }
  0x67   : > { %p1838_p10 = pneg %p1837_p8 }
  0x69   : > { %p1845_p5 = pnand %p1844_p4, %p1838_p10 }
  0x6b   : > { %1848 = shalt.err (!%p1845_p5)
}
  0x6c   : > { %1597 = dma.hbm_to_vmem [thread:$0]  (!%p2252_p7), %s2794_s6, 16, %s338_s24, [#allocation15]  }
  0x6d   : > { %s116_s27 = sadd.s32 1, %s2117_s11  ;;  %s38_s28 = sadd.s32 1, %s2125_s13 }
  0x6e   : > { %p123_p4 = scmp.ne.s32.totalorder %s2117_s11, %s2113_s10  ;;  %p39_p5 = scmp.ge.s32.totalorder %s38_s28, 2 }
  0x6f   : > { %p124_p12 = scmp.eq.s32.totalorder %s2129_s14, 0  ;;  %p1619_p13 = scmp.lt.s32.totalorder %s2129_s14, 2 }
  0x70   : > { %s2342_s29 = sand.u32 1, %s2129_s14   ;;  %s2832_s28 = smov (%p39_p5, %s38_s28), 0 }
  0x71   : > { %2795 = sst [smem:[#allocation32_spill]] %s2832_s28  ;;  %p125_p0 = por %p124_p12, %p123_p4 }
  0x72   : > { %s113_s18 = ssub.s32 %s2125_s13, %s2832_s28  ;;  %s2768_s21 = sand.u32 1, %s2117_s11  }
  0x73   : > { %p114_p2 = scmp.eq.s32.totalorder %s113_s18, 0  ;;  %s2351_s23 = sshll.u32 %s2768_s21, 7 }
  0x74   : > { %s1521_s24 = sshll.u32 %s2125_s13, 7  ;;  %s2797_s3 = sld [smem:[#allocation36_spill]] }
  0x75   : > { %s2355_s19 = scalar_select %p114_p2, %s2117_s11, %s116_s27  }
  0x76   : > { %s363_s16 = scalar_lea.vmem [#allocation11], %s2351_s23  ;;  %p2367_p3 = pnand %p1619_p13, %p125_p0 }
  0x77   : > { %2796 = sst [smem:[#allocation33_spill]] %s2355_s19  ;;  %s370_s25 = sshll.u32 %s363_s16, 4  ;;  %s2363_s25 = int_to_ptr.vmem [resolvable:$true] %s370_s25 }
  0x78   : > { %s2798_s18 = scalar_select %p2367_p3, 1, 0 }
  0x79   : > { %s2136_s27 = smov [#allocation10]   ;;  %s360_s9 = scalar_lea.sflag [#allocation12], %s2342_s29 }
  0x7a   : > { %s2360_s12 = scalar_lea.hbm %s2797_s3, %s1521_s24  ;;  %s2371_s21 = sshll.u32 %s2136_s27, 4  ;;  %s327_s21 = int_to_ptr.vmem [resolvable:$true] %s2371_s21 }
  0x7b   : > { %s1849_s24 = scalar_lea.hbm %s2360_s12, 2048  ;;  %p2378_p8 = pneg %p2367_p3 }
  0x7c   : > { %p1850_p6 = scmp.ne.s32.totalorder %s2360_s12, %s1849_s24  ;;  %s1854_s0 = scalar_lea.hbm %s2797_s3, 4096 }
  0x7d   : > { %s2799_s22 = scalar_select %p2378_p8, 1, 0 }
  0x7e   : > { %p1852_p10 = pnand %p2378_p8, %p1850_p6  ;;  %p1855_p11 = scmp.lt.u32.totalorder %s2360_s12, %s2797_s3 }
  0x7f   : > { %p1856_p4 = scmp.lt.u32.totalorder %s1854_s0, %s1849_s24  ;;  %p1858_p12 = scmp.lt.u32.totalorder %s1849_s24, %s2360_s12 }
  0x80   : > { %p1853_p1 = pneg %p1852_p10 }
  0x81   : > { %p1857_p5 = por %p1856_p4, %p1855_p11 }
  0x83   : > { %p1859_p13 = por %p1858_p12, %p1857_p5 }
  0x85   : > { %p1860_p0 = pnand %p1859_p13, %p1853_p1 }
  0x87   : > { %1863 = shalt.err (!%p1860_p0)
}
  0x88   : > { %s1864_s27 = scalar_lea.vmem %s2363_s25, 2048  ;;  %s2137_s26 = smov [#allocation11]  }
  0x89   : > { %p1865_p2 = scmp.ne.s32.totalorder %s2363_s25, %s1864_s27  ;;  %s1869_s16 = sshll.u32 %s2137_s26, 4  ;;  %s1870_s16 = int_to_ptr.vmem [resolvable:$false] %s1869_s16 }
  0x8a   : > { %s1871_s1 = scalar_lea.vmem %s1870_s16, 4096  ;;  %p1872_p7 = scmp.lt.s32.totalorder %s2363_s25, %s1870_s16 }
  0x8b   : > { %p1867_p6 = pnand %p1865_p2, %p2378_p8  ;;  %p1873_p9 = scmp.lt.s32.totalorder %s1871_s1, %s1864_s27 }
  0x8d   : > { %p1868_p10 = pneg %p1867_p6  ;;  %p1874_p11 = por %p1873_p9, %p1872_p7 }
  0x8f   : > { %p1875_p4 = pnand %p1874_p11, %p1868_p10 }
  0x91   : > { %1878 = shalt.err (!%p1875_p4)
}
  0x92   : > { %s2138_s0 = smov 256   ;;  %s2800_s6 = smov 8  }
  0x93   : > { %s2801_s24 = smov 128   ;;  %s1879_s27 = scalar_lea.hbm %s2753_s2, 16 }
  0x94   : > { %1604 = dma.hbm_to_vmem [thread:$0]  (!%p2367_p3), %s2360_s12, 2048, %s2363_s25, %s360_s9, %s2138_s0, %s2801_s24, %s2800_s6  }
  0x95   : > { %p1880_p7 = scmp.ne.s32.totalorder %s2753_s2, %s1879_s27  ;;  %p2802_p9 = scmp.ne.s32.totalorder %s2792_s30, 0 }
  0x96   : > { %p1886_p12 = scmp.lt.u32.totalorder %s1879_s27, %s2753_s2 }
  0x97   : > { %p1882_p1 = pnand %p1880_p7, %p2802_p9 }
  0x99   : > { %p1883_p5 = pneg %p1882_p1 }
  0x9b   : > { %p1888_p13 = pnand %p1886_p12, %p1883_p5 }
  0x9d   : > { %1891 = shalt.err (!%p1888_p13)
}
  0x9e   : > { %s1892_s14 = scalar_lea.vmem %s327_s21, 16  ;;  %s1899_s3 = scalar_lea.vmem %s327_s21, 32 }
  0x9f   : > { %p1893_p0 = scmp.ne.s32.totalorder %s327_s21, %s1892_s14  ;;  %p1900_p10 = scmp.lt.s32.totalorder %s327_s21, %s327_s21 }
  0xa0   : > { %p1901_p11 = scmp.lt.s32.totalorder %s1899_s3, %s1892_s14 }
  0xa1   : > { %p1895_p2 = pnand %p1893_p0, %p2802_p9 }
  0xa2   : > { %p1902_p4 = por %p1901_p11, %p1900_p10 }
  0xa3   : > { %p1896_p6 = pneg %p1895_p2 }
  0xa5   : > { %p1903_p3 = pnand %p1902_p4, %p1896_p6 }
  0xa7   : > { %1906 = shalt.err (!%p1903_p3)
}
  0xa8   : > { %p2803_p7 = scmp.ne.s32.totalorder %s2790_s20, 0  ;;  %s2139_s28 = smov [#allocation17]  }
  0xa9   : > { %s348_s19 = sshll.u32 %s2139_s28, 4  ;;  %s2804_s0 = sand.u32 1, %s2117_s11   ;;  %s349_s19 = int_to_ptr.vmem [resolvable:$true] %s348_s19 }
  0xaa   : > { %1594 = dma.hbm_to_vmem [thread:$0]  (!%p2803_p7), %s2753_s2, 16, %s327_s21, [#allocation9]  }
  0xab   : > { %s2426_s6 = sshll.u32 %s2804_s0, 1  ;;  %s1907_s14 = scalar_lea.hbm %s2758_s7, 16 }
  0xac   : > { %p1908_p3 = scmp.ne.s32.totalorder %s2758_s7, %s1907_s14  ;;  %p1914_p12 = scmp.lt.u32.totalorder %s1907_s14, %s2758_s7 }
  0xae   : > { %p1910_p1 = pnand %p1908_p3, %p2802_p9 }
  0xb0   : > { %p1911_p5 = pneg %p1910_p1 }
  0xb2   : > { %p1916_p13 = pnand %p1914_p12, %p1911_p5 }
  0xb4   : > { %1919 = shalt.err (!%p1916_p13)
}
  0xb5   : > { %s1920_s21 = scalar_lea.vmem %s349_s19, 16  ;;  %s1927_s25 = scalar_lea.vmem %s349_s19, 32 }
  0xb6   : > { %p1921_p0 = scmp.ne.s32.totalorder %s349_s19, %s1920_s21  ;;  %p1928_p10 = scmp.lt.s32.totalorder %s349_s19, %s349_s19 }
  0xb7   : > { %p1929_p11 = scmp.lt.s32.totalorder %s1927_s25, %s1920_s21 }
  0xb8   : > { %p1923_p2 = pnand %p1921_p0, %p2802_p9 }
  0xb9   : > { %p1930_p4 = por %p1929_p11, %p1928_p10 }
  0xba   : > { %p1924_p6 = pneg %p1923_p2 }
  0xbc   : > { %p1931_p8 = pnand %p1930_p4, %p1924_p6 }
  0xbe   : > { %1934 = shalt.err (!%p1931_p8)
}
  0xbf   : > { %1600 = dma.hbm_to_vmem [thread:$0]  (!%p2803_p7), %s2758_s7, 16, %s349_s19, [#allocation18]  }
  0xc0   : > { %s1522_s0 = sshll.u32 %s2125_s13, 5  ;;  %s384_s30 = scalar_lea.vmem [#allocation13], %s2426_s6 }
  0xc1   : > { %s392_s24 = sshll.u32 %s384_s30, 4  ;;  %s390_s27 = scalar_lea.hbm %s2755_s4, %s1522_s0  ;;  %s393_s24 = int_to_ptr.vmem [resolvable:$true] %s392_s24 }
  0xc2   : > { %s1935_s16 = scalar_lea.hbm %s390_s27, 32  ;;  %p2805_p9 = scmp.ne.s32.totalorder %s2799_s22, 0 }
  0xc3   : > { %p1936_p8 = scmp.ne.s32.totalorder %s390_s27, %s1935_s16  ;;  %s1940_s3 = scalar_lea.hbm %s2755_s4, 64 }
  0xc4   : > { %p1941_p7 = scmp.lt.u32.totalorder %s390_s27, %s2755_s4  ;;  %p1942_p5 = scmp.lt.u32.totalorder %s1940_s3, %s1935_s16 }
  0xc5   : > { %p1938_p3 = pnand %p1936_p8, %p2805_p9  ;;  %p1944_p13 = scmp.lt.u32.totalorder %s1935_s16, %s390_s27 }
  0xc6   : > { %p1943_p12 = por %p1942_p5, %p1941_p7 }
  0xc7   : > { %p1939_p1 = pneg %p1938_p3 }
  0xc8   : > { %p1945_p0 = por %p1944_p13, %p1943_p12 }
  0xca   : > { %p1946_p2 = pnand %p1945_p0, %p1939_p1 }
  0xcc   : > { %1949 = shalt.err (!%p1946_p2)
}
  0xcd   : > { %s1950_s25 = scalar_lea.vmem %s393_s24, 32  ;;  %s2140_s12 = smov [#allocation13]  }
  0xce   : > { %p1951_p6 = scmp.ne.s32.totalorder %s393_s24, %s1950_s25  ;;  %s1955_s28 = sshll.u32 %s2140_s12, 4  ;;  %s1956_s28 = int_to_ptr.vmem [resolvable:$false] %s1955_s28 }
  0xcf   : > { %s1957_s30 = scalar_lea.vmem %s1956_s28, 64  ;;  %p1958_p4 = scmp.lt.s32.totalorder %s393_s24, %s1956_s28 }
  0xd0   : > { %p1953_p10 = pnand %p1951_p6, %p2805_p9  ;;  %p1959_p8 = scmp.lt.s32.totalorder %s1957_s30, %s1950_s25 }
  0xd2   : > { %p1954_p11 = pneg %p1953_p10  ;;  %p1960_p3 = por %p1959_p8, %p1958_p4 }
  0xd4   : > { %p1961_p5 = pnand %p1960_p3, %p1954_p11 }
  0xd6   : > { %1964 = shalt.err (!%p1961_p5)
}
  0xd7   : > { %p2806_p7 = scmp.ne.s32.totalorder %s2798_s18, 0  ;;  %s2472_s16 = scalar_lea.hbm %s2756_s5, %s1522_s0 }
  0xd8   : > { %s403_s20 = scalar_lea.vmem [#allocation14], %s2426_s6  ;;  %s400_s3 = scalar_lea.sflag [#allocation15], %s2342_s29 }
  0xd9   : > { %1607 = dma.hbm_to_vmem [thread:$0]  (!%p2806_p7), %s390_s27, 32, %s393_s24, %s360_s9  }
  0xda   : > { %s411_s1 = sshll.u32 %s403_s20, 4  ;;  %s1965_s21 = scalar_lea.hbm %s2472_s16, 32  ;;  %s412_s1 = int_to_ptr.vmem [resolvable:$true] %s411_s1 }
  0xdb   : > { %p1966_p1 = scmp.ne.s32.totalorder %s2472_s16, %s1965_s21  ;;  %s1970_s27 = scalar_lea.hbm %s2756_s5, 64 }
  0xdc   : > { %p1971_p0 = scmp.lt.u32.totalorder %s2472_s16, %s2756_s5  ;;  %p1972_p2 = scmp.lt.u32.totalorder %s1970_s27, %s1965_s21 }
  0xdd   : > { %p1968_p12 = pnand %p1966_p1, %p2805_p9  ;;  %p1974_p10 = scmp.lt.u32.totalorder %s1965_s21, %s2472_s16 }
  0xde   : > { %p1973_p6 = por %p1972_p2, %p1971_p0 }
  0xdf   : > { %p1969_p13 = pneg %p1968_p12 }
  0xe0   : > { %p1975_p11 = por %p1974_p10, %p1973_p6 }
  0xe2   : > { %p1976_p4 = pnand %p1975_p11, %p1969_p13 }
  0xe4   : > { %1979 = shalt.err (!%p1976_p4)
}
  0xe5   : > { %s1980_s6 = scalar_lea.vmem %s412_s1, 32  ;;  %s2141_s25 = smov [#allocation14]  }
  0xe6   : > { %p1981_p8 = scmp.ne.s32.totalorder %s412_s1, %s1980_s6  ;;  %s1985_s12 = sshll.u32 %s2141_s25, 4  ;;  %s1986_s12 = int_to_ptr.vmem [resolvable:$false] %s1985_s12 }
  0xe7   : > { %s1987_s28 = scalar_lea.vmem %s1986_s12, 64  ;;  %p1988_p1 = scmp.lt.s32.totalorder %s412_s1, %s1986_s12 }
  0xe8   : > { %p1983_p3 = pnand %p1981_p8, %p2805_p9  ;;  %p1989_p12 = scmp.lt.s32.totalorder %s1987_s28, %s1980_s6 }
  0xea   : > { %p1984_p5 = pneg %p1983_p3  ;;  %p1990_p7 = por %p1989_p12, %p1988_p1 }
  0xec   : > { %p1991_p0 = pnand %p1990_p7, %p1984_p5 }
  0xee   : > { %1994 = shalt.err (!%p1991_p0)
}
  0xef   : > { %p2807_p2 = scmp.ne.s32.totalorder %s2798_s18, 0  ;;  %s1524_s30 = sshll.u32 %s2125_s13, 11 }
  0xf0   : > { %s2497_s20 = scalar_lea.hbm %s2759_s8, %s1524_s30  ;;  %s422_s21 = scalar_lea.vmem [#allocation19], %s2351_s23 }
  0xf1   : > { %1610 = dma.hbm_to_vmem [thread:$0]  (!%p2807_p2), %s2472_s16, 32, %s412_s1, %s400_s3  }
  0xf2   : > { %s429_s9 = sshll.u32 %s422_s21, 4  ;;  %s419_s24 = scalar_lea.sflag [#allocation6], %s2342_s29  ;;  %s2500_s9 = int_to_ptr.vmem [resolvable:$true] %s429_s9 }
  0xf3   : > { %s1995_s27 = scalar_lea.hbm %s2497_s20, 2048  ;;  %s2000_s3 = scalar_lea.hbm %s2759_s8, 4096 }
  0xf4   : > { %p1996_p7 = scmp.ne.s32.totalorder %s2497_s20, %s1995_s27  ;;  %p2001_p10 = scmp.lt.u32.totalorder %s2497_s20, %s2759_s8 }
  0xf5   : > { %p2002_p11 = scmp.lt.u32.totalorder %s2000_s3, %s1995_s27  ;;  %p2004_p8 = scmp.lt.u32.totalorder %s1995_s27, %s2497_s20 }
  0xf6   : > { %p1998_p13 = pnand %p1996_p7, %p2805_p9 }
  0xf7   : > { %p2003_p4 = por %p2002_p11, %p2001_p10 }
  0xf8   : > { %p1999_p6 = pneg %p1998_p13 }
  0xf9   : > { %p2005_p3 = por %p2004_p8, %p2003_p4 }
  0xfb   : > { %p2006_p5 = pnand %p2005_p3, %p1999_p6 }
  0xfd   : > { %2009 = shalt.err (!%p2006_p5)
}
  0xfe   : > { %s2010_s23 = scalar_lea.vmem %s2500_s9, 2048  ;;  %s2142_s6 = smov [#allocation19]  }
  0xff   : > { %p2011_p1 = scmp.ne.s32.totalorder %s2500_s9, %s2010_s23  ;;  %s2015_s25 = sshll.u32 %s2142_s6, 4  ;;  %s2016_s25 = int_to_ptr.vmem [resolvable:$false] %s2015_s25 }
 0x100   : > { %s2017_s12 = scalar_lea.vmem %s2016_s25, 4096  ;;  %p2018_p7 = scmp.lt.s32.totalorder %s2500_s9, %s2016_s25 }
 0x101   : > { %p2013_p12 = pnand %p2011_p1, %p2805_p9  ;;  %p2019_p13 = scmp.lt.s32.totalorder %s2017_s12, %s2010_s23 }
 0x103   : > { %p2014_p0 = pneg %p2013_p12  ;;  %p2020_p10 = por %p2019_p13, %p2018_p7 }
 0x105   : > { %p2021_p11 = pnand %p2020_p10, %p2014_p0 }
 0x107   : > { %2024 = shalt.err (!%p2021_p11)
}
 0x108   : > { %s2143_s28 = smov 64   ;;  %s2144_s30 = smov 4  }
 0x109   : > { %1613 = dma.hbm_to_vmem [thread:$0]  (!%p2807_p2), %s2497_s20, 2048, %s2500_s9, %s419_s24, %s2143_s28, %s2143_s28, %s2144_s30  }
 0x10a   : > { %p2808_p9 = scmp.ne.s32.totalorder %s2789_s17, 0 }
 0x10b   : > { %p2809_p6 = scmp.eq.s32.totalorder (!%p2808_p9), %s2230_s15, 0 }
 0x10c   : > { %441 = sbr.rel (%p2808_p9) target bundleno = 1241 (0x4d9), region = 56 }
 0x113   : > { %2076 = dma.done.wait (%p2809_p6), [#allocation6], 512   ;;  %p2810_p4 = pmov %p2809_p6 }
 0x115   : > { %2078 = vsyncadd (%p2810_p4), [#allocation6], 4294966784  ;;  %p2811_p8 = pmov %p2810_p4 }
 0x116   : > { %p2812_p3 = pmov %p2810_p4 }
 0x117   : > { %2080 = dma.done.wait (%p2811_p8), [#allocation9], 32  }
 0x118   : > { %2082 = vsyncadd (%p2812_p3), [#allocation9], 4294967264  ;;  %s2813_s18 = sld [smem:[#allocation31_spill]]  ;;  %s455_s29 = sand.u32 1, %s2230_s15  }
 0x119   : > { %s457_s22 = sand.u32 1, %s2113_s10   ;;  %s456_s17 = scalar_lea.sflag [#allocation12], %s455_s29 }
 0x11a   : > { %s1473_s26 = sshll.u32 %s457_s22, 7 }
 0x11b   : > { %s2538_s14 = scalar_lea.vmem [#allocation11], %s1473_s26 }
 0x11e   : > { %p2814_p2 = scmp.ne.s32.totalorder %s2813_s18, 0 }
 0x120   : > { %2084 = dma.done.wait (%p2814_p2), %s456_s17, 2080  }
 0x121   : > { %2086 = vsyncadd (%p2814_p2), %s456_s17, 4294965216  ;;  %s2544_s20 = sshll.u32 %s457_s22, 1  ;;  %s474_s9 = scalar_lea.sflag [#allocation15], %s455_s29 }
 0x122   : > { %s468_s21 = scalar_lea.vmem [#allocation13], %s2544_s20  ;;  %s477_s24 = scalar_lea.vmem [#allocation14], %s2544_s20 }
 0x123   : > { %2088 = dma.done.wait (%p2814_p2), %s474_s9, 32  }
 0x124   : > { %2090 = vsyncadd (%p2814_p2), %s474_s9, 4294967264  ;;  %p2815_p5 = pmov %p2812_p3 }
 0x125   : > { %p2816_p1 = pmov %p2812_p3 }
 0x126   : > { %2092 = dma.done.wait (%p2815_p5), [#allocation15], 16  }
 0x127   : > { %2094 = vsyncadd (%p2816_p1), [#allocation15], 4294967280  ;;  %p2817_p12 = pmov %p2816_p1 }
 0x128   : > { %p2818_p0 = pmov %p2816_p1 }
 0x129   : > { %2096 = dma.done.wait (%p2817_p12), [#allocation18], 16  }
 0x12a   : > { %2098 = vsyncadd (%p2818_p0), [#allocation18], 4294967280  ;;  %s491_s27 = scalar_lea.sflag [#allocation6], %s455_s29  ;;  %s2560_s16 = scalar_lea.vmem [#allocation19], %s1473_s26 }
 0x12b   : > { %2100 = dma.done.wait (%p2814_p2), %s491_s27, 2048  }
 0x12c   : > { %2102 = vsyncadd (%p2814_p2), %s491_s27, 4294965248  ;;  %s2819_s1 = sld [smem:[#allocation29_spill]] }
 0x132   : > { %p1479_p7 = scmp.ne.s32.totalorder %s2819_s1, 0 }
 0x133   : > { %vm554_vm0 = vcmask (!%p1479_p7), 7168   ;;  %v2145_v0 = vmov (!%p1479_p7), 0.0  }
 0x134   : > { %549 = sbr.rel (%p1479_p7) target bundleno = 315 (0x13b), region = 96  ;;  %550 = vst [vmem:[#allocation2] sm:$0xff] (!%p1479_p7), %v2145_v0  ;;  %551 = vst [vmem:[#allocation2 + $0x8] sm:$0xff] (!%p1479_p7), %v2145_v0 }
 0x135   : > { %552 = vst [vmem:[#allocation2 + $0x10] sm:$0xff] (!%p1479_p7), %v2145_v0  ;;  %553 = vst [vmem:[#allocation2 + $0x18] sm:$0xff] (!%p1479_p7), %v2145_v0 }
 0x136   : > { %555 = vst.msk [vmem:[#allocation3] sm:$0xff] (!%p1479_p7), %vm554_vm0, %v2145_v0  ;;  %556 = vst.msk [vmem:[#allocation3 + $0x8] sm:$0xff] (!%p1479_p7), %vm554_vm0, %v2145_v0 }
 0x137   : > { %557 = vst.msk [vmem:[#allocation3 + $0x10] sm:$0xff] (!%p1479_p7), %vm554_vm0, %v2145_v0  ;;  %558 = vst.msk [vmem:[#allocation3 + $0x18] sm:$0xff] (!%p1479_p7), %vm554_vm0, %v2145_v0 }
 0x138   : > { %559 = vst.msk [vmem:[#allocation4] sm:$0xff] (!%p1479_p7), %vm554_vm0, %v2145_v0  ;;  %560 = vst.msk [vmem:[#allocation4 + $0x8] sm:$0xff] (!%p1479_p7), %vm554_vm0, %v2145_v0 }
 0x139   : > { %561 = vst.msk [vmem:[#allocation4 + $0x10] sm:$0xff] (!%p1479_p7), %vm554_vm0, %v2145_v0  ;;  %562 = vst.msk [vmem:[#allocation4 + $0x18] sm:$0xff] (!%p1479_p7), %vm554_vm0, %v2145_v0 }
 0x13b PF: > { %v2567_v1 = vld [vmem:[#allocation5] sm:$0xff]  ;;  %v2569_v2 = vld [vmem:[#allocation5 + $0x10] sm:$0xff]  ;;  %v2571_v3 = vld [vmem:[#allocation5 + $0x8] sm:$0xff]  ;;  %v2146_v34 = vmov 0   ;;  %vm1102_vm1 = vcmask 7168   ;;  %s2820_s3 = sld [smem:[#allocation29_spill]] }
 0x13c   : > { %569 = vadd.xlane.f32.xlu0 %v2567_v1  ;;  %573 = vadd.xlane.f32.xlu1 %v2569_v2  ;;  %v2575_v4 = vld [vmem:[#allocation5 + $0x18] sm:$0xff]  ;;  %v1691_v5 = vld [vmem:[%s2538_s14 + $0x4] ss:$8 sps:$4 sm:$0xff]   ;;  %v1693_v6 = vld [vmem:[%s2538_s14] ss:$8 sps:$4 sm:$0xff]  }
 0x13d   : > { %v1694_v7 = vld [vmem:[%s2538_s14 + $0x14] ss:$8 sps:$4 sm:$0xff]   ;;  %744 = vmatprep.subr.bf16.mxu0 %v1691_v5  ;;  %v1696_v24 = vld [vmem:[%s2538_s14 + $0x10] ss:$8 sps:$4 sm:$0xff]   ;;  %v1697_v25 = vld [vmem:[%s2538_s14 + $0x24] ss:$8 sps:$4 sm:$0xff]   ;;  %776 = vmatprep.mubr.bf16.mxu0 %v2146_v34 }
 0x13e   : > { %745 = vmatpush1.bf16.msra.mxu0 %v1693_v6  ;;  %v1699_v26 = vld [vmem:[%s2538_s14 + $0x20] ss:$8 sps:$4 sm:$0xff]   ;;  %v1700_v27 = vld [vmem:[%s2538_s14 + $0x34] ss:$8 sps:$4 sm:$0xff]   ;;  %v1702_v28 = vld [vmem:[%s2538_s14 + $0x30] ss:$8 sps:$4 sm:$0xff]  }
 0x13f   : > { %746 = vmatprep.subr.bf16.mxu0 %v1694_v7  ;;  %v1703_v29 = vld [vmem:[%s2538_s14 + $0x44] ss:$8 sps:$4 sm:$0xff]   ;;  %v1705_v30 = vld [vmem:[%s2538_s14 + $0x40] ss:$8 sps:$4 sm:$0xff]   ;;  %v1706_v31 = vld [vmem:[%s2538_s14 + $0x54] ss:$8 sps:$4 sm:$0xff]  }
 0x140   : > { %571 = vadd.xlane.f32.xlu0 %v2571_v3  ;;  %575 = vadd.xlane.f32.xlu1 %v2575_v4  ;;  %v1708_v32 = vld [vmem:[%s2538_s14 + $0x50] ss:$8 sps:$4 sm:$0xff]   ;;  %v1709_v33 = vld [vmem:[%s2538_s14 + $0x64] ss:$8 sps:$4 sm:$0xff]   ;;  %v1711_v35 = vld [vmem:[%s2538_s14 + $0x60] ss:$8 sps:$4 sm:$0xff]  }
 0x141   : > { %v1712_v36 = vld [vmem:[%s2538_s14 + $0x74] ss:$8 sps:$4 sm:$0xff]   ;;  %v1714_v37 = vld [vmem:[%s2538_s14 + $0x70] ss:$8 sps:$4 sm:$0xff]   ;;  %p1514_p13 = scmp.ne.s32.totalorder %s2820_s3, 1 }
 0x142   : > { %747 = vmatpush1.bf16.msra.mxu0 %v1696_v24  ;;  %v1480_v52 = vld [vmem:[#allocation8] ss:$0 sm:$0xff]  ;;  %v1481_v57 = vld [vmem:[#allocation10] ss:$0 sm:$0xff]  ;;  %v1729_v24 = vld [vmem:[%s2560_s16 + $0x78] sm:$0xff]  }
 0x143   : > { %748 = vmatprep.subr.bf16.mxu0 %v1697_v25  ;;  %v1730_v25 = vld [vmem:[%s2560_s16 + $0x38] sm:$0xff]  }
 0x146   : > { %749 = vmatpush1.bf16.msra.mxu0 %v1699_v26  ;;  %v654_v26 = vlaneseq }
 0x147   : > { %750 = vmatprep.subr.bf16.mxu0 %v1700_v27 }
 0x148   : > { %v2625_v27 = vshrl.u32 %v654_v26, 7 }
 0x14a   : > { %751 = vmatpush1.bf16.msra.mxu0 %v1702_v28  ;;  %v656_v28 = vsub.s32 0, %v2625_v27 }
 0x14b   : > { %752 = vmatprep.subr.bf16.mxu0 %v1703_v29  ;;  %v652_v29 = vld [vmem:[%s468_s21] sm:$0x3] }
 0x14e   : > { %753 = vmatpush1.bf16.msra.mxu0 %v1705_v30  ;;  %v660_v30 = vsub.s32 1, %v2625_v27 }
 0x14f   : > { %754 = vmatprep.subr.bf16.mxu0 %v1706_v31  ;;  %v657_v31 = vrot.slane %v652_v29, %v656_v28 }
 0x152   : > { %755 = vmatpush1.bf16.msra.mxu0 %v1708_v32  ;;  %v661_v32 = vrot.slane %v652_v29, %v660_v30 }
 0x153   : > { %756 = vmatprep.subr.bf16.mxu0 %v1709_v33 }
 0x156   : > { %757 = vmatpush1.bf16.msra.mxu0 %v1711_v35 }
 0x157   : > { %758 = vmatprep.subr.bf16.mxu0 %v1712_v36 }
 0x15a   : > { %759 = vmatpush1.bf16.msra.mxu0 %v1714_v37 }
 0x1c9   : > { %v570_v8 = vpop.xlane.xlu0 %569  ;;  %v574_v9 = vpop.xlane.xlu1 %573 }
 0x1ca   : > { %v578_v10 = vmul.f32 0.0078125, %v570_v8  ;;  %v580_v11 = vmul.f32 0.0078125, %v574_v9 }
 0x1cc   : > { %v582_v12 = vsub.f32 %v2567_v1, %v578_v10  ;;  %v2584_v13 = vsub.f32 %v2569_v2, %v580_v11  ;;  %v1715_v10 = vld [vmem:[%s2560_s16 + $0x40] sm:$0xff]  }
 0x1cd   : > { %v572_v14 = vpop.xlane.xlu0 %571  ;;  %v576_v15 = vpop.xlane.xlu1 %575  ;;  %v1716_v11 = vld [vmem:[%s2560_s16] sm:$0xff]   ;;  %1525 = vmatprep.subr.bf16.mxu1 %v1715_v10 }
 0x1ce   : > { %v579_v16 = vmul.f32 0.0078125, %v572_v14  ;;  %v586_v17 = vmul.f32 %v582_v12, %v582_v12  ;;  %v581_v18 = vmul.f32 0.0078125, %v576_v15  ;;  %v588_v21 = vmul.f32 %v2584_v13, %v2584_v13  ;;  %1526 = vmatpush3.bf16.msra.mxu1 %v1716_v11  ;;  %v1719_v14 = vld [vmem:[%s2560_s16 + $0x50] sm:$0xff]  }
 0x1cf   : > { %v1720_v15 = vld [vmem:[%s2560_s16 + $0x10] sm:$0xff]  }
 0x1d0   : > { %v583_v19 = vsub.f32 %v2571_v3, %v579_v16  ;;  %590 = vadd.xlane.f32.xlu0 %v586_v17  ;;  %v2588_v20 = vsub.f32 %v2575_v4, %v581_v18  ;;  %v1721_v16 = vld [vmem:[%s2560_s16 + $0x58] sm:$0xff]   ;;  %v1723_v18 = vld [vmem:[%s2560_s16 + $0x60] sm:$0xff]  }
 0x1d1   : > { %v1722_v17 = vld [vmem:[%s2560_s16 + $0x18] sm:$0xff]  }
 0x1d2   : > { %v587_v22 = vmul.f32 %v583_v19, %v583_v19  ;;  %v589_v23 = vmul.f32 %v2588_v20, %v2588_v20 }
 0x1d4   : > { %594 = vadd.xlane.f32.xlu0 %v588_v21  ;;  %592 = vadd.xlane.f32.xlu1 %v587_v22  ;;  %v1726_v21 = vld [vmem:[%s2560_s16 + $0x28] sm:$0xff]   ;;  %v1727_v22 = vld [vmem:[%s2560_s16 + $0x70] sm:$0xff]  }
 0x1d8   : > { %596 = vadd.xlane.f32.xlu1 %v589_v23  ;;  %v1728_v23 = vld [vmem:[%s2560_s16 + $0x30] sm:$0xff]  }
 0x25d   : > { %v591_v38 = vpop.xlane.xlu0 %590 }
 0x25e   : > { %v598_v39 = vmul.f32 0.0078125, %v591_v38 }
 0x260   : > { %v602_v40 = vadd.f32 1e-05, %v598_v39 }
 0x261   : > { %v593_v41 = vpop.xlane.xlu1 %592  ;;  %v595_v42 = vpop.xlane.xlu0 %594 }
 0x262   : > { %1731 = vrsqrt.f32 %v602_v40  ;;  %v599_v43 = vmul.f32 0.0078125, %v593_v41  ;;  %v600_v44 = vmul.f32 0.0078125, %v595_v42 }
 0x264   : > { %v603_v45 = vadd.f32 1e-05, %v599_v43  ;;  %v604_v46 = vadd.f32 1e-05, %v600_v44 }
 0x265   : > { %v597_v47 = vpop.xlane.xlu1 %596 }
 0x266   : > { %1733 = vrsqrt.f32 %v603_v45  ;;  %v601_v48 = vmul.f32 0.0078125, %v597_v47 }
 0x267   : > { %1735 = vrsqrt.f32 %v604_v46 }
 0x268   : > { %v605_v49 = vadd.f32 1e-05, %v601_v48 }
 0x26a   : > { %1737 = vrsqrt.f32 %v605_v49 }
 0x26c   : > { %v1732_v50 = vpop.eup %1731 }
 0x26d   : > { %v610_v51 = vmul.f32 %v1732_v50, %v582_v12  ;;  %v1717_v12 = vld [vmem:[%s2560_s16 + $0x48] sm:$0xff]  }
 0x26e   : > { %1527 = vmatprep.subr.bf16.mxu1 %v1717_v12 }
 0x26f   : > { %v620_v55 = vmul.f32 %v1480_v52, %v610_v51 }
 0x270   : > { %v1734_v53 = vpop.eup %1733 }
 0x271   : > { %v611_v54 = vmul.f32 %v1734_v53, %v583_v19  ;;  %v1736_v56 = vpop.eup %1735  ;;  %v630_v60 = vadd.f32 %v1481_v57, %v620_v55  ;;  %v1724_v19 = vld [vmem:[%s2560_s16 + $0x20] sm:$0xff]  }
 0x272   : > { %v612_v62 = vmul.f32 %v1736_v56, %v2584_v13  ;;  %v1718_v13 = vld [vmem:[%s2560_s16 + $0x8] sm:$0xff]  }
 0x273   : > { %v621_v58 = vmul.f32 %v1480_v52, %v611_v54  ;;  %1528 = vmatpush3.bf16.msra.mxu1 %v1718_v13 }
 0x274   : > { %v1738_v59 = vpop.eup %1737  ;;  %v622_v6 = vmul.f32 %v1480_v52, %v612_v62  ;;  %1529 = vmatprep.subr.bf16.mxu1 %v1719_v14 }
 0x275   : > { %v631_v61 = vadd.f32 %v1481_v57, %v621_v58  ;;  %v613_v63 = vmul.f32 %v1738_v59, %v2588_v20  ;;  %v1725_v20 = vld [vmem:[%s2560_s16 + $0x68] sm:$0xff]  }
 0x276   : > { %v632_v8 = vadd.f32 %v1481_v57, %v622_v6 }
 0x277   : > { %v650_v0 = vpack.c.bf16 %v631_v61, %v630_v60  ;;  %v623_v5 = vmul.f32 %v1480_v52, %v613_v63  ;;  %1530 = vmatpush3.bf16.msra.mxu1 %v1720_v15 }
 0x278   : > { %1531 = vmatprep.subr.bf16.mxu1 %v1721_v16 }
 0x279   : > { %777 = vmatmul.mubr.bf16.vlgmr.msra.gmra.mrb[0].mxu0 %v650_v0  ;;  %v633_v7 = vadd.f32 %v1481_v57, %v623_v5 }
 0x27a   : > { %786 = vmatprep.mubr.bf16.mxu0 %v2146_v34 }
 0x27b   : > { %v651_v9 = vpack.c.bf16 %v633_v7, %v632_v8  ;;  %1532 = vmatpush3.bf16.msra.mxu1 %v1722_v17 }
 0x27c   : > { %1533 = vmatprep.subr.bf16.mxu1 %v1723_v18 }
 0x27f   : > { %1534 = vmatpush3.bf16.msra.mxu1 %v1724_v19 }
 0x280   : > { %1535 = vmatprep.subr.bf16.mxu1 %v1725_v20 }
 0x281   : > { %787 = vmatmul.mubr.bf16.gmra.mrb[4].mxu0 %v651_v9 }
 0x283   : > { %1536 = vmatpush3.bf16.msra.mxu1 %v1726_v21 }
 0x284   : > { %1537 = vmatprep.subr.bf16.mxu1 %v1727_v22 }
 0x287   : > { %1538 = vmatpush3.bf16.msra.mxu1 %v1728_v23 }
 0x288   : > { %1539 = vmatprep.subr.bf16.mxu1 %v1729_v24 }
 0x28b   : > { %1540 = vmatpush3.bf16.msra.mxu1 %v1730_v25 }
 0x34c   : > { %v778_v33 = vpop.f32.mrb[0].mxu0 }
 0x34d   : > { %v2635_v34 = vadd.f32 %v778_v33, %v657_v31  ;;  %v780_v35 = vpop.f32.mrb[1].mxu0 }
 0x34e   : > { %v2637_v36 = vadd.f32 %v780_v35, %v661_v32  ;;  %v782_v37 = vpop.f32.mrb[2].mxu0 }
 0x34f   : > { %v797_v38 = vmul.f32 %v2635_v34, %v2635_v34  ;;  %v2641_v39 = vadd.f32 %v782_v37, %v657_v31  ;;  %v784_v40 = vpop.f32.mrb[3].mxu0  ;;  %v873_v37 = vld [vmem:[%s477_s24] sm:$0x3] }
 0x350   : > { %v798_v41 = vmul.f32 %v2637_v36, %v2637_v36  ;;  %v2645_v42 = vadd.f32 %v784_v40, %v661_v32 }
 0x351   : > { %v805_v43 = vmul.f32 %v797_v38, %v2635_v34  ;;  %v799_v44 = vmul.f32 %v2641_v39, %v2641_v39 }
 0x352   : > { %v806_v45 = vmul.f32 %v798_v41, %v2637_v36  ;;  %v800_v46 = vmul.f32 %v2645_v42, %v2645_v42 }
 0x353   : > { %v813_v47 = vmul.f32 0.044715, %v805_v43  ;;  %v807_v48 = vmul.f32 %v799_v44, %v2641_v39 }
 0x354   : > { %v814_v49 = vmul.f32 0.044715, %v806_v45  ;;  %v808_v50 = vmul.f32 %v800_v46, %v2645_v42  ;;  %v788_v51 = vpop.f32.mrb[4].mxu0 }
 0x355   : > { %v821_v52 = vadd.f32 %v813_v47, %v2635_v34  ;;  %v815_v53 = vmul.f32 0.044715, %v807_v48  ;;  %v2656_v54 = vadd.f32 %v788_v51, %v657_v31  ;;  %v790_v55 = vpop.f32.mrb[5].mxu0  ;;  %v878_v47 = vrot.slane %v873_v37, %v656_v28 }
 0x356   : > { %v822_v56 = vadd.f32 %v814_v49, %v2637_v36  ;;  %v816_v57 = vmul.f32 0.044715, %v808_v50  ;;  %v2659_v58 = vadd.f32 %v790_v55, %v661_v32  ;;  %v792_v59 = vpop.f32.mrb[6].mxu0  ;;  %v882_v50 = vrot.slane %v873_v37, %v660_v30 }
 0x357   : > { %v829_v60 = vmul.f32 0.7978846, %v821_v52  ;;  %v823_v61 = vadd.f32 %v815_v53, %v2641_v39  ;;  %v801_v62 = vmul.f32 %v2656_v54, %v2656_v54  ;;  %v2664_v63 = vadd.f32 %v792_v59, %v657_v31  ;;  %v794_v0 = vpop.f32.mrb[7].mxu0 }
 0x358   : > { %v830_v5 = vmul.f32 0.7978846, %v822_v56  ;;  %v824_v6 = vadd.f32 %v816_v57, %v2645_v42  ;;  %v802_v7 = vmul.f32 %v2659_v58, %v2659_v58  ;;  %v2669_v8 = vadd.f32 %v794_v0, %v661_v32 }
 0x359   : > { %1739 = vtanh.f32 %v829_v60  ;;  %v831_v9 = vmul.f32 0.7978846, %v823_v61  ;;  %v809_v10 = vmul.f32 %v801_v62, %v2656_v54  ;;  %v803_v11 = vmul.f32 %v2664_v63, %v2664_v63 }
 0x35a   : > { %1741 = vtanh.f32 %v830_v5  ;;  %v832_v12 = vmul.f32 0.7978846, %v824_v6  ;;  %v810_v13 = vmul.f32 %v802_v7, %v2659_v58  ;;  %v804_v14 = vmul.f32 %v2669_v8, %v2669_v8 }
 0x35b   : > { %1743 = vtanh.f32 %v831_v9  ;;  %v817_v15 = vmul.f32 0.044715, %v809_v10  ;;  %v811_v16 = vmul.f32 %v803_v11, %v2664_v63 }
 0x35c   : > { %1745 = vtanh.f32 %v832_v12  ;;  %v818_v17 = vmul.f32 0.044715, %v810_v13  ;;  %v812_v18 = vmul.f32 %v804_v14, %v2669_v8 }
 0x35d   : > { %v825_v19 = vadd.f32 %v817_v15, %v2656_v54  ;;  %v819_v20 = vmul.f32 0.044715, %v811_v16 }
 0x35e   : > { %v826_v21 = vadd.f32 %v818_v17, %v2659_v58  ;;  %v820_v22 = vmul.f32 0.044715, %v812_v18 }
 0x35f   : > { %v833_v23 = vmul.f32 0.7978846, %v825_v19  ;;  %v827_v24 = vadd.f32 %v819_v20, %v2664_v63 }
 0x360   : > { %v834_v25 = vmul.f32 0.7978846, %v826_v21  ;;  %v828_v26 = vadd.f32 %v820_v22, %v2669_v8 }
 0x361   : > { %1747 = vtanh.f32 %v833_v23  ;;  %v835_v29 = vmul.f32 0.7978846, %v827_v24 }
 0x362   : > { %1749 = vtanh.f32 %v834_v25  ;;  %v836_v31 = vmul.f32 0.7978846, %v828_v26 }
 0x363   : > { %v1740_v32 = vpop.eup %1739  ;;  %1751 = vtanh.f32 %v835_v29 }
 0x364   : > { %v1742_v33 = vpop.eup %1741  ;;  %1753 = vtanh.f32 %v836_v31  ;;  %v845_v35 = vadd.f32 1.0, %v1740_v32 }
 0x365   : > { %v1744_v38 = vpop.eup %1743  ;;  %v846_v40 = vadd.f32 1.0, %v1742_v33 }
 0x366   : > { %v1746_v41 = vpop.eup %1745  ;;  %v853_v43 = vmul.f32 0.5, %v845_v35  ;;  %v847_v44 = vadd.f32 1.0, %v1744_v38 }
 0x367   : > { %v854_v45 = vmul.f32 0.5, %v846_v40  ;;  %v848_v46 = vadd.f32 1.0, %v1746_v41  ;;  %v1083_v40 = vld [vmem:[#allocation3 + $0x8] sm:$0xff] }
 0x368   : > { %v861_v48 = vmul.f32 %v853_v43, %v2635_v34  ;;  %v855_v49 = vmul.f32 0.5, %v847_v44  ;;  %v1107_v44 = vld [vmem:[#allocation4] sm:$0xff] }
 0x369   : > { %v862_v51 = vmul.f32 %v854_v45, %v2637_v36  ;;  %v856_v52 = vmul.f32 0.5, %v848_v46 }
 0x36a   : > { %v863_v53 = vmul.f32 %v855_v49, %v2641_v39  ;;  %v1111_v55 = vmul.f32 %v861_v48, %v861_v48  ;;  %v885_v61 = vmul.f32 %v878_v47, %v861_v48 }
 0x36b   : > { %v1748_v56 = vpop.eup %1747  ;;  %v1086_v57 = vadd.f32 %v862_v51, %v861_v48  ;;  %v864_v59 = vmul.f32 %v856_v52, %v2645_v42  ;;  %v1112_v60 = vmul.f32 %v862_v51, %v862_v51  ;;  %v886_v28 = vmul.f32 %v882_v50, %v862_v51  ;;  %v1084_v51 = vld [vmem:[#allocation3 + $0x10] sm:$0xff]  ;;  %v1085_v52 = vld [vmem:[#allocation3 + $0x18] sm:$0xff] }
 0x36c   : > { %v1750_v62 = vpop.eup %1749  ;;  %v887_v0 = vmul.f32 %v878_v47, %v863_v53  ;;  %v1113_v34 = vmul.f32 %v863_v53, %v863_v53  ;;  %v849_v5 = vadd.f32 1.0, %v1748_v56 }
 0x36d   : > { %v1752_v6 = vpop.eup %1751  ;;  %1087 = vadd.xlane.f32.xlu0 %v1086_v57  ;;  %v1089_v27 = vadd.f32 %v864_v59, %v863_v53  ;;  %v888_v30 = vmul.f32 %v882_v50, %v864_v59  ;;  %v1119_v36 = vadd.f32 %v1112_v60, %v1111_v55  ;;  %v1114_v7 = vmul.f32 %v864_v59, %v864_v59  ;;  %v1109_v59 = vld [vmem:[#allocation4 + $0x10] sm:$0xff]  ;;  %v1110_v60 = vld [vmem:[#allocation4 + $0x18] sm:$0xff] }
 0x36e   : > { %v1754_v9 = vpop.eup %1753  ;;  %v925_v39 = vpack.c.bf16 %v887_v0, %v885_v61  ;;  %v850_v10 = vadd.f32 1.0, %v1750_v62  ;;  %v857_v11 = vmul.f32 0.5, %v849_v5  ;;  %v851_v12 = vadd.f32 1.0, %v1752_v6  ;;  %v869_v5 = vld [vmem:[#allocation2] sm:$0xff] }
 0x36f   : > { %1090 = vadd.xlane.f32.xlu1 %v1089_v27  ;;  %v926_v42 = vpack.c.bf16 %v888_v30, %v886_v28  ;;  %v1122_v13 = vadd.f32 %v1114_v7, %v1113_v34  ;;  %v852_v14 = vadd.f32 1.0, %v1754_v9 }
 0x370   : > { %v858_v15 = vmul.f32 0.5, %v850_v10  ;;  %v865_v16 = vmul.f32 %v857_v11, %v2656_v54  ;;  %v859_v17 = vmul.f32 0.5, %v851_v12  ;;  %v871_v12 = vld [vmem:[#allocation2 + $0x10] sm:$0xff] }
 0x371   : > { %1057 = vmatprep.mubr.bf16.mxu1 %v926_v42  ;;  %1120 = vadd.xlane.f32.xlu0 %v1119_v36  ;;  %v860_v18 = vmul.f32 0.5, %v852_v14  ;;  %v870_v36 = vld [vmem:[#allocation2 + $0x8] sm:$0xff] }
 0x372   : > { %1058 = vmatmul.mubr.bf16.vlgmr.msra.gmra.mrb[0].mxu1 %v925_v39  ;;  %v866_v19 = vmul.f32 %v858_v15, %v2659_v58  ;;  %v867_v20 = vmul.f32 %v859_v17, %v2664_v63  ;;  %v1115_v21 = vmul.f32 %v865_v16, %v865_v16  ;;  %v889_v23 = vmul.f32 %v878_v47, %v865_v16  ;;  %v1082_v63 = vld [vmem:[#allocation3] sm:$0xff]  ;;  %v872_v15 = vld [vmem:[#allocation2 + $0x18] sm:$0xff] }
 0x373   : > { %1123 = vadd.xlane.f32.xlu1 %v1122_v13  ;;  %v868_v22 = vmul.f32 %v860_v18, %v2669_v8 }
 0x374   : > { %v1092_v24 = vadd.f32 %v866_v19, %v865_v16  ;;  %v890_v25 = vmul.f32 %v882_v50, %v866_v19  ;;  %v1116_v26 = vmul.f32 %v866_v19, %v866_v19  ;;  %v891_v29 = vmul.f32 %v878_v47, %v867_v20  ;;  %v1108_v47 = vld [vmem:[#allocation4 + $0x8] sm:$0xff] }
 0x375   : > { %v1095_v31 = vadd.f32 %v868_v22, %v867_v20  ;;  %v892_v54 = vmul.f32 %v882_v50, %v868_v22  ;;  %v1117_v32 = vmul.f32 %v867_v20, %v867_v20  ;;  %v1118_v33 = vmul.f32 %v868_v22, %v868_v22 }
 0x376   : > { %1093 = vadd.xlane.f32.xlu0 %v1092_v24  ;;  %v1125_v35 = vadd.f32 %v1116_v26, %v1115_v21  ;;  %v927_v37 = vpack.c.bf16 %v891_v29, %v889_v23  ;;  %v2147_v23 = vmov (!%p1514_p13), 0  }
 0x377   : > { %1096 = vadd.xlane.f32.xlu1 %v1095_v31  ;;  %v928_v58 = vpack.c.bf16 %v892_v54, %v890_v25  ;;  %v1128_v38 = vadd.f32 %v1118_v33, %v1117_v32  ;;  %1755 = vset.pattern.permute.xlu0 (!%p1514_p13), %v2147_v23 }
 0x378   : > { %1756 = vset.pattern.permute.xlu1 (!%p1514_p13), %v2147_v23 }
 0x379   : > { %1065 = vmatprep.mubr.bf16.mxu1 %v928_v58 }
 0x37a   : > { %1126 = vadd.xlane.f32.xlu0 %v1125_v35  ;;  %1066 = vmatmul.mubr.bf16.gmra.mrb[4].mxu1 %v927_v37 }
 0x37b   : > { %1129 = vadd.xlane.f32.xlu1 %v1128_v38 }
 0x3fa   : > { %v1088_v8 = vpop.xlane.xlu0 %1087 }
 0x3fb   : > { %v1098_v41 = vadd.f32 %v1088_v8, %v1082_v63 }
 0x3fc   : > { %v1091_v43 = vpop.xlane.xlu1 %1090 }
 0x3fd   : > { %1103 = vst.msk [vmem:[#allocation3] sm:$0xff] %vm1102_vm1, %v1098_v41  ;;  %v1099_v45 = vadd.f32 %v1091_v43, %v1083_v40 }
 0x3fe   : > { %v1121_v46 = vpop.xlane.xlu0 %1120 }
 0x3ff   : > { %1104 = vst.msk [vmem:[#allocation3 + $0x8] sm:$0xff] %vm1102_vm1, %v1099_v45  ;;  %v1131_v48 = vadd.f32 %v1121_v46, %v1107_v44 }
 0x400   : > { %v1124_v49 = vpop.xlane.xlu1 %1123 }
 0x401   : > { %1135 = vst.msk [vmem:[#allocation4] sm:$0xff] %vm1102_vm1, %v1131_v48  ;;  %v1132_v50 = vadd.f32 %v1124_v49, %v1108_v47 }
 0x403   : > { %1136 = vst.msk [vmem:[#allocation4 + $0x8] sm:$0xff] %vm1102_vm1, %v1132_v50  ;;  %v1094_v53 = vpop.xlane.xlu0 %1093 }
 0x404   : > { %v1100_v55 = vadd.f32 %v1094_v53, %v1084_v51  ;;  %v1097_v56 = vpop.xlane.xlu1 %1096  ;;  %v1143_v22 = vld [vmem:[#allocation3] sm:$0xff] (!%p1514_p13) }
 0x405   : > { %v1101_v57 = vadd.f32 %v1097_v56, %v1085_v52  ;;  %v1147_v26 = vmul.f32 (!%p1514_p13), 0.001953125, %v1143_v22 }
 0x406   : > { %1105 = vst.msk [vmem:[#allocation3 + $0x10] sm:$0xff] %vm1102_vm1, %v1100_v55  ;;  %v1144_v37 = vld [vmem:[#allocation3 + $0x8] sm:$0xff] (!%p1514_p13) }
 0x407   : > { %1106 = vst.msk [vmem:[#allocation3 + $0x18] sm:$0xff] %vm1102_vm1, %v1101_v57  ;;  %v1127_v61 = vpop.xlane.xlu0 %1126  ;;  %v1159_v63 = vmul.f32 (!%p1514_p13), %v1147_v26, %v1147_v26  ;;  %v1148_v8 = vmul.f32 (!%p1514_p13), 0.001953125, %v1144_v37 }
 0x408   : > { %v1133_v62 = vadd.f32 %v1127_v61, %v1109_v59  ;;  %v1130_v28 = vpop.xlane.xlu1 %1129  ;;  %v1151_v29 = vld [vmem:[#allocation4] sm:$0xff] (!%p1514_p13) }
 0x409   : > { %v1134_v0 = vadd.f32 %v1130_v28, %v1110_v60  ;;  %v1155_v32 = vmul.f32 (!%p1514_p13), 0.001953125, %v1151_v29  ;;  %v1160_v45 = vmul.f32 (!%p1514_p13), %v1148_v8, %v1148_v8 }
 0x40a   : > { %1137 = vst.msk [vmem:[#allocation4 + $0x10] sm:$0xff] %vm1102_vm1, %v1133_v62  ;;  %v1152_v58 = vld [vmem:[#allocation4 + $0x8] sm:$0xff] (!%p1514_p13) }
 0x40b   : > { %1138 = vst.msk [vmem:[#allocation4 + $0x18] sm:$0xff] %vm1102_vm1, %v1134_v0  ;;  %v1156_v40 = vmul.f32 (!%p1514_p13), 0.001953125, %v1152_v58  ;;  %v1163_v44 = vsub.f32 (!%p1514_p13), %v1155_v32, %v1159_v63 }
 0x40d   : > { %v1145_v20 = vld [vmem:[#allocation3 + $0x10] sm:$0xff] (!%p1514_p13)  ;;  %v1167_v48 = vadd.f32 (!%p1514_p13), 1e-05, %v1163_v44  ;;  %v1164_v49 = vsub.f32 (!%p1514_p13), %v1156_v40, %v1160_v45 }
 0x40e   : > { %v1149_v24 = vmul.f32 (!%p1514_p13), 0.001953125, %v1145_v20  ;;  %v1146_v31 = vld [vmem:[#allocation3 + $0x18] sm:$0xff] (!%p1514_p13) }
 0x40f   : > { %v1150_v33 = vmul.f32 (!%p1514_p13), 0.001953125, %v1146_v31  ;;  %v1168_v51 = vadd.f32 (!%p1514_p13), 1e-05, %v1164_v49 }
 0x410   : > { %v1161_v38 = vmul.f32 (!%p1514_p13), %v1149_v24, %v1149_v24 }
 0x411   : > { %v1153_v21 = vld [vmem:[#allocation4 + $0x10] sm:$0xff] (!%p1514_p13)  ;;  %v1162_v41 = vmul.f32 (!%p1514_p13), %v1150_v33, %v1150_v33 }
 0x412   : > { %v1157_v25 = vmul.f32 (!%p1514_p13), 0.001953125, %v1153_v21  ;;  %v1154_v54 = vld [vmem:[#allocation4 + $0x18] sm:$0xff] (!%p1514_p13) }
 0x413   : > { %v1158_v35 = vmul.f32 (!%p1514_p13), 0.001953125, %v1154_v54 }
 0x414   : > { %v1165_v43 = vsub.f32 (!%p1514_p13), %v1157_v25, %v1161_v38 }
 0x415   : > { %v1166_v46 = vsub.f32 (!%p1514_p13), %v1158_v35, %v1162_v41 }
 0x416   : > { %v1169_v47 = vadd.f32 (!%p1514_p13), 1e-05, %v1165_v43 }
 0x417   : > { %v1170_v50 = vadd.f32 (!%p1514_p13), 1e-05, %v1166_v46 }
 0x418   : > { %1757 = vrsqrt.f32 (!%p1514_p13), %v1169_v47 }
 0x419   : > { %1759 = vrsqrt.f32 (!%p1514_p13), %v1167_v48 }
 0x41a   : > { %1761 = vrsqrt.f32 (!%p1514_p13), %v1170_v50 }
 0x41b   : > { %1763 = vrsqrt.f32 (!%p1514_p13), %v1168_v51 }
 0x422   : > { %v1758_v52 = vpop.eup (!%p1514_p13), %1757 }
 0x423   : > { %v1760_v53 = vpop.eup (!%p1514_p13), %1759  ;;  %1191 = vperm.xlu1 (!%p1514_p13), %1756, %v1758_v52   ;;  %v1205_v61 = vmul.f32 (!%p1514_p13), %v1758_v52, %v1149_v24 }
 0x424   : > { %v1762_v55 = vpop.eup (!%p1514_p13), %1761  ;;  %1181 = vperm.xlu0 (!%p1514_p13), %1755, %v1760_v53   ;;  %v1203_v59 = vmul.f32 (!%p1514_p13), %v1760_v53, %v1147_v26 }
 0x425   : > { %v1764_v56 = vpop.eup (!%p1514_p13), %1763  ;;  %v1206_v60 = vmul.f32 (!%p1514_p13), %v1762_v55, %v1150_v33 }
 0x426   : > { %v1204_v57 = vmul.f32 (!%p1514_p13), %v1764_v56, %v1148_v8 }
 0x427   : > { %1196 = vperm.xlu1 (!%p1514_p13), %1756, %v1762_v55  }
 0x428   : > { %1186 = vperm.xlu0 (!%p1514_p13), %1755, %v1764_v56  }
 0x42b   : > { %1215 = vperm.xlu1 (!%p1514_p13), %1756, %v1204_v57  }
 0x42c   : > { %1210 = vperm.xlu0 (!%p1514_p13), %1755, %v1203_v59  }
 0x42f   : > { %1225 = vperm.xlu1 (!%p1514_p13), %1756, %v1206_v60  }
 0x430   : > { %1220 = vperm.xlu0 (!%p1514_p13), %1755, %v1205_v61  }
 0x445   : > { %v1541_v34 = vpop.f32.mrb[0].mxu1 }
 0x446   : > { %v1542_v6 = vpop.f32.mrb[1].mxu1 }
 0x447   : > { %v1543_v27 = vadd.f32 %v1542_v6, %v1541_v34  ;;  %v1544_v30 = vpop.f32.mrb[2].mxu1  ;;  %v1515_v6 = vld [vmem:[#allocation16] ss:$0 sm:$0xff] (!%p1514_p13) }
 0x448   : > { %v1545_v7 = vpop.f32.mrb[3].mxu1 }
 0x449   : > { %v1074_v9 = vadd.f32 %v1543_v27, %v869_v5  ;;  %v1546_v39 = vadd.f32 %v1545_v7, %v1544_v30 }
 0x44b   : > { %1078 = vst [vmem:[#allocation2] sm:$0xff] %v1074_v9  ;;  %v1075_v10 = vadd.f32 %v1546_v39, %v870_v36 }
 0x44d   : > { %1079 = vst [vmem:[#allocation2 + $0x8] sm:$0xff] %v1075_v10  ;;  %v1547_v11 = vpop.f32.mrb[4].mxu1 }
 0x44e   : > { %v1548_v42 = vpop.f32.mrb[5].mxu1 }
 0x44f   : > { %v1549_v13 = vadd.f32 %v1548_v42, %v1547_v11  ;;  %v1550_v14 = vpop.f32.mrb[6].mxu1  ;;  %1142 = sbr.rel (%p1514_p13) target bundleno = 1209 (0x4b9), region = 100  ;;  %v1516_v11 = vld [vmem:[#allocation17] ss:$0 sm:$0xff] (!%p1514_p13) }
 0x450   : > { %v1551_v16 = vpop.f32.mrb[7].mxu1 }
 0x451   : > { %v1076_v17 = vadd.f32 %v1549_v13, %v871_v12  ;;  %v1552_v18 = vadd.f32 %v1551_v16, %v1550_v14 }
 0x452   : > { %v1175_v27 = vld [vmem:[#allocation2] sm:$0xff] (!%p1514_p13) }
 0x453   : > { %1080 = vst [vmem:[#allocation2 + $0x10] sm:$0xff] %v1076_v17  ;;  %v1077_v19 = vadd.f32 %v1552_v18, %v872_v15 }
 0x454   : > { %v1176_v5 = vld [vmem:[#allocation2 + $0x8] sm:$0xff] (!%p1514_p13) }
 0x455   : > { %1081 = vst [vmem:[#allocation2 + $0x18] sm:$0xff] %v1077_v19 }
 0x45a   : > { %v1177_v42 = vld [vmem:[#allocation2 + $0x10] sm:$0xff] }
 0x45c   : > { %v1178_v10 = vld [vmem:[#allocation2 + $0x18] sm:$0xff] }
 0x4a2   : > { %v1192_v62 = vpop.permute.xlu1 %1191 }
 0x4a3   : > { %v1182_v28 = vpop.permute.xlu0 %1181  ;;  %v1201_v20 = vmul.f32 %v1192_v62, %v1177_v42 }
 0x4a4   : > { %v1199_v39 = vmul.f32 %v1182_v28, %v1175_v27 }
 0x4a6   : > { %v1197_v0 = vpop.permute.xlu1 %1196 }
 0x4a7   : > { %v1187_v34 = vpop.permute.xlu0 %1186  ;;  %v1202_v16 = vmul.f32 %v1197_v0, %v1178_v10 }
 0x4a8   : > { %v1200_v36 = vmul.f32 %v1187_v34, %v1176_v5 }
 0x4aa   : > { %v1216_v30 = vpop.permute.xlu1 %1215 }
 0x4ab   : > { %v1235_v7 = vmul.f32 %v1515_v6, %v1216_v30  ;;  %v1211_v9 = vpop.permute.xlu0 %1210 }
 0x4ac   : > { %v1234_v12 = vmul.f32 %v1515_v6, %v1211_v9 }
 0x4ad   : > { %v1239_v13 = vsub.f32 %v1200_v36, %v1235_v7 }
 0x4ae   : > { %v1238_v14 = vsub.f32 %v1199_v39, %v1234_v12  ;;  %v1226_v15 = vpop.permute.xlu1 %1225 }
 0x4af   : > { %v1250_v17 = vadd.f32 %v1516_v11, %v1239_v13  ;;  %v1237_v18 = vmul.f32 %v1515_v6, %v1226_v15  ;;  %v1221_v19 = vpop.permute.xlu0 %1220 }
 0x4b0   : > { %v1249_v21 = vadd.f32 %v1516_v11, %v1238_v14  ;;  %v1236_v22 = vmul.f32 %v1515_v6, %v1221_v19 }
 0x4b1   : > { %v1254_v23 = vadd.f32 %v1250_v17, %v2571_v3  ;;  %v1241_v24 = vsub.f32 %v1202_v16, %v1237_v18 }
 0x4b2   : > { %v1253_v25 = vadd.f32 %v1249_v21, %v2567_v1  ;;  %v1240_v26 = vsub.f32 %v1201_v20, %v1236_v22 }
 0x4b3   : > { %1258 = vst [vmem:[#allocation20 + $0x8] sm:$0xff] %v1254_v23  ;;  %v1252_v29 = vadd.f32 %v1516_v11, %v1241_v24 }
 0x4b4   : > { %1257 = vst [vmem:[#allocation20] sm:$0xff] %v1253_v25  ;;  %v1251_v31 = vadd.f32 %v1516_v11, %v1240_v26 }
 0x4b5   : > { %v1256_v54 = vadd.f32 %v1252_v29, %v2575_v4 }
 0x4b6   : > { %v1255_v32 = vadd.f32 %v1251_v31, %v2569_v2 }
 0x4b7   : > { %1260 = vst [vmem:[#allocation20 + $0x18] sm:$0xff] %v1256_v54 }
 0x4b8   : > { %1259 = vst [vmem:[#allocation20 + $0x10] sm:$0xff] %v1255_v32 }
 0x4b9 PF: > { %p1625_p10 = scmp.eq.s32.totalorder %s2230_s15, 1  ;;  %s2148_s19 = smov [#allocation20]  }
 0x4ba   : > { %s1270_s0 = sshll.u32 %s2148_s19, 4  ;;  %s1271_s0 = int_to_ptr.vmem [resolvable:$true] %s1270_s0 }
 0x4bb   : > { %s2025_s23 = scalar_lea.vmem %s1271_s0, 512  ;;  %p2032_p4 = scmp.lt.s32.totalorder %s1271_s0, %s1271_s0 }
 0x4bc   : > { %p2026_p11 = scmp.ne.s32.totalorder %s1271_s0, %s2025_s23  ;;  %p2033_p8 = scmp.lt.s32.totalorder %s2025_s23, %s2025_s23 }
 0x4be   : > { %p2027_p9 = pnand %p2026_p11, %p1625_p10  ;;  %p2034_p3 = por %p2033_p8, %p2032_p4 }
 0x4c0   : > { %p2028_p6 = pneg %p2027_p9 }
 0x4c2   : > { %p2035_p2 = pnand %p2034_p3, %p2028_p6 }
 0x4c4   : > { %2038 = shalt.err (!%p2035_p2)
}
 0x4c5   : > { %s2821_s12 = sld [smem:[#allocation38_spill]] }
 0x4cb   : > { %s2822_s28 = smov %s2821_s12  ;;  %s2039_s30 = scalar_lea.hbm %s2821_s12, 512 }
 0x4cc   : > { %p2040_p5 = scmp.ne.s32.totalorder %s2822_s28, %s2039_s30  ;;  %p2045_p0 = scmp.lt.u32.totalorder %s2039_s30, %s2822_s28 }
 0x4ce   : > { %p2041_p1 = pnand %p2040_p5, %p1625_p10 }
 0x4d0   : > { %p2042_p12 = pneg %p2041_p1 }
 0x4d2   : > { %p2047_p7 = pnand %p2045_p0, %p2042_p12 }
 0x4d4   : > { %2050 = shalt.err (!%p2047_p7)
}
 0x4d5   : > { %s2149_s17 = smov 128   ;;  %s2150_s14 = smov 8  }
 0x4d6   : > { %1582 = dma.vmem_to_hbm [thread:$0]  (%p1625_p10), %s1271_s0, 512, %s2822_s28, [#allocation7], %s2149_s17, %s2149_s17, %s2150_s14  }
 0x4d7   : > { %2104 = dma.done.wait (%p1625_p10), [#allocation7], 512  }
 0x4d8   : > { %2106 = vsyncadd (%p1625_p10), [#allocation7], 4294966784 }
 0x4d9 PF: > { %s2823_s9 = sld [smem:[#allocation30_spill]]  ;;  %s2824_s24 = sld [smem:[#allocation33_spill]] }
 0x4da   : > { %s2825_s27 = sld [smem:[#allocation32_spill]]  ;;  %s2826_s30 = smov %s2113_s10 }
 0x4db   : > { %s2827_s10 = smov %s2117_s11  ;;  %s2829_s12 = smov %s2125_s13 }
 0x4df   : > { %s29_s14 = sadd.s32 1, %s2823_s9   ;;  %s2828_s11 = smov %s2824_s24 }
 0x4e0   : > { %p26_p13 = scmp.ge.s32.totalorder %s29_s14, 4   ;;  %s2830_s13 = smov %s2825_s27 }
 0x4e2   :  { %28 = sbr.rel (!%p26_p13) target bundleno = 16 (0x10), region = 159 }
 0x4e9   :  { %1286 = vsyncpa [#allocation6], 1 }
 0x4ea   :  { %1288 = vsyncpa [#allocation6 + $0x1], 1 }
 0x4eb   :  { %1289 = vsyncpa [#allocation9], 1 }
 0x4ec   :  { %1290 = vsyncpa [#allocation12], 1 }
 0x4ed   :  { %1292 = vsyncpa [#allocation12 + $0x1], 1 }
 0x4ee   :  { %1293 = vsyncpa [#allocation15], 1 }
 0x4ef   :  { %1295 = vsyncpa [#allocation15 + $0x1], 1 }
 0x4f0   :  { %1296 = vsyncpa [#allocation18], 1 }
 0x4f1   :  { %1297 = vsyncpa [#allocation7], 1 }
 0x4f2   :  { %1299 = vsyncpa [#allocation7 + $0x1], 1 }

</bundles_post_ra>
